<compile_context>
chip_gen: v7x
topology: tpu7x:2x2x1
jax: 0.10.0
libtpu: 0.0.40
codegen_flags: <defaults>
</compile_context>

<pallas_src>
import functools

import jax
import jax.numpy as jnp
from jax import lax
from jax.experimental import pallas as pl
from jax.experimental.pallas import tpu as pltpu

_LANE = 128
_SUBLANE = 8


def _round_up(x, m):
    return -(-x // m) * m


def _phys_vmem_bytes(shape, dtype):
    """Physically tiled VMEM footprint: last dim padded to 128 lanes,
    second-last dim padded to 8 * (32-bit packing) sublanes."""
    itemsize = jnp.dtype(dtype).itemsize
    packing = max(1, 4 // itemsize)
    s = [int(d) for d in shape]
    s[-1] = _round_up(s[-1], _LANE)
    if len(s) >= 2:
        s[-2] = _round_up(s[-2], _SUBLANE * packing)
    n = 1
    for d in s:
        n *= d
    return n * itemsize


def _vmem_capacity_bytes():
    try:
        info = pltpu.get_tpu_info()
        cap = getattr(info, "vmem_capacity_bytes", None)
        if cap:
            return int(cap)
    except Exception:
        pass
    return 64 * 1024 * 1024  # conservative default (v7x per-TensorCore VMEM)


def _resblock_kernel(x_ref, w1_ref, b1_ref, w2_ref, b2_ref, o_ref,
                     pa_ref, pb_ref, *, res_scale, pad, left, h_chunk,
                     operand_dtype):
    """One batch tile (Bt images) per grid step.

    x_ref  : (Bt, H, W, Cp)   f32 input block (channels zero-padded to Cp)
    w*_ref : (KH, KW, Cp, Cp) HWIO weights (operand_dtype)
    b*_ref : (1, Cp)          f32 bias
    o_ref  : (Bt, H, W, Cp)   output block
    pa_ref : (Bt, Hp, Wa, Cp) f32 scratch holding zero-padded x
    pb_ref : (Bt, Hp, Wa, Cp) f32 scratch holding zero-padded ReLU(conv1(x))
    """
    KH, KW, Cp, _ = w1_ref.shape
    Bt, H, W, _ = o_ref.shape
    Hp = H + 2 * pad
    f32 = jnp.float32
    n_chunks = H // h_chunk

    def zero_border(p_ref):
        if pad == 0:
            return
        c0 = left - pad                      # first column any window reads
        cw = W + 2 * pad                     # width of the read span
        # rows above / below the image (over the read span only)
        p_ref[:, :pad, c0:c0 + cw, :] = jnp.zeros((Bt, pad, cw, Cp), f32)
        p_ref[:, pad + H:Hp, c0:c0 + cw, :] = jnp.zeros((Bt, pad, cw, Cp), f32)
        # left / right conv-padding columns (all rows)
        p_ref[:, :, c0:left, :] = jnp.zeros((Bt, Hp, pad, Cp), f32)
        p_ref[:, :, left + W:left + W + pad, :] = jnp.zeros((Bt, Hp, pad, Cp), f32)

    # Per-step zeroing is intentional: scratch is per-core and the batch axis
    # is "parallel"; gating on pl.program_id(0)==0 would be unsound on v7x.
    zero_border(pa_ref)
    zero_border(pb_ref)

    # Interior of A := x.  `left` is a multiple of 8 -> aligned lane-dense store.
    pa_ref[:, pad:pad + H, left:left + W, :] = x_ref[...]

    def conv_chunk(src_ref, w_ref, r0):
        """KHxKW conv for output rows [r0, r0+h_chunk) as shifted-window matmuls
        (operand_dtype operands, f32 accumulation)."""
        m = Bt * h_chunk * W
        acc = jnp.zeros((m, Cp), f32)
        for kh in range(KH):
            for kw in range(KW):
                off = left - pad + kw        # only the +/-pad windows are unaligned
                patch = src_ref[:, r0 + kh:r0 + kh + h_chunk, off:off + W, :]
                patch = patch.reshape(m, Cp).astype(operand_dtype)
                acc = acc + jnp.dot(patch, w_ref[kh, kw],
                                    preferred_element_type=f32)
        return acc

    # ---- conv1 + bias + ReLU, row-chunked, written into pad buffer B --------
    for c in range(n_chunks):
        r0 = c * h_chunk
        y = jnp.maximum(conv_chunk(pa_ref, w1_ref, r0) + b1_ref[...], 0.0)
        pb_ref[:, pad + r0:pad + r0 + h_chunk, left:left + W, :] = (
            y.reshape(Bt, h_chunk, W, Cp))

    # ---- conv2 + bias + residual, row-chunked, aligned lane-dense stores ----
    for c in range(n_chunks):
        r0 = c * h_chunk
        m = Bt * h_chunk * W
        y2 = conv_chunk(pb_ref, w2_ref, r0) + b2_ref[...]
        if res_scale != 1.0:
            y2 = y2 * res_scale
        res = y2 + x_ref[:, r0:r0 + h_chunk, :, :].reshape(m, Cp)
        o_ref[:, r0:r0 + h_chunk, :, :] = (
            res.reshape(Bt, h_chunk, W, Cp).astype(o_ref.dtype))


def resblock_forward(x_nchw, w1, b1, w2, b2, *, res_scale=1.0,
                     batch_tile=None, h_chunk=None,
                     operand_dtype=jnp.bfloat16):
    """x_nchw: (B, C, H, W) f32.  w*: (KH, KW, C, C) HWIO.  b*: (C,).

    operand_dtype is the MXU operand dtype (bf16 default, f32 accumulation);
    pass jnp.float32 for training-grade precision.
    """
    B, C, H, W = map(int, x_nchw.shape)
    KH, KW = int(w1.shape[0]), int(w1.shape[1])
    assert KH == KW, "non-square kernels unsupported (pad derived from KH)"
    pad = KH // 2

    # Lane-dense channels: zero-pad C to a multiple of 128.
    Cp = _round_up(C, _LANE)
    left = _round_up(pad, _SUBLANE)            # sublane-aligned interior origin
    Hp = H + 2 * pad
    Wa = _round_up(left + W + pad, _SUBLANE)

    # NHWC + channel pad (fuses into one XLA op under jit).
    x = jnp.pad(jnp.transpose(x_nchw, (0, 2, 3, 1)),
                ((0, 0), (0, 0), (0, 0), (0, Cp - C)))

    def pad_w(w):
        return jnp.pad(w, ((0, 0), (0, 0), (0, Cp - C), (0, Cp - C))
                       ).astype(operand_dtype)

    def pad_b(b):
        return jnp.pad(b, ((0, Cp - C),)).reshape(1, Cp).astype(jnp.float32)

    w1p, w2p = pad_w(w1), pad_w(w2)
    b1p, b2p = pad_b(b1), pad_b(b2)

    # ---- per-generation VMEM-aware batch-tile choice ------------------------
    vmem_cap = _vmem_capacity_bytes()
    budget = int(0.45 * vmem_cap)              # blocks + scratch under ~half VMEM
    io_blk = _phys_vmem_bytes((1, H, W, Cp), jnp.float32)
    scratch = 2 * _phys_vmem_bytes((1, Hp, Wa, Cp), jnp.float32)
    per_img = 4 * io_blk + scratch             # double-buffered in + out blocks
    fixed = (4 * _phys_vmem_bytes((KH, KW, Cp, Cp), operand_dtype)
             + 4 * _phys_vmem_bytes((1, Cp), jnp.float32)
             + (2 << 20))                      # headroom for compiler temporaries

    if batch_tile is None:
        max_bt_mem = max(1, (budget - fixed) // max(per_img, 1))
        cap = B // 2 if B >= 2 else 1          # >=2 grid steps for v7x megacore
        bt = int(max(1, min(B, cap, max_bt_mem)))
        while B % bt:
            bt -= 1
        batch_tile = bt
    Bt = int(batch_tile)
    assert B % Bt == 0, "batch_tile must divide the batch size"

    if h_chunk is None:
        hc = max(1, 128 // max(1, Bt * W))     # keep each f32 acc tile vreg-sized
        hc = max(hc, -(-H // 16))              # but cap unrolled chunk count
        hc = min(hc, H)
        while H % hc:
            hc -= 1
        h_chunk = hc
    Hc = int(h_chunk)
    assert H % Hc == 0, "h_chunk must divide H"

    vmem_limit = int(min(0.75 * vmem_cap, 112 * 1024 * 1024))
    vmem_limit = int(max(vmem_limit, fixed + Bt * per_img))

    kern = functools.partial(
        _resblock_kernel, res_scale=float(res_scale), pad=pad, left=left,
        h_chunk=Hc, operand_dtype=operand_dtype)

    out = pl.pallas_call(
        kern,
        out_shape=jax.ShapeDtypeStruct((B, H, W, Cp), x.dtype),
        grid_spec=pltpu.PrefetchScalarGridSpec(
            num_scalar_prefetch=0,
            grid=(B // Bt,),
            in_specs=[
                pl.BlockSpec((Bt, H, W, Cp), lambda b: (b, 0, 0, 0)),
                pl.BlockSpec((KH, KW, Cp, Cp), lambda b: (0, 0, 0, 0)),
                pl.BlockSpec((1, Cp), lambda b: (0, 0)),
                pl.BlockSpec((KH, KW, Cp, Cp), lambda b: (0, 0, 0, 0)),
                pl.BlockSpec((1, Cp), lambda b: (0, 0)),
            ],
            out_specs=pl.BlockSpec((Bt, H, W, Cp), lambda b: (b, 0, 0, 0)),
            scratch_shapes=[
                pltpu.VMEM((Bt, Hp, Wa, Cp), jnp.float32),   # padded x
                pltpu.VMEM((Bt, Hp, Wa, Cp), jnp.float32),   # padded ReLU(conv1)
            ],
        ),
        compiler_params=pltpu.CompilerParams(
            dimension_semantics=("parallel",),               # independent images
            vmem_limit_bytes=vmem_limit,
        ),
    )(x, w1p, b1p, w2p, b2p)

    # Drop the padded channels and go back to NCHW (fuses into one pass).
    return jnp.transpose(out[..., :C], (0, 3, 1, 2))


def resblock_reference(x_nchw, w1, b1, w2, b2, *, res_scale=1.0):
    """Pure-JAX f32 reference (lax conv) for correctness checking."""
    x = jnp.transpose(x_nchw, (0, 2, 3, 1))
    dn = ("NHWC", "HWIO", "NHWC")
    y = lax.conv_general_dilated(x, w1, (1, 1), "SAME",
                                 dimension_numbers=dn) + b1
    y = jnp.maximum(y, 0.0)
    y = lax.conv_general_dilated(y, w2, (1, 1), "SAME",
                                 dimension_numbers=dn) + b2
    out = y * res_scale + x
    return jnp.transpose(out, (0, 3, 1, 2))


if __name__ == "__main__":
    # Small shapes consistent with ResBlock(conv, n_feats=4, kernel_size=3).
    B, C, H, W, K = 2, 4, 16, 16, 3
    RES_SCALE = 1.0

    key = jax.random.PRNGKey(0)
    kx, kw1, kb1, kw2, kb2 = jax.random.split(key, 5)
    x = jax.random.normal(kx, (B, C, H, W), jnp.float32)
    w1 = jax.random.normal(kw1, (K, K, C, C), jnp.float32) * 0.1
    b1 = jax.random.normal(kb1, (C,), jnp.float32) * 0.1
    w2 = jax.random.normal(kw2, (K, K, C, C), jnp.float32) * 0.1
    b2 = jax.random.normal(kb2, (C,), jnp.float32) * 0.1

    fwd = jax.jit(functools.partial(resblock_forward, res_scale=RES_SCALE))
    out = jax.block_until_ready(fwd(x, w1, b1, w2, b2))

    ref = resblock_reference(x, w1, b1, w2, b2, res_scale=RES_SCALE)
    assert out.shape == (B, C, H, W)
    max_err = float(jnp.max(jnp.abs(out - ref)))
    # bf16 MXU operands (f32 accumulation) -> tolerance loosened vs pure-f32.
    assert jnp.allclose(out, ref, atol=5e-2, rtol=5e-2), max_err

    print("KERNEL_OK")
</pallas_src>

<mosaic_0001>
module attributes {stable_mosaic.version = 11 : i64} {
  func.func @_resblock_kernel(%arg0: i32, %arg1: memref<1x16x16x128xf32, #tpu.memory_space<vmem>>, %arg2: memref<3x3x128x128xbf16, #tpu.memory_space<vmem>>, %arg3: memref<1x128xf32, #tpu.memory_space<vmem>>, %arg4: memref<3x3x128x128xbf16, #tpu.memory_space<vmem>>, %arg5: memref<1x128xf32, #tpu.memory_space<vmem>>, %arg6: memref<1x16x16x128xf32, #tpu.memory_space<vmem>>, %arg7: memref<1x18x32x128xf32, #tpu.memory_space<vmem>>, %arg8: memref<1x18x32x128xf32, #tpu.memory_space<vmem>>) attributes {dimension_semantics = [#tpu.dimension_semantics<parallel>], iteration_bounds = array<i64: 2>, scalar_prefetch = 0 : i64, scratch_operands = 2 : i64, tpu.core_type = #tpu.core_type<tc>, window_params = [{transform_indices = @transform_0, window_bounds = array<i64: 1, 16, 16, 128>}, {pipeline_mode = #tpu.pipeline_mode<synchronous>, transform_indices = @transform_1, window_bounds = array<i64: 3, 3, 128, 128>}, {pipeline_mode = #tpu.pipeline_mode<synchronous>, transform_indices = @transform_2, window_bounds = array<i64: 1, 128>}, {pipeline_mode = #tpu.pipeline_mode<synchronous>, transform_indices = @transform_3, window_bounds = array<i64: 3, 3, 128, 128>}, {pipeline_mode = #tpu.pipeline_mode<synchronous>, transform_indices = @transform_4, window_bounds = array<i64: 1, 128>}, {transform_indices = @transform_5, window_bounds = array<i64: 1, 16, 16, 128>}]} {
    %cst = arith.constant 0.000000e+00 : f32
    %0 = vector.broadcast %cst : f32 to vector<1x1x18x128xf32>
    %c0 = arith.constant 0 : index
    %c0_0 = arith.constant 0 : index
    %c7 = arith.constant 7 : index
    %c0_1 = arith.constant 0 : index
    %1 = vector.load %arg7[%c0, %c0_0, %c7, %c0_1] : memref<1x18x32x128xf32, #tpu.memory_space<vmem>>, vector<1x1x18x128xf32>
    tpu.vector_store %arg7[%c0, %c0_0, %c7, %c0_1], %0 {strides = array<i32>} : memref<1x18x32x128xf32, #tpu.memory_space<vmem>>, vector<1x1x18x128xf32>,
    %cst_2 = arith.constant 0.000000e+00 : f32
    %2 = vector.broadcast %cst_2 : f32 to vector<1x1x18x128xf32>
    %c0_3 = arith.constant 0 : index
    %c17 = arith.constant 17 : index
    %c7_4 = arith.constant 7 : index
    %c0_5 = arith.constant 0 : index
    %3 = vector.load %arg7[%c0_3, %c17, %c7_4, %c0_5] : memref<1x18x32x128xf32, #tpu.memory_space<vmem>>, vector<1x1x18x128xf32>
    tpu.vector_store %arg7[%c0_3, %c17, %c7_4, %c0_5], %2 {strides = array<i32>} : memref<1x18x32x128xf32, #tpu.memory_space<vmem>>, vector<1x1x18x128xf32>,
    %cst_6 = arith.constant 0.000000e+00 : f32
    %4 = vector.broadcast %cst_6 : f32 to vector<1x18x1x128xf32>
    %c0_7 = arith.constant 0 : index
    %c0_8 = arith.constant 0 : index
    %c7_9 = arith.constant 7 : index
    %c0_10 = arith.constant 0 : index
    %5 = vector.load %arg7[%c0_7, %c0_8, %c7_9, %c0_10] : memref<1x18x32x128xf32, #tpu.memory_space<vmem>>, vector<1x18x1x128xf32>
    tpu.vector_store %arg7[%c0_7, %c0_8, %c7_9, %c0_10], %4 {strides = array<i32>} : memref<1x18x32x128xf32, #tpu.memory_space<vmem>>, vector<1x18x1x128xf32>,
    %cst_11 = arith.constant 0.000000e+00 : f32
    %6 = vector.broadcast %cst_11 : f32 to vector<1x18x1x128xf32>
    %c0_12 = arith.constant 0 : index
    %c0_13 = arith.constant 0 : index
    %c24 = arith.constant 24 : index
    %c0_14 = arith.constant 0 : index
    %7 = vector.load %arg7[%c0_12, %c0_13, %c24, %c0_14] : memref<1x18x32x128xf32, #tpu.memory_space<vmem>>, vector<1x18x1x128xf32>
    tpu.vector_store %arg7[%c0_12, %c0_13, %c24, %c0_14], %6 {strides = array<i32>} : memref<1x18x32x128xf32, #tpu.memory_space<vmem>>, vector<1x18x1x128xf32>,
    %cst_15 = arith.constant 0.000000e+00 : f32
    %8 = vector.broadcast %cst_15 : f32 to vector<1x1x18x128xf32>
    %c0_16 = arith.constant 0 : index
    %c0_17 = arith.constant 0 : index
    %c7_18 = arith.constant 7 : index
    %c0_19 = arith.constant 0 : index
    %9 = vector.load %arg8[%c0_16, %c0_17, %c7_18, %c0_19] : memref<1x18x32x128xf32, #tpu.memory_space<vmem>>, vector<1x1x18x128xf32>
    tpu.vector_store %arg8[%c0_16, %c0_17, %c7_18, %c0_19], %8 {strides = array<i32>} : memref<1x18x32x128xf32, #tpu.memory_space<vmem>>, vector<1x1x18x128xf32>,
    %cst_20 = arith.constant 0.000000e+00 : f32
    %10 = vector.broadcast %cst_20 : f32 to vector<1x1x18x128xf32>
    %c0_21 = arith.constant 0 : index
    %c17_22 = arith.constant 17 : index
    %c7_23 = arith.constant 7 : index
    %c0_24 = arith.constant 0 : index
    %11 = vector.load %arg8[%c0_21, %c17_22, %c7_23, %c0_24] : memref<1x18x32x128xf32, #tpu.memory_space<vmem>>, vector<1x1x18x128xf32>
    tpu.vector_store %arg8[%c0_21, %c17_22, %c7_23, %c0_24], %10 {strides = array<i32>} : memref<1x18x32x128xf32, #tpu.memory_space<vmem>>, vector<1x1x18x128xf32>,
    %cst_25 = arith.constant 0.000000e+00 : f32
    %12 = vector.broadcast %cst_25 : f32 to vector<1x18x1x128xf32>
    %c0_26 = arith.constant 0 : index
    %c0_27 = arith.constant 0 : index
    %c7_28 = arith.constant 7 : index
    %c0_29 = arith.constant 0 : index
    %13 = vector.load %arg8[%c0_26, %c0_27, %c7_28, %c0_29] : memref<1x18x32x128xf32, #tpu.memory_space<vmem>>, vector<1x18x1x128xf32>
    tpu.vector_store %arg8[%c0_26, %c0_27, %c7_28, %c0_29], %12 {strides = array<i32>} : memref<1x18x32x128xf32, #tpu.memory_space<vmem>>, vector<1x18x1x128xf32>,
    %cst_30 = arith.constant 0.000000e+00 : f32
    %14 = vector.broadcast %cst_30 : f32 to vector<1x18x1x128xf32>
    %c0_31 = arith.constant 0 : index
    %c0_32 = arith.constant 0 : index
    %c24_33 = arith.constant 24 : index
    %c0_34 = arith.constant 0 : index
    %15 = vector.load %arg8[%c0_31, %c0_32, %c24_33, %c0_34] : memref<1x18x32x128xf32, #tpu.memory_space<vmem>>, vector<1x18x1x128xf32>
    tpu.vector_store %arg8[%c0_31, %c0_32, %c24_33, %c0_34], %14 {strides = array<i32>} : memref<1x18x32x128xf32, #tpu.memory_space<vmem>>, vector<1x18x1x128xf32>,
    %c0_35 = arith.constant 0 : index
    %c0_36 = arith.constant 0 : index
    %c0_37 = arith.constant 0 : index
    %c0_38 = arith.constant 0 : index
    %16 = vector.load %arg1[%c0_35, %c0_36, %c0_37, %c0_38] : memref<1x16x16x128xf32, #tpu.memory_space<vmem>>, vector<1x16x16x128xf32>
    %c0_39 = arith.constant 0 : index
    %c1 = arith.constant 1 : index
    %c8 = arith.constant 8 : index
    %c0_40 = arith.constant 0 : index
    %17 = vector.load %arg7[%c0_39, %c1, %c8, %c0_40] : memref<1x18x32x128xf32, #tpu.memory_space<vmem>>, vector<1x16x16x128xf32>
    tpu.vector_store %arg7[%c0_39, %c1, %c8, %c0_40], %16 {strides = array<i32>} : memref<1x18x32x128xf32, #tpu.memory_space<vmem>>, vector<1x16x16x128xf32>,
    %cst_41 = arith.constant 0.000000e+00 : f32
    %18 = vector.broadcast %cst_41 : f32 to vector<128x128xf32>
    %c0_42 = arith.constant 0 : index
    %c0_43 = arith.constant 0 : index
    %c7_44 = arith.constant 7 : index
    %c0_45 = arith.constant 0 : index
    %19 = vector.load %arg7[%c0_42, %c0_43, %c7_44, %c0_45] : memref<1x18x32x128xf32, #tpu.memory_space<vmem>>, vector<1x8x16x128xf32>
    %20 = vector.shape_cast %19 : vector<1x8x16x128xf32> to vector<128x128xf32>
    %21 = arith.truncf %20 : vector<128x128xf32> to vector<128x128xbf16>
    %c0_46 = arith.constant 0 : index
    %c0_47 = arith.constant 0 : index
    %c0_48 = arith.constant 0 : index
    %c0_49 = arith.constant 0 : index
    %22 = vector.load %arg2[%c0_46, %c0_47, %c0_48, %c0_49] : memref<3x3x128x128xbf16, #tpu.memory_space<vmem>>, vector<1x1x128x128xbf16>
    %23 = vector.shape_cast %22 : vector<1x1x128x128xbf16> to vector<128x128xbf16>
    %cst_50 = arith.constant dense<0.000000e+00> : vector<128x128xf32>
    %24 = tpu.matmul %21, %23, %cst_50 {dimension_numbers = #tpu.dot_dimension_numbers<[1], [0], [0], [1], [0, 0, 1, 1], [], []>} : vector<128x128xbf16>, vector<128x128xbf16>, vector<128x128xf32> -> vector<128x128xf32>
    %25 = arith.addf %18, %24 : vector<128x128xf32>
    %c0_51 = arith.constant 0 : index
    %c0_52 = arith.constant 0 : index
    %c8_53 = arith.constant 8 : index
    %c0_54 = arith.constant 0 : index
    %26 = vector.load %arg7[%c0_51, %c0_52, %c8_53, %c0_54] : memref<1x18x32x128xf32, #tpu.memory_space<vmem>>, vector<1x8x16x128xf32>
    %27 = vector.shape_cast %26 : vector<1x8x16x128xf32> to vector<128x128xf32>
    %28 = arith.truncf %27 : vector<128x128xf32> to vector<128x128xbf16>
    %c0_55 = arith.constant 0 : index
    %c1_56 = arith.constant 1 : index
    %c0_57 = arith.constant 0 : index
    %c0_58 = arith.constant 0 : index
    %29 = vector.load %arg2[%c0_55, %c1_56, %c0_57, %c0_58] : memref<3x3x128x128xbf16, #tpu.memory_space<vmem>>, vector<1x1x128x128xbf16>
    %30 = vector.shape_cast %29 : vector<1x1x128x128xbf16> to vector<128x128xbf16>
    %cst_59 = arith.constant dense<0.000000e+00> : vector<128x128xf32>
    %31 = tpu.matmul %28, %30, %cst_59 {dimension_numbers = #tpu.dot_dimension_numbers<[1], [0], [0], [1], [0, 0, 1, 1], [], []>} : vector<128x128xbf16>, vector<128x128xbf16>, vector<128x128xf32> -> vector<128x128xf32>
    %32 = arith.addf %25, %31 : vector<128x128xf32>
    %c0_60 = arith.constant 0 : index
    %c0_61 = arith.constant 0 : index
    %c9 = arith.constant 9 : index
    %c0_62 = arith.constant 0 : index
    %33 = vector.load %arg7[%c0_60, %c0_61, %c9, %c0_62] : memref<1x18x32x128xf32, #tpu.memory_space<vmem>>, vector<1x8x16x128xf32>
    %34 = vector.shape_cast %33 : vector<1x8x16x128xf32> to vector<128x128xf32>
    %35 = arith.truncf %34 : vector<128x128xf32> to vector<128x128xbf16>
    %c0_63 = arith.constant 0 : index
    %c2 = arith.constant 2 : index
    %c0_64 = arith.constant 0 : index
    %c0_65 = arith.constant 0 : index
    %36 = vector.load %arg2[%c0_63, %c2, %c0_64, %c0_65] : memref<3x3x128x128xbf16, #tpu.memory_space<vmem>>, vector<1x1x128x128xbf16>
    %37 = vector.shape_cast %36 : vector<1x1x128x128xbf16> to vector<128x128xbf16>
    %cst_66 = arith.constant dense<0.000000e+00> : vector<128x128xf32>
    %38 = tpu.matmul %35, %37, %cst_66 {dimension_numbers = #tpu.dot_dimension_numbers<[1], [0], [0], [1], [0, 0, 1, 1], [], []>} : vector<128x128xbf16>, vector<128x128xbf16>, vector<128x128xf32> -> vector<128x128xf32>
    %39 = arith.addf %32, %38 : vector<128x128xf32>
    %c0_67 = arith.constant 0 : index
    %c1_68 = arith.constant 1 : index
    %c7_69 = arith.constant 7 : index
    %c0_70 = arith.constant 0 : index
    %40 = vector.load %arg7[%c0_67, %c1_68, %c7_69, %c0_70] : memref<1x18x32x128xf32, #tpu.memory_space<vmem>>, vector<1x8x16x128xf32>
    %41 = vector.shape_cast %40 : vector<1x8x16x128xf32> to vector<128x128xf32>
    %42 = arith.truncf %41 : vector<128x128xf32> to vector<128x128xbf16>
    %c1_71 = arith.constant 1 : index
    %c0_72 = arith.constant 0 : index
    %c0_73 = arith.constant 0 : index
    %c0_74 = arith.constant 0 : index
    %43 = vector.load %arg2[%c1_71, %c0_72, %c0_73, %c0_74] : memref<3x3x128x128xbf16, #tpu.memory_space<vmem>>, vector<1x1x128x128xbf16>
    %44 = vector.shape_cast %43 : vector<1x1x128x128xbf16> to vector<128x128xbf16>
    %cst_75 = arith.constant dense<0.000000e+00> : vector<128x128xf32>
    %45 = tpu.matmul %42, %44, %cst_75 {dimension_numbers = #tpu.dot_dimension_numbers<[1], [0], [0], [1], [0, 0, 1, 1], [], []>} : vector<128x128xbf16>, vector<128x128xbf16>, vector<128x128xf32> -> vector<128x128xf32>
    %46 = arith.addf %39, %45 : vector<128x128xf32>
    %c0_76 = arith.constant 0 : index
    %c1_77 = arith.constant 1 : index
    %c8_78 = arith.constant 8 : index
    %c0_79 = arith.constant 0 : index
    %47 = vector.load %arg7[%c0_76, %c1_77, %c8_78, %c0_79] : memref<1x18x32x128xf32, #tpu.memory_space<vmem>>, vector<1x8x16x128xf32>
    %48 = vector.shape_cast %47 : vector<1x8x16x128xf32> to vector<128x128xf32>
    %49 = arith.truncf %48 : vector<128x128xf32> to vector<128x128xbf16>
    %c1_80 = arith.constant 1 : index
    %c1_81 = arith.constant 1 : index
    %c0_82 = arith.constant 0 : index
    %c0_83 = arith.constant 0 : index
    %50 = vector.load %arg2[%c1_80, %c1_81, %c0_82, %c0_83] : memref<3x3x128x128xbf16, #tpu.memory_space<vmem>>, vector<1x1x128x128xbf16>
    %51 = vector.shape_cast %50 : vector<1x1x128x128xbf16> to vector<128x128xbf16>
    %cst_84 = arith.constant dense<0.000000e+00> : vector<128x128xf32>
    %52 = tpu.matmul %49, %51, %cst_84 {dimension_numbers = #tpu.dot_dimension_numbers<[1], [0], [0], [1], [0, 0, 1, 1], [], []>} : vector<128x128xbf16>, vector<128x128xbf16>, vector<128x128xf32> -> vector<128x128xf32>
    %53 = arith.addf %46, %52 : vector<128x128xf32>
    %c0_85 = arith.constant 0 : index
    %c1_86 = arith.constant 1 : index
    %c9_87 = arith.constant 9 : index
    %c0_88 = arith.constant 0 : index
    %54 = vector.load %arg7[%c0_85, %c1_86, %c9_87, %c0_88] : memref<1x18x32x128xf32, #tpu.memory_space<vmem>>, vector<1x8x16x128xf32>
    %55 = vector.shape_cast %54 : vector<1x8x16x128xf32> to vector<128x128xf32>
    %56 = arith.truncf %55 : vector<128x128xf32> to vector<128x128xbf16>
    %c1_89 = arith.constant 1 : index
    %c2_90 = arith.constant 2 : index
    %c0_91 = arith.constant 0 : index
    %c0_92 = arith.constant 0 : index
    %57 = vector.load %arg2[%c1_89, %c2_90, %c0_91, %c0_92] : memref<3x3x128x128xbf16, #tpu.memory_space<vmem>>, vector<1x1x128x128xbf16>
    %58 = vector.shape_cast %57 : vector<1x1x128x128xbf16> to vector<128x128xbf16>
    %cst_93 = arith.constant dense<0.000000e+00> : vector<128x128xf32>
    %59 = tpu.matmul %56, %58, %cst_93 {dimension_numbers = #tpu.dot_dimension_numbers<[1], [0], [0], [1], [0, 0, 1, 1], [], []>} : vector<128x128xbf16>, vector<128x128xbf16>, vector<128x128xf32> -> vector<128x128xf32>
    %60 = arith.addf %53, %59 : vector<128x128xf32>
    %c0_94 = arith.constant 0 : index
    %c2_95 = arith.constant 2 : index
    %c7_96 = arith.constant 7 : index
    %c0_97 = arith.constant 0 : index
    %61 = vector.load %arg7[%c0_94, %c2_95, %c7_96, %c0_97] : memref<1x18x32x128xf32, #tpu.memory_space<vmem>>, vector<1x8x16x128xf32>
    %62 = vector.shape_cast %61 : vector<1x8x16x128xf32> to vector<128x128xf32>
    %63 = arith.truncf %62 : vector<128x128xf32> to vector<128x128xbf16>
    %c2_98 = arith.constant 2 : index
    %c0_99 = arith.constant 0 : index
    %c0_100 = arith.constant 0 : index
    %c0_101 = arith.constant 0 : index
    %64 = vector.load %arg2[%c2_98, %c0_99, %c0_100, %c0_101] : memref<3x3x128x128xbf16, #tpu.memory_space<vmem>>, vector<1x1x128x128xbf16>
    %65 = vector.shape_cast %64 : vector<1x1x128x128xbf16> to vector<128x128xbf16>
    %cst_102 = arith.constant dense<0.000000e+00> : vector<128x128xf32>
    %66 = tpu.matmul %63, %65, %cst_102 {dimension_numbers = #tpu.dot_dimension_numbers<[1], [0], [0], [1], [0, 0, 1, 1], [], []>} : vector<128x128xbf16>, vector<128x128xbf16>, vector<128x128xf32> -> vector<128x128xf32>
    %67 = arith.addf %60, %66 : vector<128x128xf32>
    %c0_103 = arith.constant 0 : index
    %c2_104 = arith.constant 2 : index
    %c8_105 = arith.constant 8 : index
    %c0_106 = arith.constant 0 : index
    %68 = vector.load %arg7[%c0_103, %c2_104, %c8_105, %c0_106] : memref<1x18x32x128xf32, #tpu.memory_space<vmem>>, vector<1x8x16x128xf32>
    %69 = vector.shape_cast %68 : vector<1x8x16x128xf32> to vector<128x128xf32>
    %70 = arith.truncf %69 : vector<128x128xf32> to vector<128x128xbf16>
    %c2_107 = arith.constant 2 : index
    %c1_108 = arith.constant 1 : index
    %c0_109 = arith.constant 0 : index
    %c0_110 = arith.constant 0 : index
    %71 = vector.load %arg2[%c2_107, %c1_108, %c0_109, %c0_110] : memref<3x3x128x128xbf16, #tpu.memory_space<vmem>>, vector<1x1x128x128xbf16>
    %72 = vector.shape_cast %71 : vector<1x1x128x128xbf16> to vector<128x128xbf16>
    %cst_111 = arith.constant dense<0.000000e+00> : vector<128x128xf32>
    %73 = tpu.matmul %70, %72, %cst_111 {dimension_numbers = #tpu.dot_dimension_numbers<[1], [0], [0], [1], [0, 0, 1, 1], [], []>} : vector<128x128xbf16>, vector<128x128xbf16>, vector<128x128xf32> -> vector<128x128xf32>
    %74 = arith.addf %67, %73 : vector<128x128xf32>
    %c0_112 = arith.constant 0 : index
    %c2_113 = arith.constant 2 : index
    %c9_114 = arith.constant 9 : index
    %c0_115 = arith.constant 0 : index
    %75 = vector.load %arg7[%c0_112, %c2_113, %c9_114, %c0_115] : memref<1x18x32x128xf32, #tpu.memory_space<vmem>>, vector<1x8x16x128xf32>
    %76 = vector.shape_cast %75 : vector<1x8x16x128xf32> to vector<128x128xf32>
    %77 = arith.truncf %76 : vector<128x128xf32> to vector<128x128xbf16>
    %c2_116 = arith.constant 2 : index
    %c2_117 = arith.constant 2 : index
    %c0_118 = arith.constant 0 : index
    %c0_119 = arith.constant 0 : index
    %78 = vector.load %arg2[%c2_116, %c2_117, %c0_118, %c0_119] : memref<3x3x128x128xbf16, #tpu.memory_space<vmem>>, vector<1x1x128x128xbf16>
    %79 = vector.shape_cast %78 : vector<1x1x128x128xbf16> to vector<128x128xbf16>
    %cst_120 = arith.constant dense<0.000000e+00> : vector<128x128xf32>
    %80 = tpu.matmul %77, %79, %cst_120 {dimension_numbers = #tpu.dot_dimension_numbers<[1], [0], [0], [1], [0, 0, 1, 1], [], []>} : vector<128x128xbf16>, vector<128x128xbf16>, vector<128x128xf32> -> vector<128x128xf32>
    %81 = arith.addf %74, %80 : vector<128x128xf32>
    %c0_121 = arith.constant 0 : index
    %c0_122 = arith.constant 0 : index
    %82 = vector.load %arg3[%c0_121, %c0_122] : memref<1x128xf32, #tpu.memory_space<vmem>>, vector<1x128xf32>
    %83 = vector.broadcast %82 : vector<1x128xf32> to vector<128x128xf32>
    %84 = arith.addf %81, %83 : vector<128x128xf32>
    %cst_123 = arith.constant 0.000000e+00 : f32
    %85 = vector.broadcast %cst_123 : f32 to vector<128x128xf32>
    %86 = arith.maximumf %84, %85 : vector<128x128xf32>
    %87 = vector.shape_cast %86 : vector<128x128xf32> to vector<1x8x16x128xf32>
    %c0_124 = arith.constant 0 : index
    %c1_125 = arith.constant 1 : index
    %c8_126 = arith.constant 8 : index
    %c0_127 = arith.constant 0 : index
    %88 = vector.load %arg8[%c0_124, %c1_125, %c8_126, %c0_127] : memref<1x18x32x128xf32, #tpu.memory_space<vmem>>, vector<1x8x16x128xf32>
    tpu.vector_store %arg8[%c0_124, %c1_125, %c8_126, %c0_127], %87 {strides = array<i32>} : memref<1x18x32x128xf32, #tpu.memory_space<vmem>>, vector<1x8x16x128xf32>,
    %cst_128 = arith.constant 0.000000e+00 : f32
    %89 = vector.broadcast %cst_128 : f32 to vector<128x128xf32>
    %c0_129 = arith.constant 0 : index
    %c8_130 = arith.constant 8 : index
    %c7_131 = arith.constant 7 : index
    %c0_132 = arith.constant 0 : index
    %90 = vector.load %arg7[%c0_129, %c8_130, %c7_131, %c0_132] : memref<1x18x32x128xf32, #tpu.memory_space<vmem>>, vector<1x8x16x128xf32>
    %91 = vector.shape_cast %90 : vector<1x8x16x128xf32> to vector<128x128xf32>
    %92 = arith.truncf %91 : vector<128x128xf32> to vector<128x128xbf16>
    %c0_133 = arith.constant 0 : index
    %c0_134 = arith.constant 0 : index
    %c0_135 = arith.constant 0 : index
    %c0_136 = arith.constant 0 : index
    %93 = vector.load %arg2[%c0_133, %c0_134, %c0_135, %c0_136] : memref<3x3x128x128xbf16, #tpu.memory_space<vmem>>, vector<1x1x128x128xbf16>
    %94 = vector.shape_cast %93 : vector<1x1x128x128xbf16> to vector<128x128xbf16>
    %cst_137 = arith.constant dense<0.000000e+00> : vector<128x128xf32>
    %95 = tpu.matmul %92, %94, %cst_137 {dimension_numbers = #tpu.dot_dimension_numbers<[1], [0], [0], [1], [0, 0, 1, 1], [], []>} : vector<128x128xbf16>, vector<128x128xbf16>, vector<128x128xf32> -> vector<128x128xf32>
    %96 = arith.addf %89, %95 : vector<128x128xf32>
    %c0_138 = arith.constant 0 : index
    %c8_139 = arith.constant 8 : index
    %c8_140 = arith.constant 8 : index
    %c0_141 = arith.constant 0 : index
    %97 = vector.load %arg7[%c0_138, %c8_139, %c8_140, %c0_141] : memref<1x18x32x128xf32, #tpu.memory_space<vmem>>, vector<1x8x16x128xf32>
    %98 = vector.shape_cast %97 : vector<1x8x16x128xf32> to vector<128x128xf32>
    %99 = arith.truncf %98 : vector<128x128xf32> to vector<128x128xbf16>
    %c0_142 = arith.constant 0 : index
    %c1_143 = arith.constant 1 : index
    %c0_144 = arith.constant 0 : index
    %c0_145 = arith.constant 0 : index
    %100 = vector.load %arg2[%c0_142, %c1_143, %c0_144, %c0_145] : memref<3x3x128x128xbf16, #tpu.memory_space<vmem>>, vector<1x1x128x128xbf16>
    %101 = vector.shape_cast %100 : vector<1x1x128x128xbf16> to vector<128x128xbf16>
    %cst_146 = arith.constant dense<0.000000e+00> : vector<128x128xf32>
    %102 = tpu.matmul %99, %101, %cst_146 {dimension_numbers = #tpu.dot_dimension_numbers<[1], [0], [0], [1], [0, 0, 1, 1], [], []>} : vector<128x128xbf16>, vector<128x128xbf16>, vector<128x128xf32> -> vector<128x128xf32>
    %103 = arith.addf %96, %102 : vector<128x128xf32>
    %c0_147 = arith.constant 0 : index
    %c8_148 = arith.constant 8 : index
    %c9_149 = arith.constant 9 : index
    %c0_150 = arith.constant 0 : index
    %104 = vector.load %arg7[%c0_147, %c8_148, %c9_149, %c0_150] : memref<1x18x32x128xf32, #tpu.memory_space<vmem>>, vector<1x8x16x128xf32>
    %105 = vector.shape_cast %104 : vector<1x8x16x128xf32> to vector<128x128xf32>
    %106 = arith.truncf %105 : vector<128x128xf32> to vector<128x128xbf16>
    %c0_151 = arith.constant 0 : index
    %c2_152 = arith.constant 2 : index
    %c0_153 = arith.constant 0 : index
    %c0_154 = arith.constant 0 : index
    %107 = vector.load %arg2[%c0_151, %c2_152, %c0_153, %c0_154] : memref<3x3x128x128xbf16, #tpu.memory_space<vmem>>, vector<1x1x128x128xbf16>
    %108 = vector.shape_cast %107 : vector<1x1x128x128xbf16> to vector<128x128xbf16>
    %cst_155 = arith.constant dense<0.000000e+00> : vector<128x128xf32>
    %109 = tpu.matmul %106, %108, %cst_155 {dimension_numbers = #tpu.dot_dimension_numbers<[1], [0], [0], [1], [0, 0, 1, 1], [], []>} : vector<128x128xbf16>, vector<128x128xbf16>, vector<128x128xf32> -> vector<128x128xf32>
    %110 = arith.addf %103, %109 : vector<128x128xf32>
    %c0_156 = arith.constant 0 : index
    %c9_157 = arith.constant 9 : index
    %c7_158 = arith.constant 7 : index
    %c0_159 = arith.constant 0 : index
    %111 = vector.load %arg7[%c0_156, %c9_157, %c7_158, %c0_159] : memref<1x18x32x128xf32, #tpu.memory_space<vmem>>, vector<1x8x16x128xf32>
    %112 = vector.shape_cast %111 : vector<1x8x16x128xf32> to vector<128x128xf32>
    %113 = arith.truncf %112 : vector<128x128xf32> to vector<128x128xbf16>
    %c1_160 = arith.constant 1 : index
    %c0_161 = arith.constant 0 : index
    %c0_162 = arith.constant 0 : index
    %c0_163 = arith.constant 0 : index
    %114 = vector.load %arg2[%c1_160, %c0_161, %c0_162, %c0_163] : memref<3x3x128x128xbf16, #tpu.memory_space<vmem>>, vector<1x1x128x128xbf16>
    %115 = vector.shape_cast %114 : vector<1x1x128x128xbf16> to vector<128x128xbf16>
    %cst_164 = arith.constant dense<0.000000e+00> : vector<128x128xf32>
    %116 = tpu.matmul %113, %115, %cst_164 {dimension_numbers = #tpu.dot_dimension_numbers<[1], [0], [0], [1], [0, 0, 1, 1], [], []>} : vector<128x128xbf16>, vector<128x128xbf16>, vector<128x128xf32> -> vector<128x128xf32>
    %117 = arith.addf %110, %116 : vector<128x128xf32>
    %c0_165 = arith.constant 0 : index
    %c9_166 = arith.constant 9 : index
    %c8_167 = arith.constant 8 : index
    %c0_168 = arith.constant 0 : index
    %118 = vector.load %arg7[%c0_165, %c9_166, %c8_167, %c0_168] : memref<1x18x32x128xf32, #tpu.memory_space<vmem>>, vector<1x8x16x128xf32>
    %119 = vector.shape_cast %118 : vector<1x8x16x128xf32> to vector<128x128xf32>
    %120 = arith.truncf %119 : vector<128x128xf32> to vector<128x128xbf16>
    %c1_169 = arith.constant 1 : index
    %c1_170 = arith.constant 1 : index
    %c0_171 = arith.constant 0 : index
    %c0_172 = arith.constant 0 : index
    %121 = vector.load %arg2[%c1_169, %c1_170, %c0_171, %c0_172] : memref<3x3x128x128xbf16, #tpu.memory_space<vmem>>, vector<1x1x128x128xbf16>
    %122 = vector.shape_cast %121 : vector<1x1x128x128xbf16> to vector<128x128xbf16>
    %cst_173 = arith.constant dense<0.000000e+00> : vector<128x128xf32>
    %123 = tpu.matmul %120, %122, %cst_173 {dimension_numbers = #tpu.dot_dimension_numbers<[1], [0], [0], [1], [0, 0, 1, 1], [], []>} : vector<128x128xbf16>, vector<128x128xbf16>, vector<128x128xf32> -> vector<128x128xf32>
    %124 = arith.addf %117, %123 : vector<128x128xf32>
    %c0_174 = arith.constant 0 : index
    %c9_175 = arith.constant 9 : index
    %c9_176 = arith.constant 9 : index
    %c0_177 = arith.constant 0 : index
    %125 = vector.load %arg7[%c0_174, %c9_175, %c9_176, %c0_177] : memref<1x18x32x128xf32, #tpu.memory_space<vmem>>, vector<1x8x16x128xf32>
    %126 = vector.shape_cast %125 : vector<1x8x16x128xf32> to vector<128x128xf32>
    %127 = arith.truncf %126 : vector<128x128xf32> to vector<128x128xbf16>
    %c1_178 = arith.constant 1 : index
    %c2_179 = arith.constant 2 : index
    %c0_180 = arith.constant 0 : index
    %c0_181 = arith.constant 0 : index
    %128 = vector.load %arg2[%c1_178, %c2_179, %c0_180, %c0_181] : memref<3x3x128x128xbf16, #tpu.memory_space<vmem>>, vector<1x1x128x128xbf16>
    %129 = vector.shape_cast %128 : vector<1x1x128x128xbf16> to vector<128x128xbf16>
    %cst_182 = arith.constant dense<0.000000e+00> : vector<128x128xf32>
    %130 = tpu.matmul %127, %129, %cst_182 {dimension_numbers = #tpu.dot_dimension_numbers<[1], [0], [0], [1], [0, 0, 1, 1], [], []>} : vector<128x128xbf16>, vector<128x128xbf16>, vector<128x128xf32> -> vector<128x128xf32>
    %131 = arith.addf %124, %130 : vector<128x128xf32>
    %c0_183 = arith.constant 0 : index
    %c10 = arith.constant 10 : index
    %c7_184 = arith.constant 7 : index
    %c0_185 = arith.constant 0 : index
    %132 = vector.load %arg7[%c0_183, %c10, %c7_184, %c0_185] : memref<1x18x32x128xf32, #tpu.memory_space<vmem>>, vector<1x8x16x128xf32>
    %133 = vector.shape_cast %132 : vector<1x8x16x128xf32> to vector<128x128xf32>
    %134 = arith.truncf %133 : vector<128x128xf32> to vector<128x128xbf16>
    %c2_186 = arith.constant 2 : index
    %c0_187 = arith.constant 0 : index
    %c0_188 = arith.constant 0 : index
    %c0_189 = arith.constant 0 : index
    %135 = vector.load %arg2[%c2_186, %c0_187, %c0_188, %c0_189] : memref<3x3x128x128xbf16, #tpu.memory_space<vmem>>, vector<1x1x128x128xbf16>
    %136 = vector.shape_cast %135 : vector<1x1x128x128xbf16> to vector<128x128xbf16>
    %cst_190 = arith.constant dense<0.000000e+00> : vector<128x128xf32>
    %137 = tpu.matmul %134, %136, %cst_190 {dimension_numbers = #tpu.dot_dimension_numbers<[1], [0], [0], [1], [0, 0, 1, 1], [], []>} : vector<128x128xbf16>, vector<128x128xbf16>, vector<128x128xf32> -> vector<128x128xf32>
    %138 = arith.addf %131, %137 : vector<128x128xf32>
    %c0_191 = arith.constant 0 : index
    %c10_192 = arith.constant 10 : index
    %c8_193 = arith.constant 8 : index
    %c0_194 = arith.constant 0 : index
    %139 = vector.load %arg7[%c0_191, %c10_192, %c8_193, %c0_194] : memref<1x18x32x128xf32, #tpu.memory_space<vmem>>, vector<1x8x16x128xf32>
    %140 = vector.shape_cast %139 : vector<1x8x16x128xf32> to vector<128x128xf32>
    %141 = arith.truncf %140 : vector<128x128xf32> to vector<128x128xbf16>
    %c2_195 = arith.constant 2 : index
    %c1_196 = arith.constant 1 : index
    %c0_197 = arith.constant 0 : index
    %c0_198 = arith.constant 0 : index
    %142 = vector.load %arg2[%c2_195, %c1_196, %c0_197, %c0_198] : memref<3x3x128x128xbf16, #tpu.memory_space<vmem>>, vector<1x1x128x128xbf16>
    %143 = vector.shape_cast %142 : vector<1x1x128x128xbf16> to vector<128x128xbf16>
    %cst_199 = arith.constant dense<0.000000e+00> : vector<128x128xf32>
    %144 = tpu.matmul %141, %143, %cst_199 {dimension_numbers = #tpu.dot_dimension_numbers<[1], [0], [0], [1], [0, 0, 1, 1], [], []>} : vector<128x128xbf16>, vector<128x128xbf16>, vector<128x128xf32> -> vector<128x128xf32>
    %145 = arith.addf %138, %144 : vector<128x128xf32>
    %c0_200 = arith.constant 0 : index
    %c10_201 = arith.constant 10 : index
    %c9_202 = arith.constant 9 : index
    %c0_203 = arith.constant 0 : index
    %146 = vector.load %arg7[%c0_200, %c10_201, %c9_202, %c0_203] : memref<1x18x32x128xf32, #tpu.memory_space<vmem>>, vector<1x8x16x128xf32>
    %147 = vector.shape_cast %146 : vector<1x8x16x128xf32> to vector<128x128xf32>
    %148 = arith.truncf %147 : vector<128x128xf32> to vector<128x128xbf16>
    %c2_204 = arith.constant 2 : index
    %c2_205 = arith.constant 2 : index
    %c0_206 = arith.constant 0 : index
    %c0_207 = arith.constant 0 : index
    %149 = vector.load %arg2[%c2_204, %c2_205, %c0_206, %c0_207] : memref<3x3x128x128xbf16, #tpu.memory_space<vmem>>, vector<1x1x128x128xbf16>
    %150 = vector.shape_cast %149 : vector<1x1x128x128xbf16> to vector<128x128xbf16>
    %cst_208 = arith.constant dense<0.000000e+00> : vector<128x128xf32>
    %151 = tpu.matmul %148, %150, %cst_208 {dimension_numbers = #tpu.dot_dimension_numbers<[1], [0], [0], [1], [0, 0, 1, 1], [], []>} : vector<128x128xbf16>, vector<128x128xbf16>, vector<128x128xf32> -> vector<128x128xf32>
    %152 = arith.addf %145, %151 : vector<128x128xf32>
    %c0_209 = arith.constant 0 : index
    %c0_210 = arith.constant 0 : index
    %153 = vector.load %arg3[%c0_209, %c0_210] : memref<1x128xf32, #tpu.memory_space<vmem>>, vector<1x128xf32>
    %154 = vector.broadcast %153 : vector<1x128xf32> to vector<128x128xf32>
    %155 = arith.addf %152, %154 : vector<128x128xf32>
    %cst_211 = arith.constant 0.000000e+00 : f32
    %156 = vector.broadcast %cst_211 : f32 to vector<128x128xf32>
    %157 = arith.maximumf %155, %156 : vector<128x128xf32>
    %158 = vector.shape_cast %157 : vector<128x128xf32> to vector<1x8x16x128xf32>
    %c0_212 = arith.constant 0 : index
    %c9_213 = arith.constant 9 : index
    %c8_214 = arith.constant 8 : index
    %c0_215 = arith.constant 0 : index
    %159 = vector.load %arg8[%c0_212, %c9_213, %c8_214, %c0_215] : memref<1x18x32x128xf32, #tpu.memory_space<vmem>>, vector<1x8x16x128xf32>
    tpu.vector_store %arg8[%c0_212, %c9_213, %c8_214, %c0_215], %158 {strides = array<i32>} : memref<1x18x32x128xf32, #tpu.memory_space<vmem>>, vector<1x8x16x128xf32>,
    %cst_216 = arith.constant 0.000000e+00 : f32
    %160 = vector.broadcast %cst_216 : f32 to vector<128x128xf32>
    %c0_217 = arith.constant 0 : index
    %c0_218 = arith.constant 0 : index
    %c7_219 = arith.constant 7 : index
    %c0_220 = arith.constant 0 : index
    %161 = vector.load %arg8[%c0_217, %c0_218, %c7_219, %c0_220] : memref<1x18x32x128xf32, #tpu.memory_space<vmem>>, vector<1x8x16x128xf32>
    %162 = vector.shape_cast %161 : vector<1x8x16x128xf32> to vector<128x128xf32>
    %163 = arith.truncf %162 : vector<128x128xf32> to vector<128x128xbf16>
    %c0_221 = arith.constant 0 : index
    %c0_222 = arith.constant 0 : index
    %c0_223 = arith.constant 0 : index
    %c0_224 = arith.constant 0 : index
    %164 = vector.load %arg4[%c0_221, %c0_222, %c0_223, %c0_224] : memref<3x3x128x128xbf16, #tpu.memory_space<vmem>>, vector<1x1x128x128xbf16>
    %165 = vector.shape_cast %164 : vector<1x1x128x128xbf16> to vector<128x128xbf16>
    %cst_225 = arith.constant dense<0.000000e+00> : vector<128x128xf32>
    %166 = tpu.matmul %163, %165, %cst_225 {dimension_numbers = #tpu.dot_dimension_numbers<[1], [0], [0], [1], [0, 0, 1, 1], [], []>} : vector<128x128xbf16>, vector<128x128xbf16>, vector<128x128xf32> -> vector<128x128xf32>
    %167 = arith.addf %160, %166 : vector<128x128xf32>
    %c0_226 = arith.constant 0 : index
    %c0_227 = arith.constant 0 : index
    %c8_228 = arith.constant 8 : index
    %c0_229 = arith.constant 0 : index
    %168 = vector.load %arg8[%c0_226, %c0_227, %c8_228, %c0_229] : memref<1x18x32x128xf32, #tpu.memory_space<vmem>>, vector<1x8x16x128xf32>
    %169 = vector.shape_cast %168 : vector<1x8x16x128xf32> to vector<128x128xf32>
    %170 = arith.truncf %169 : vector<128x128xf32> to vector<128x128xbf16>
    %c0_230 = arith.constant 0 : index
    %c1_231 = arith.constant 1 : index
    %c0_232 = arith.constant 0 : index
    %c0_233 = arith.constant 0 : index
    %171 = vector.load %arg4[%c0_230, %c1_231, %c0_232, %c0_233] : memref<3x3x128x128xbf16, #tpu.memory_space<vmem>>, vector<1x1x128x128xbf16>
    %172 = vector.shape_cast %171 : vector<1x1x128x128xbf16> to vector<128x128xbf16>
    %cst_234 = arith.constant dense<0.000000e+00> : vector<128x128xf32>
    %173 = tpu.matmul %170, %172, %cst_234 {dimension_numbers = #tpu.dot_dimension_numbers<[1], [0], [0], [1], [0, 0, 1, 1], [], []>} : vector<128x128xbf16>, vector<128x128xbf16>, vector<128x128xf32> -> vector<128x128xf32>
    %174 = arith.addf %167, %173 : vector<128x128xf32>
    %c0_235 = arith.constant 0 : index
    %c0_236 = arith.constant 0 : index
    %c9_237 = arith.constant 9 : index
    %c0_238 = arith.constant 0 : index
    %175 = vector.load %arg8[%c0_235, %c0_236, %c9_237, %c0_238] : memref<1x18x32x128xf32, #tpu.memory_space<vmem>>, vector<1x8x16x128xf32>
    %176 = vector.shape_cast %175 : vector<1x8x16x128xf32> to vector<128x128xf32>
    %177 = arith.truncf %176 : vector<128x128xf32> to vector<128x128xbf16>
    %c0_239 = arith.constant 0 : index
    %c2_240 = arith.constant 2 : index
    %c0_241 = arith.constant 0 : index
    %c0_242 = arith.constant 0 : index
    %178 = vector.load %arg4[%c0_239, %c2_240, %c0_241, %c0_242] : memref<3x3x128x128xbf16, #tpu.memory_space<vmem>>, vector<1x1x128x128xbf16>
    %179 = vector.shape_cast %178 : vector<1x1x128x128xbf16> to vector<128x128xbf16>
    %cst_243 = arith.constant dense<0.000000e+00> : vector<128x128xf32>
    %180 = tpu.matmul %177, %179, %cst_243 {dimension_numbers = #tpu.dot_dimension_numbers<[1], [0], [0], [1], [0, 0, 1, 1], [], []>} : vector<128x128xbf16>, vector<128x128xbf16>, vector<128x128xf32> -> vector<128x128xf32>
    %181 = arith.addf %174, %180 : vector<128x128xf32>
    %c0_244 = arith.constant 0 : index
    %c1_245 = arith.constant 1 : index
    %c7_246 = arith.constant 7 : index
    %c0_247 = arith.constant 0 : index
    %182 = vector.load %arg8[%c0_244, %c1_245, %c7_246, %c0_247] : memref<1x18x32x128xf32, #tpu.memory_space<vmem>>, vector<1x8x16x128xf32>
    %183 = vector.shape_cast %182 : vector<1x8x16x128xf32> to vector<128x128xf32>
    %184 = arith.truncf %183 : vector<128x128xf32> to vector<128x128xbf16>
    %c1_248 = arith.constant 1 : index
    %c0_249 = arith.constant 0 : index
    %c0_250 = arith.constant 0 : index
    %c0_251 = arith.constant 0 : index
    %185 = vector.load %arg4[%c1_248, %c0_249, %c0_250, %c0_251] : memref<3x3x128x128xbf16, #tpu.memory_space<vmem>>, vector<1x1x128x128xbf16>
    %186 = vector.shape_cast %185 : vector<1x1x128x128xbf16> to vector<128x128xbf16>
    %cst_252 = arith.constant dense<0.000000e+00> : vector<128x128xf32>
    %187 = tpu.matmul %184, %186, %cst_252 {dimension_numbers = #tpu.dot_dimension_numbers<[1], [0], [0], [1], [0, 0, 1, 1], [], []>} : vector<128x128xbf16>, vector<128x128xbf16>, vector<128x128xf32> -> vector<128x128xf32>
    %188 = arith.addf %181, %187 : vector<128x128xf32>
    %c0_253 = arith.constant 0 : index
    %c1_254 = arith.constant 1 : index
    %c8_255 = arith.constant 8 : index
    %c0_256 = arith.constant 0 : index
    %189 = vector.load %arg8[%c0_253, %c1_254, %c8_255, %c0_256] : memref<1x18x32x128xf32, #tpu.memory_space<vmem>>, vector<1x8x16x128xf32>
    %190 = vector.shape_cast %189 : vector<1x8x16x128xf32> to vector<128x128xf32>
    %191 = arith.truncf %190 : vector<128x128xf32> to vector<128x128xbf16>
    %c1_257 = arith.constant 1 : index
    %c1_258 = arith.constant 1 : index
    %c0_259 = arith.constant 0 : index
    %c0_260 = arith.constant 0 : index
    %192 = vector.load %arg4[%c1_257, %c1_258, %c0_259, %c0_260] : memref<3x3x128x128xbf16, #tpu.memory_space<vmem>>, vector<1x1x128x128xbf16>
    %193 = vector.shape_cast %192 : vector<1x1x128x128xbf16> to vector<128x128xbf16>
    %cst_261 = arith.constant dense<0.000000e+00> : vector<128x128xf32>
    %194 = tpu.matmul %191, %193, %cst_261 {dimension_numbers = #tpu.dot_dimension_numbers<[1], [0], [0], [1], [0, 0, 1, 1], [], []>} : vector<128x128xbf16>, vector<128x128xbf16>, vector<128x128xf32> -> vector<128x128xf32>
    %195 = arith.addf %188, %194 : vector<128x128xf32>
    %c0_262 = arith.constant 0 : index
    %c1_263 = arith.constant 1 : index
    %c9_264 = arith.constant 9 : index
    %c0_265 = arith.constant 0 : index
    %196 = vector.load %arg8[%c0_262, %c1_263, %c9_264, %c0_265] : memref<1x18x32x128xf32, #tpu.memory_space<vmem>>, vector<1x8x16x128xf32>
    %197 = vector.shape_cast %196 : vector<1x8x16x128xf32> to vector<128x128xf32>
    %198 = arith.truncf %197 : vector<128x128xf32> to vector<128x128xbf16>
    %c1_266 = arith.constant 1 : index
    %c2_267 = arith.constant 2 : index
    %c0_268 = arith.constant 0 : index
    %c0_269 = arith.constant 0 : index
    %199 = vector.load %arg4[%c1_266, %c2_267, %c0_268, %c0_269] : memref<3x3x128x128xbf16, #tpu.memory_space<vmem>>, vector<1x1x128x128xbf16>
    %200 = vector.shape_cast %199 : vector<1x1x128x128xbf16> to vector<128x128xbf16>
    %cst_270 = arith.constant dense<0.000000e+00> : vector<128x128xf32>
    %201 = tpu.matmul %198, %200, %cst_270 {dimension_numbers = #tpu.dot_dimension_numbers<[1], [0], [0], [1], [0, 0, 1, 1], [], []>} : vector<128x128xbf16>, vector<128x128xbf16>, vector<128x128xf32> -> vector<128x128xf32>
    %202 = arith.addf %195, %201 : vector<128x128xf32>
    %c0_271 = arith.constant 0 : index
    %c2_272 = arith.constant 2 : index
    %c7_273 = arith.constant 7 : index
    %c0_274 = arith.constant 0 : index
    %203 = vector.load %arg8[%c0_271, %c2_272, %c7_273, %c0_274] : memref<1x18x32x128xf32, #tpu.memory_space<vmem>>, vector<1x8x16x128xf32>
    %204 = vector.shape_cast %203 : vector<1x8x16x128xf32> to vector<128x128xf32>
    %205 = arith.truncf %204 : vector<128x128xf32> to vector<128x128xbf16>
    %c2_275 = arith.constant 2 : index
    %c0_276 = arith.constant 0 : index
    %c0_277 = arith.constant 0 : index
    %c0_278 = arith.constant 0 : index
    %206 = vector.load %arg4[%c2_275, %c0_276, %c0_277, %c0_278] : memref<3x3x128x128xbf16, #tpu.memory_space<vmem>>, vector<1x1x128x128xbf16>
    %207 = vector.shape_cast %206 : vector<1x1x128x128xbf16> to vector<128x128xbf16>
    %cst_279 = arith.constant dense<0.000000e+00> : vector<128x128xf32>
    %208 = tpu.matmul %205, %207, %cst_279 {dimension_numbers = #tpu.dot_dimension_numbers<[1], [0], [0], [1], [0, 0, 1, 1], [], []>} : vector<128x128xbf16>, vector<128x128xbf16>, vector<128x128xf32> -> vector<128x128xf32>
    %209 = arith.addf %202, %208 : vector<128x128xf32>
    %c0_280 = arith.constant 0 : index
    %c2_281 = arith.constant 2 : index
    %c8_282 = arith.constant 8 : index
    %c0_283 = arith.constant 0 : index
    %210 = vector.load %arg8[%c0_280, %c2_281, %c8_282, %c0_283] : memref<1x18x32x128xf32, #tpu.memory_space<vmem>>, vector<1x8x16x128xf32>
    %211 = vector.shape_cast %210 : vector<1x8x16x128xf32> to vector<128x128xf32>
    %212 = arith.truncf %211 : vector<128x128xf32> to vector<128x128xbf16>
    %c2_284 = arith.constant 2 : index
    %c1_285 = arith.constant 1 : index
    %c0_286 = arith.constant 0 : index
    %c0_287 = arith.constant 0 : index
    %213 = vector.load %arg4[%c2_284, %c1_285, %c0_286, %c0_287] : memref<3x3x128x128xbf16, #tpu.memory_space<vmem>>, vector<1x1x128x128xbf16>
    %214 = vector.shape_cast %213 : vector<1x1x128x128xbf16> to vector<128x128xbf16>
    %cst_288 = arith.constant dense<0.000000e+00> : vector<128x128xf32>
    %215 = tpu.matmul %212, %214, %cst_288 {dimension_numbers = #tpu.dot_dimension_numbers<[1], [0], [0], [1], [0, 0, 1, 1], [], []>} : vector<128x128xbf16>, vector<128x128xbf16>, vector<128x128xf32> -> vector<128x128xf32>
    %216 = arith.addf %209, %215 : vector<128x128xf32>
    %c0_289 = arith.constant 0 : index
    %c2_290 = arith.constant 2 : index
    %c9_291 = arith.constant 9 : index
    %c0_292 = arith.constant 0 : index
    %217 = vector.load %arg8[%c0_289, %c2_290, %c9_291, %c0_292] : memref<1x18x32x128xf32, #tpu.memory_space<vmem>>, vector<1x8x16x128xf32>
    %218 = vector.shape_cast %217 : vector<1x8x16x128xf32> to vector<128x128xf32>
    %219 = arith.truncf %218 : vector<128x128xf32> to vector<128x128xbf16>
    %c2_293 = arith.constant 2 : index
    %c2_294 = arith.constant 2 : index
    %c0_295 = arith.constant 0 : index
    %c0_296 = arith.constant 0 : index
    %220 = vector.load %arg4[%c2_293, %c2_294, %c0_295, %c0_296] : memref<3x3x128x128xbf16, #tpu.memory_space<vmem>>, vector<1x1x128x128xbf16>
    %221 = vector.shape_cast %220 : vector<1x1x128x128xbf16> to vector<128x128xbf16>
    %cst_297 = arith.constant dense<0.000000e+00> : vector<128x128xf32>
    %222 = tpu.matmul %219, %221, %cst_297 {dimension_numbers = #tpu.dot_dimension_numbers<[1], [0], [0], [1], [0, 0, 1, 1], [], []>} : vector<128x128xbf16>, vector<128x128xbf16>, vector<128x128xf32> -> vector<128x128xf32>
    %223 = arith.addf %216, %222 : vector<128x128xf32>
    %c0_298 = arith.constant 0 : index
    %c0_299 = arith.constant 0 : index
    %224 = vector.load %arg5[%c0_298, %c0_299] : memref<1x128xf32, #tpu.memory_space<vmem>>, vector<1x128xf32>
    %225 = vector.broadcast %224 : vector<1x128xf32> to vector<128x128xf32>
    %226 = arith.addf %223, %225 : vector<128x128xf32>
    %c0_300 = arith.constant 0 : index
    %c0_301 = arith.constant 0 : index
    %c0_302 = arith.constant 0 : index
    %c0_303 = arith.constant 0 : index
    %227 = vector.load %arg1[%c0_300, %c0_301, %c0_302, %c0_303] : memref<1x16x16x128xf32, #tpu.memory_space<vmem>>, vector<1x8x16x128xf32>
    %228 = vector.shape_cast %227 : vector<1x8x16x128xf32> to vector<128x128xf32>
    %229 = arith.addf %226, %228 : vector<128x128xf32>
    %230 = vector.shape_cast %229 : vector<128x128xf32> to vector<1x8x16x128xf32>
    %c0_304 = arith.constant 0 : index
    %c0_305 = arith.constant 0 : index
    %c0_306 = arith.constant 0 : index
    %c0_307 = arith.constant 0 : index
    %231 = vector.load %arg6[%c0_304, %c0_305, %c0_306, %c0_307] : memref<1x16x16x128xf32, #tpu.memory_space<vmem>>, vector<1x8x16x128xf32>
    tpu.vector_store %arg6[%c0_304, %c0_305, %c0_306, %c0_307], %230 {strides = array<i32>} : memref<1x16x16x128xf32, #tpu.memory_space<vmem>>, vector<1x8x16x128xf32>,
    %cst_308 = arith.constant 0.000000e+00 : f32
    %232 = vector.broadcast %cst_308 : f32 to vector<128x128xf32>
    %c0_309 = arith.constant 0 : index
    %c8_310 = arith.constant 8 : index
    %c7_311 = arith.constant 7 : index
    %c0_312 = arith.constant 0 : index
    %233 = vector.load %arg8[%c0_309, %c8_310, %c7_311, %c0_312] : memref<1x18x32x128xf32, #tpu.memory_space<vmem>>, vector<1x8x16x128xf32>
    %234 = vector.shape_cast %233 : vector<1x8x16x128xf32> to vector<128x128xf32>
    %235 = arith.truncf %234 : vector<128x128xf32> to vector<128x128xbf16>
    %c0_313 = arith.constant 0 : index
    %c0_314 = arith.constant 0 : index
    %c0_315 = arith.constant 0 : index
    %c0_316 = arith.constant 0 : index
    %236 = vector.load %arg4[%c0_313, %c0_314, %c0_315, %c0_316] : memref<3x3x128x128xbf16, #tpu.memory_space<vmem>>, vector<1x1x128x128xbf16>
    %237 = vector.shape_cast %236 : vector<1x1x128x128xbf16> to vector<128x128xbf16>
    %cst_317 = arith.constant dense<0.000000e+00> : vector<128x128xf32>
    %238 = tpu.matmul %235, %237, %cst_317 {dimension_numbers = #tpu.dot_dimension_numbers<[1], [0], [0], [1], [0, 0, 1, 1], [], []>} : vector<128x128xbf16>, vector<128x128xbf16>, vector<128x128xf32> -> vector<128x128xf32>
    %239 = arith.addf %232, %238 : vector<128x128xf32>
    %c0_318 = arith.constant 0 : index
    %c8_319 = arith.constant 8 : index
    %c8_320 = arith.constant 8 : index
    %c0_321 = arith.constant 0 : index
    %240 = vector.load %arg8[%c0_318, %c8_319, %c8_320, %c0_321] : memref<1x18x32x128xf32, #tpu.memory_space<vmem>>, vector<1x8x16x128xf32>
    %241 = vector.shape_cast %240 : vector<1x8x16x128xf32> to vector<128x128xf32>
    %242 = arith.truncf %241 : vector<128x128xf32> to vector<128x128xbf16>
    %c0_322 = arith.constant 0 : index
    %c1_323 = arith.constant 1 : index
    %c0_324 = arith.constant 0 : index
    %c0_325 = arith.constant 0 : index
    %243 = vector.load %arg4[%c0_322, %c1_323, %c0_324, %c0_325] : memref<3x3x128x128xbf16, #tpu.memory_space<vmem>>, vector<1x1x128x128xbf16>
    %244 = vector.shape_cast %243 : vector<1x1x128x128xbf16> to vector<128x128xbf16>
    %cst_326 = arith.constant dense<0.000000e+00> : vector<128x128xf32>
    %245 = tpu.matmul %242, %244, %cst_326 {dimension_numbers = #tpu.dot_dimension_numbers<[1], [0], [0], [1], [0, 0, 1, 1], [], []>} : vector<128x128xbf16>, vector<128x128xbf16>, vector<128x128xf32> -> vector<128x128xf32>
    %246 = arith.addf %239, %245 : vector<128x128xf32>
    %c0_327 = arith.constant 0 : index
    %c8_328 = arith.constant 8 : index
    %c9_329 = arith.constant 9 : index
    %c0_330 = arith.constant 0 : index
    %247 = vector.load %arg8[%c0_327, %c8_328, %c9_329, %c0_330] : memref<1x18x32x128xf32, #tpu.memory_space<vmem>>, vector<1x8x16x128xf32>
    %248 = vector.shape_cast %247 : vector<1x8x16x128xf32> to vector<128x128xf32>
    %249 = arith.truncf %248 : vector<128x128xf32> to vector<128x128xbf16>
    %c0_331 = arith.constant 0 : index
    %c2_332 = arith.constant 2 : index
    %c0_333 = arith.constant 0 : index
    %c0_334 = arith.constant 0 : index
    %250 = vector.load %arg4[%c0_331, %c2_332, %c0_333, %c0_334] : memref<3x3x128x128xbf16, #tpu.memory_space<vmem>>, vector<1x1x128x128xbf16>
    %251 = vector.shape_cast %250 : vector<1x1x128x128xbf16> to vector<128x128xbf16>
    %cst_335 = arith.constant dense<0.000000e+00> : vector<128x128xf32>
    %252 = tpu.matmul %249, %251, %cst_335 {dimension_numbers = #tpu.dot_dimension_numbers<[1], [0], [0], [1], [0, 0, 1, 1], [], []>} : vector<128x128xbf16>, vector<128x128xbf16>, vector<128x128xf32> -> vector<128x128xf32>
    %253 = arith.addf %246, %252 : vector<128x128xf32>
    %c0_336 = arith.constant 0 : index
    %c9_337 = arith.constant 9 : index
    %c7_338 = arith.constant 7 : index
    %c0_339 = arith.constant 0 : index
    %254 = vector.load %arg8[%c0_336, %c9_337, %c7_338, %c0_339] : memref<1x18x32x128xf32, #tpu.memory_space<vmem>>, vector<1x8x16x128xf32>
    %255 = vector.shape_cast %254 : vector<1x8x16x128xf32> to vector<128x128xf32>
    %256 = arith.truncf %255 : vector<128x128xf32> to vector<128x128xbf16>
    %c1_340 = arith.constant 1 : index
    %c0_341 = arith.constant 0 : index
    %c0_342 = arith.constant 0 : index
    %c0_343 = arith.constant 0 : index
    %257 = vector.load %arg4[%c1_340, %c0_341, %c0_342, %c0_343] : memref<3x3x128x128xbf16, #tpu.memory_space<vmem>>, vector<1x1x128x128xbf16>
    %258 = vector.shape_cast %257 : vector<1x1x128x128xbf16> to vector<128x128xbf16>
    %cst_344 = arith.constant dense<0.000000e+00> : vector<128x128xf32>
    %259 = tpu.matmul %256, %258, %cst_344 {dimension_numbers = #tpu.dot_dimension_numbers<[1], [0], [0], [1], [0, 0, 1, 1], [], []>} : vector<128x128xbf16>, vector<128x128xbf16>, vector<128x128xf32> -> vector<128x128xf32>
    %260 = arith.addf %253, %259 : vector<128x128xf32>
    %c0_345 = arith.constant 0 : index
    %c9_346 = arith.constant 9 : index
    %c8_347 = arith.constant 8 : index
    %c0_348 = arith.constant 0 : index
    %261 = vector.load %arg8[%c0_345, %c9_346, %c8_347, %c0_348] : memref<1x18x32x128xf32, #tpu.memory_space<vmem>>, vector<1x8x16x128xf32>
    %262 = vector.shape_cast %261 : vector<1x8x16x128xf32> to vector<128x128xf32>
    %263 = arith.truncf %262 : vector<128x128xf32> to vector<128x128xbf16>
    %c1_349 = arith.constant 1 : index
    %c1_350 = arith.constant 1 : index
    %c0_351 = arith.constant 0 : index
    %c0_352 = arith.constant 0 : index
    %264 = vector.load %arg4[%c1_349, %c1_350, %c0_351, %c0_352] : memref<3x3x128x128xbf16, #tpu.memory_space<vmem>>, vector<1x1x128x128xbf16>
    %265 = vector.shape_cast %264 : vector<1x1x128x128xbf16> to vector<128x128xbf16>
    %cst_353 = arith.constant dense<0.000000e+00> : vector<128x128xf32>
    %266 = tpu.matmul %263, %265, %cst_353 {dimension_numbers = #tpu.dot_dimension_numbers<[1], [0], [0], [1], [0, 0, 1, 1], [], []>} : vector<128x128xbf16>, vector<128x128xbf16>, vector<128x128xf32> -> vector<128x128xf32>
    %267 = arith.addf %260, %266 : vector<128x128xf32>
    %c0_354 = arith.constant 0 : index
    %c9_355 = arith.constant 9 : index
    %c9_356 = arith.constant 9 : index
    %c0_357 = arith.constant 0 : index
    %268 = vector.load %arg8[%c0_354, %c9_355, %c9_356, %c0_357] : memref<1x18x32x128xf32, #tpu.memory_space<vmem>>, vector<1x8x16x128xf32>
    %269 = vector.shape_cast %268 : vector<1x8x16x128xf32> to vector<128x128xf32>
    %270 = arith.truncf %269 : vector<128x128xf32> to vector<128x128xbf16>
    %c1_358 = arith.constant 1 : index
    %c2_359 = arith.constant 2 : index
    %c0_360 = arith.constant 0 : index
    %c0_361 = arith.constant 0 : index
    %271 = vector.load %arg4[%c1_358, %c2_359, %c0_360, %c0_361] : memref<3x3x128x128xbf16, #tpu.memory_space<vmem>>, vector<1x1x128x128xbf16>
    %272 = vector.shape_cast %271 : vector<1x1x128x128xbf16> to vector<128x128xbf16>
    %cst_362 = arith.constant dense<0.000000e+00> : vector<128x128xf32>
    %273 = tpu.matmul %270, %272, %cst_362 {dimension_numbers = #tpu.dot_dimension_numbers<[1], [0], [0], [1], [0, 0, 1, 1], [], []>} : vector<128x128xbf16>, vector<128x128xbf16>, vector<128x128xf32> -> vector<128x128xf32>
    %274 = arith.addf %267, %273 : vector<128x128xf32>
    %c0_363 = arith.constant 0 : index
    %c10_364 = arith.constant 10 : index
    %c7_365 = arith.constant 7 : index
    %c0_366 = arith.constant 0 : index
    %275 = vector.load %arg8[%c0_363, %c10_364, %c7_365, %c0_366] : memref<1x18x32x128xf32, #tpu.memory_space<vmem>>, vector<1x8x16x128xf32>
    %276 = vector.shape_cast %275 : vector<1x8x16x128xf32> to vector<128x128xf32>
    %277 = arith.truncf %276 : vector<128x128xf32> to vector<128x128xbf16>
    %c2_367 = arith.constant 2 : index
    %c0_368 = arith.constant 0 : index
    %c0_369 = arith.constant 0 : index
    %c0_370 = arith.constant 0 : index
    %278 = vector.load %arg4[%c2_367, %c0_368, %c0_369, %c0_370] : memref<3x3x128x128xbf16, #tpu.memory_space<vmem>>, vector<1x1x128x128xbf16>
    %279 = vector.shape_cast %278 : vector<1x1x128x128xbf16> to vector<128x128xbf16>
    %cst_371 = arith.constant dense<0.000000e+00> : vector<128x128xf32>
    %280 = tpu.matmul %277, %279, %cst_371 {dimension_numbers = #tpu.dot_dimension_numbers<[1], [0], [0], [1], [0, 0, 1, 1], [], []>} : vector<128x128xbf16>, vector<128x128xbf16>, vector<128x128xf32> -> vector<128x128xf32>
    %281 = arith.addf %274, %280 : vector<128x128xf32>
    %c0_372 = arith.constant 0 : index
    %c10_373 = arith.constant 10 : index
    %c8_374 = arith.constant 8 : index
    %c0_375 = arith.constant 0 : index
    %282 = vector.load %arg8[%c0_372, %c10_373, %c8_374, %c0_375] : memref<1x18x32x128xf32, #tpu.memory_space<vmem>>, vector<1x8x16x128xf32>
    %283 = vector.shape_cast %282 : vector<1x8x16x128xf32> to vector<128x128xf32>
    %284 = arith.truncf %283 : vector<128x128xf32> to vector<128x128xbf16>
    %c2_376 = arith.constant 2 : index
    %c1_377 = arith.constant 1 : index
    %c0_378 = arith.constant 0 : index
    %c0_379 = arith.constant 0 : index
    %285 = vector.load %arg4[%c2_376, %c1_377, %c0_378, %c0_379] : memref<3x3x128x128xbf16, #tpu.memory_space<vmem>>, vector<1x1x128x128xbf16>
    %286 = vector.shape_cast %285 : vector<1x1x128x128xbf16> to vector<128x128xbf16>
    %cst_380 = arith.constant dense<0.000000e+00> : vector<128x128xf32>
    %287 = tpu.matmul %284, %286, %cst_380 {dimension_numbers = #tpu.dot_dimension_numbers<[1], [0], [0], [1], [0, 0, 1, 1], [], []>} : vector<128x128xbf16>, vector<128x128xbf16>, vector<128x128xf32> -> vector<128x128xf32>
    %288 = arith.addf %281, %287 : vector<128x128xf32>
    %c0_381 = arith.constant 0 : index
    %c10_382 = arith.constant 10 : index
    %c9_383 = arith.constant 9 : index
    %c0_384 = arith.constant 0 : index
    %289 = vector.load %arg8[%c0_381, %c10_382, %c9_383, %c0_384] : memref<1x18x32x128xf32, #tpu.memory_space<vmem>>, vector<1x8x16x128xf32>
    %290 = vector.shape_cast %289 : vector<1x8x16x128xf32> to vector<128x128xf32>
    %291 = arith.truncf %290 : vector<128x128xf32> to vector<128x128xbf16>
    %c2_385 = arith.constant 2 : index
    %c2_386 = arith.constant 2 : index
    %c0_387 = arith.constant 0 : index
    %c0_388 = arith.constant 0 : index
    %292 = vector.load %arg4[%c2_385, %c2_386, %c0_387, %c0_388] : memref<3x3x128x128xbf16, #tpu.memory_space<vmem>>, vector<1x1x128x128xbf16>
    %293 = vector.shape_cast %292 : vector<1x1x128x128xbf16> to vector<128x128xbf16>
    %cst_389 = arith.constant dense<0.000000e+00> : vector<128x128xf32>
    %294 = tpu.matmul %291, %293, %cst_389 {dimension_numbers = #tpu.dot_dimension_numbers<[1], [0], [0], [1], [0, 0, 1, 1], [], []>} : vector<128x128xbf16>, vector<128x128xbf16>, vector<128x128xf32> -> vector<128x128xf32>
    %295 = arith.addf %288, %294 : vector<128x128xf32>
    %c0_390 = arith.constant 0 : index
    %c0_391 = arith.constant 0 : index
    %296 = vector.load %arg5[%c0_390, %c0_391] : memref<1x128xf32, #tpu.memory_space<vmem>>, vector<1x128xf32>
    %297 = vector.broadcast %296 : vector<1x128xf32> to vector<128x128xf32>
    %298 = arith.addf %295, %297 : vector<128x128xf32>
    %c0_392 = arith.constant 0 : index
    %c8_393 = arith.constant 8 : index
    %c0_394 = arith.constant 0 : index
    %c0_395 = arith.constant 0 : index
    %299 = vector.load %arg1[%c0_392, %c8_393, %c0_394, %c0_395] : memref<1x16x16x128xf32, #tpu.memory_space<vmem>>, vector<1x8x16x128xf32>
    %300 = vector.shape_cast %299 : vector<1x8x16x128xf32> to vector<128x128xf32>
    %301 = arith.addf %298, %300 : vector<128x128xf32>
    %302 = vector.shape_cast %301 : vector<128x128xf32> to vector<1x8x16x128xf32>
    %c0_396 = arith.constant 0 : index
    %c8_397 = arith.constant 8 : index
    %c0_398 = arith.constant 0 : index
    %c0_399 = arith.constant 0 : index
    %303 = vector.load %arg6[%c0_396, %c8_397, %c0_398, %c0_399] : memref<1x16x16x128xf32, #tpu.memory_space<vmem>>, vector<1x8x16x128xf32>
    tpu.vector_store %arg6[%c0_396, %c8_397, %c0_398, %c0_399], %302 {strides = array<i32>} : memref<1x16x16x128xf32, #tpu.memory_space<vmem>>, vector<1x8x16x128xf32>,
    return
  }
  func.func @transform_0(%arg0: i32) -> (i32, i32, i32, i32) {
    %c0_i32 = arith.constant 0 : i32
    %c0_i32_0 = arith.constant 0 : i32
    %c0_i32_1 = arith.constant 0 : i32
    %c0_i32_2 = arith.constant 0 : i32
    return %arg0, %c0_i32, %c0_i32_0, %c0_i32_1 : i32, i32, i32, i32
  }
  func.func @transform_1(%arg0: i32) -> (i32, i32, i32, i32) {
    %c0_i32 = arith.constant 0 : i32
    %c0_i32_0 = arith.constant 0 : i32
    %c0_i32_1 = arith.constant 0 : i32
    %c0_i32_2 = arith.constant 0 : i32
    %c0_i32_3 = arith.constant 0 : i32
    return %c0_i32, %c0_i32_0, %c0_i32_1, %c0_i32_2 : i32, i32, i32, i32
  }
  func.func @transform_2(%arg0: i32) -> (i32, i32) {
    %c0_i32 = arith.constant 0 : i32
    %c0_i32_0 = arith.constant 0 : i32
    %c0_i32_1 = arith.constant 0 : i32
    return %c0_i32, %c0_i32_0 : i32, i32
  }
  func.func @transform_3(%arg0: i32) -> (i32, i32, i32, i32) {
    %c0_i32 = arith.constant 0 : i32
    %c0_i32_0 = arith.constant 0 : i32
    %c0_i32_1 = arith.constant 0 : i32
    %c0_i32_2 = arith.constant 0 : i32
    %c0_i32_3 = arith.constant 0 : i32
    return %c0_i32, %c0_i32_0, %c0_i32_1, %c0_i32_2 : i32, i32, i32, i32
  }
  func.func @transform_4(%arg0: i32) -> (i32, i32) {
    %c0_i32 = arith.constant 0 : i32
    %c0_i32_0 = arith.constant 0 : i32
    %c0_i32_1 = arith.constant 0 : i32
    return %c0_i32, %c0_i32_0 : i32, i32
  }
  func.func @transform_5(%arg0: i32) -> (i32, i32, i32, i32) {
    %c0_i32 = arith.constant 0 : i32
    %c0_i32_0 = arith.constant 0 : i32
    %c0_i32_1 = arith.constant 0 : i32
    %c0_i32_2 = arith.constant 0 : i32
    return %arg0, %c0_i32, %c0_i32_0, %c0_i32_1 : i32, i32, i32, i32
  }
}

</mosaic_0001>

<bundles_post_ra>
// kernel: resblock_forward.1
= control target key start
LH: loop header
LB: loop body
LE: loop exit
PB: predicated region body
PF: predicated region fallthrough
CT: control target
= control target key end

     0   :  { %s11247_s18 = smov 0   ;;  %s12900_s0 = inlined_call_operand.vmem [shape: f32[2,16,16,128], index: 0, kind: input, shape index: {}]   ;;  %s12901_s1 = inlined_call_operand.vmem [shape: bf16[3,3,128,128], index: 1, kind: input, shape index: {}]   ;;  %s12902_s2 = inlined_call_operand.vmem [shape: f32[1,128], index: 2, kind: input, shape index: {}]   ;;  %s12903_s3 = inlined_call_operand.vmem [shape: bf16[3,3,128,128], index: 3, kind: input, shape index: {}]   ;;  %s12904_s4 = inlined_call_operand.vmem [shape: f32[1,128], index: 4, kind: input, shape index: {}]   ;;  %s12905_s5 = inlined_call_operand.vmem [shape: f32[2,16,16,128], index: 5, kind: output, shape index: {}]  }
   0x1 LB: > { %s7819_s19 = sadd.s32 4294967295, %s11214_s18   ;;  %p7823_p0 = scmp.ge.s32.totalorder %s11214_s18, 1  ;;  %s11214_s18 = sphi %s11247_s18, %s15_s18  }
   0x2   : > { %p187_p1 = scmp.lt.s32.totalorder %s11214_s18, 3 }
   0x4   : > { %p188_p2 = pnand %p7823_p0, %p187_p1 }
   0x5   : > { %v11258_v0 = vld [vmem:[%s12901_s1 + $0x40] sm:$0xff] (!%p188_p2)   ;;  %v11216_v2 = vmov (!%p188_p2), 0.0   ;;  %v10919_v3 = vld [vmem:[%s12901_s1 + $0x48] sm:$0xff] (!%p188_p2)   ;;  %p11349_p3 = scmp.lt.s32.totalorder (!%p188_p2), %s7819_s19, 1  ;;  %v10921_v5 = vld [vmem:[%s12901_s1 + $0x50] sm:$0xff] (!%p188_p2)  }
   0x6   : > { %191 = sbr.rel (%p188_p2) target bundleno = 1046 (0x416), region = 40  ;;  %v11263_v1 = vld [vmem:[%s12901_s1 + $0x40] sm:$0xff] (!%p188_p2)   ;;  %226 = vst [vmem:[#allocation2 + $0x7] sm:$0xff] (!%p188_p2), %v11216_v2  ;;  %227 = vst [vmem:[#allocation2 + $0xf] sm:$0xff] (!%p188_p2), %v11216_v2  ;;  %9244 = vmatprep.subr.bf16.mxu0 (!%p188_p2), %v11258_v0  ;;  %v10920_v4 = vld [vmem:[%s12901_s1 + $0x48] sm:$0xff] (!%p188_p2)  }
   0x7   : > { %228 = vst [vmem:[#allocation2 + $0x17] sm:$0x3] (!%p188_p2), %v11216_v2  ;;  %230 = vst [vmem:[#allocation2 + $0x227] sm:$0xff] (!%p188_p2), %v11216_v2  ;;  %9532 = vmatprep.subr.bf16.mxu1 (!%p188_p2), %v11263_v1  ;;  %9245 = vmatpush3.bf16.msra.mxu0 (!%p188_p2), %v11258_v0  ;;  %v10922_v6 = vld [vmem:[%s12901_s1 + $0x50] sm:$0xff] (!%p188_p2)   ;;  %v10923_v7 = vld [vmem:[%s12901_s1 + $0x58] sm:$0xff] (!%p188_p2)  }
   0x8   : > { %231 = vst [vmem:[#allocation2 + $0x22f] sm:$0xff] (!%p188_p2), %v11216_v2  ;;  %232 = vst [vmem:[#allocation2 + $0x237] sm:$0x3] (!%p188_p2), %v11216_v2  ;;  %9533 = vmatpush3.bf16.msra.mxu1 (!%p188_p2), %v11263_v1  ;;  %9246 = vmatprep.subr.bf16.mxu0 (!%p188_p2), %v10919_v3  ;;  %v10924_v8 = vld [vmem:[%s12901_s1 + $0x58] sm:$0xff] (!%p188_p2)   ;;  %v10925_v9 = vld [vmem:[%s12901_s1 + $0x60] sm:$0xff] (!%p188_p2)  }
   0x9   : > { %234 = vst [vmem:[#allocation2 + $0x27] sm:$0x1] (!%p188_p2), %v11216_v2  ;;  %235 = vst [vmem:[#allocation2 + $0x47] sm:$0x1] (!%p188_p2), %v11216_v2  ;;  %9534 = vmatprep.subr.bf16.mxu1 (!%p188_p2), %v10920_v4  ;;  %v10926_v10 = vld [vmem:[%s12901_s1 + $0x60] sm:$0xff] (!%p188_p2)   ;;  %v10927_v11 = vld [vmem:[%s12901_s1 + $0x68] sm:$0xff] (!%p188_p2)  }
   0xa   : > { %236 = vst [vmem:[#allocation2 + $0x67] sm:$0x1] (!%p188_p2), %v11216_v2  ;;  %237 = vst [vmem:[#allocation2 + $0x87] sm:$0x1] (!%p188_p2), %v11216_v2  ;;  %v10928_v12 = vld [vmem:[%s12901_s1 + $0x68] sm:$0xff] (!%p188_p2)   ;;  %v10929_v23 = vld [vmem:[%s12901_s1 + $0x70] sm:$0xff] (!%p188_p2)  }
   0xb   : > { %238 = vst [vmem:[#allocation2 + $0xa7] sm:$0x1] (!%p188_p2), %v11216_v2  ;;  %239 = vst [vmem:[#allocation2 + $0xc7] sm:$0x1] (!%p188_p2), %v11216_v2  ;;  %9247 = vmatpush3.bf16.msra.mxu0 (!%p188_p2), %v10919_v3  ;;  %v10930_v24 = vld [vmem:[%s12901_s1 + $0x70] sm:$0xff] (!%p188_p2)   ;;  %v10931_v25 = vld [vmem:[%s12901_s1 + $0x78] sm:$0xff] (!%p188_p2)  }
   0xc   : > { %240 = vst [vmem:[#allocation2 + $0xe7] sm:$0x1] (!%p188_p2), %v11216_v2  ;;  %241 = vst [vmem:[#allocation2 + $0x107] sm:$0x1] (!%p188_p2), %v11216_v2  ;;  %9535 = vmatpush3.bf16.msra.mxu1 (!%p188_p2), %v10920_v4  ;;  %9248 = vmatprep.subr.bf16.mxu0 (!%p188_p2), %v10921_v5  ;;  %v10932_v32 = vld [vmem:[%s12901_s1 + $0x78] sm:$0xff] (!%p188_p2)   ;;  %v10933_v35 = vld [vmem:[%s12901_s1] sm:$0xff] (!%p188_p2)  }
   0xd   : > { %242 = vst [vmem:[#allocation2 + $0x127] sm:$0x1] %v11216_v2  ;;  %243 = vst [vmem:[#allocation2 + $0x147] sm:$0x1] %v11216_v2  ;;  %s12908_s19 = smov (!%p11349_p3, %s7819_s19), 1  ;;  %9536 = vmatprep.subr.bf16.mxu1 %v10922_v6  ;;  %v417_v13 = vld [vmem:[#allocation2 + $0x8] sm:$0xff] }
   0xe   : > { %244 = vst [vmem:[#allocation2 + $0x167] sm:$0x1] %v11216_v2  ;;  %245 = vst [vmem:[#allocation2 + $0x187] sm:$0x1] %v11216_v2  ;;  %s8666_s12 = sshll.u32 %s12908_s19, 8  ;;  %v418_v14 = vld [vmem:[#allocation2 + $0x10] sm:$0xff] }
   0xf   : > { %246 = vst [vmem:[#allocation2 + $0x1a7] sm:$0x1] %v11216_v2  ;;  %247 = vst [vmem:[#allocation2 + $0x1c7] sm:$0x1] %v11216_v2  ;;  %9249 = vmatpush3.bf16.msra.mxu0 %v10921_v5  ;;  %s11395_s21 = scalar_lea.vmem %s12900_s0, %s8666_s12  ;;  %v433_v16 = vpack.c.bf16 %v418_v14, %v417_v13  ;;  %v10934_v36 = vld [vmem:[%s12901_s1] sm:$0xff]   ;;  %v10935_v45 = vld [vmem:[%s12901_s1 + $0x8] sm:$0xff]   ;;  %s12802_s14 = scalar_lea.vmem %s12905_s5, %s8666_s12 }
  0x10   : > { %248 = vst [vmem:[#allocation2 + $0x1e7] sm:$0x1] %v11216_v2  ;;  %249 = vst [vmem:[#allocation2 + $0x207] sm:$0x1] %v11216_v2  ;;  %9537 = vmatpush3.bf16.msra.mxu1 %v10922_v6  ;;  %9250 = vmatprep.subr.bf16.mxu0 %v10923_v7  ;;  %v326_v15 = vld [vmem:[%s11395_s21 + $0x70] sm:$0xff]  ;;  %v327_v17 = vld [vmem:[%s11395_s21 + $0x78] sm:$0xff] }
  0x11   : > { %252 = vst [vmem:[#allocation2 + $0x38] sm:$0x1] %v11216_v2  ;;  %253 = vst [vmem:[#allocation2 + $0x58] sm:$0x1] %v11216_v2  ;;  %9538 = vmatprep.subr.bf16.mxu1 %v10924_v8  ;;  %v11406_v18 = vld [vmem:[%s11395_s21] sm:$0xff]  ;;  %v11409_v19 = vld [vmem:[%s11395_s21 + $0x8] sm:$0xff]  ;;  %v2276_v20 = vpack.c.bf16 %v327_v17, %v326_v15  ;;  %9260 = vmatprep.mubr.bf16.mxu0 %v433_v16 }
  0x12   : > { %254 = vst [vmem:[#allocation2 + $0x78] sm:$0x1] %v11216_v2  ;;  %255 = vst [vmem:[#allocation2 + $0x98] sm:$0x1] %v11216_v2  ;;  %v11414_v21 = vld [vmem:[%s11395_s21 + $0x80] sm:$0xff]  ;;  %v11417_v22 = vld [vmem:[%s11395_s21 + $0x88] sm:$0xff]  ;;  %v434_v39 = vpack.c.bf16 %v11409_v19, %v11406_v18 }
  0x13   : > { %256 = vst [vmem:[#allocation2 + $0xb8] sm:$0x1] %v11216_v2  ;;  %257 = vst [vmem:[#allocation2 + $0xd8] sm:$0x1] %v11216_v2  ;;  %9251 = vmatpush3.bf16.msra.mxu0 %v10923_v7  ;;  %9548 = vmatprep.mubr.bf16.mxu1 %v2276_v20  ;;  %v11431_v26 = vld [vmem:[%s11395_s21 + $0x10] sm:$0xff]  ;;  %v315_v27 = vld [vmem:[%s11395_s21 + $0x18] sm:$0xff]  ;;  %v2277_v43 = vpack.c.bf16 %v11417_v22, %v11414_v21 }
  0x14   : > { %258 = vst [vmem:[#allocation2 + $0xf8] sm:$0x1] %v11216_v2  ;;  %259 = vst [vmem:[#allocation2 + $0x118] sm:$0x1] %v11216_v2  ;;  %9539 = vmatpush3.bf16.msra.mxu1 %v10924_v8  ;;  %9252 = vmatprep.subr.bf16.mxu0 %v10925_v9  ;;  %v11436_v28 = vld [vmem:[%s11395_s21 + $0x90] sm:$0xff]  ;;  %v11439_v29 = vld [vmem:[%s11395_s21 + $0x98] sm:$0xff]  ;;  %v435_v49 = vpack.c.bf16 %v315_v27, %v11431_v26 }
  0x15   : > { %260 = vst [vmem:[#allocation2 + $0x138] sm:$0x1] %v11216_v2  ;;  %261 = vst [vmem:[#allocation2 + $0x158] sm:$0x1] %v11216_v2  ;;  %9540 = vmatprep.subr.bf16.mxu1 %v10926_v10  ;;  %v11444_v30 = vld [vmem:[%s11395_s21 + $0x20] sm:$0xff]  ;;  %v11447_v31 = vld [vmem:[%s11395_s21 + $0x28] sm:$0xff]  ;;  %v2278_v50 = vpack.c.bf16 %v11439_v29, %v11436_v28 }
  0x16   : > { %262 = vst [vmem:[#allocation2 + $0x178] sm:$0x1] %v11216_v2  ;;  %263 = vst [vmem:[#allocation2 + $0x198] sm:$0x1] %v11216_v2  ;;  %v11455_v33 = vld [vmem:[%s11395_s21 + $0xa0] sm:$0xff]  ;;  %v11458_v34 = vld [vmem:[%s11395_s21 + $0xa8] sm:$0xff]  ;;  %v436_v59 = vpack.c.bf16 %v11447_v31, %v11444_v30 }
  0x17   : > { %264 = vst [vmem:[#allocation2 + $0x1b8] sm:$0x1] %v11216_v2  ;;  %265 = vst [vmem:[#allocation2 + $0x1d8] sm:$0x1] %v11216_v2  ;;  %9253 = vmatpush3.bf16.msra.mxu0 %v10925_v9  ;;  %v11469_v37 = vld [vmem:[%s11395_s21 + $0x30] sm:$0xff]  ;;  %v11472_v38 = vld [vmem:[%s11395_s21 + $0x38] sm:$0xff]  ;;  %v2279_v60 = vpack.c.bf16 %v11458_v34, %v11455_v33 }
  0x18   : > { %266 = vst [vmem:[#allocation2 + $0x1f8] sm:$0x1] %v11216_v2  ;;  %267 = vst [vmem:[#allocation2 + $0x218] sm:$0x1] %v11216_v2  ;;  %9541 = vmatpush3.bf16.msra.mxu1 %v10926_v10  ;;  %9254 = vmatprep.subr.bf16.mxu0 %v10927_v11  ;;  %v11479_v40 = vld [vmem:[%s11395_s21 + $0xb0] sm:$0xff]  ;;  %v11482_v41 = vld [vmem:[%s11395_s21 + $0xb8] sm:$0xff]  ;;  %v437_v1 = vpack.c.bf16 %v11472_v38, %v11469_v37 }
  0x19   : > { %269 = vst [vmem:[#allocation3 + $0x7] sm:$0xff] %v11216_v2  ;;  %270 = vst [vmem:[#allocation3 + $0xf] sm:$0xff] %v11216_v2  ;;  %9542 = vmatprep.subr.bf16.mxu1 %v10928_v12  ;;  %v11485_v42 = vld [vmem:[%s11395_s21 + $0x40] sm:$0xff]  ;;  %v11492_v44 = vld [vmem:[%s11395_s21 + $0x48] sm:$0xff]  ;;  %v2280_v3 = vpack.c.bf16 %v11482_v41, %v11479_v40 }
  0x1a   : > { %271 = vst [vmem:[#allocation3 + $0x17] sm:$0x3] %v11216_v2  ;;  %273 = vst [vmem:[#allocation3 + $0x227] sm:$0xff] %v11216_v2  ;;  %v11500_v46 = vld [vmem:[%s11395_s21 + $0xc0] sm:$0xff]  ;;  %v11503_v47 = vld [vmem:[%s11395_s21 + $0xc8] sm:$0xff]  ;;  %v438_v6 = vpack.c.bf16 %v11492_v44, %v11485_v42 }
  0x1b   : > { %274 = vst [vmem:[#allocation3 + $0x22f] sm:$0xff] %v11216_v2  ;;  %275 = vst [vmem:[#allocation3 + $0x237] sm:$0x3] %v11216_v2  ;;  %9255 = vmatpush3.bf16.msra.mxu0 %v10927_v11  ;;  %v10936_v48 = vld [vmem:[%s12901_s1 + $0x8] sm:$0xff]   ;;  %v10937_v51 = vld [vmem:[%s12901_s1 + $0x10] sm:$0xff]   ;;  %v2281_v7 = vpack.c.bf16 %v11503_v47, %v11500_v46 }
  0x1c   : > { %277 = vst [vmem:[#allocation3 + $0x27] sm:$0x1] %v11216_v2  ;;  %278 = vst [vmem:[#allocation3 + $0x47] sm:$0x1] %v11216_v2  ;;  %9543 = vmatpush3.bf16.msra.mxu1 %v10928_v12  ;;  %9256 = vmatprep.subr.bf16.mxu0 %v10929_v23  ;;  %v10938_v52 = vld [vmem:[%s12901_s1 + $0x10] sm:$0xff]   ;;  %v323_v54 = vld [vmem:[%s11395_s21 + $0x58] sm:$0xff] }
  0x1d   : > { %279 = vst [vmem:[#allocation3 + $0x67] sm:$0x1] %v11216_v2  ;;  %280 = vst [vmem:[#allocation3 + $0x87] sm:$0x1] %v11216_v2  ;;  %9544 = vmatprep.subr.bf16.mxu1 %v10930_v24  ;;  %v322_v53 = vld [vmem:[%s11395_s21 + $0x50] sm:$0xff]  ;;  %v339_v56 = vld [vmem:[%s11395_s21 + $0xd8] sm:$0xff] }
  0x1e   : > { %281 = vst [vmem:[#allocation3 + $0xa7] sm:$0x1] %v11216_v2  ;;  %282 = vst [vmem:[#allocation3 + $0xc7] sm:$0x1] %v11216_v2  ;;  %v338_v55 = vld [vmem:[%s11395_s21 + $0xd0] sm:$0xff]  ;;  %v11524_v57 = vld [vmem:[%s11395_s21 + $0x60] sm:$0xff]  ;;  %v439_v10 = vpack.c.bf16 %v323_v54, %v322_v53 }
  0x1f   : > { %283 = vst [vmem:[#allocation3 + $0xe7] sm:$0x1] %v11216_v2  ;;  %284 = vst [vmem:[#allocation3 + $0x107] sm:$0x1] %v11216_v2  ;;  %9257 = vmatpush3.bf16.msra.mxu0 %v10929_v23  ;;  %v325_v58 = vld [vmem:[%s11395_s21 + $0x68] sm:$0xff]  ;;  %v340_v61 = vld [vmem:[%s11395_s21 + $0xe0] sm:$0xff]  ;;  %v2282_v11 = vpack.c.bf16 %v339_v56, %v338_v55 }
  0x20   : > { %285 = vst [vmem:[#allocation3 + $0x127] sm:$0x1] %v11216_v2  ;;  %286 = vst [vmem:[#allocation3 + $0x147] sm:$0x1] %v11216_v2  ;;  %9545 = vmatpush3.bf16.msra.mxu1 %v10930_v24  ;;  %9258 = vmatprep.subr.bf16.mxu0 %v10931_v25  ;;  %v341_v62 = vld [vmem:[%s11395_s21 + $0xe8] sm:$0xff]  ;;  %v10939_v63 = vld [vmem:[%s12901_s1 + $0x18] sm:$0xff]   ;;  %v440_v14 = vpack.c.bf16 %v325_v58, %v11524_v57 }
  0x21   : > { %287 = vst [vmem:[#allocation3 + $0x167] sm:$0x1] %v11216_v2  ;;  %288 = vst [vmem:[#allocation3 + $0x187] sm:$0x1] %v11216_v2  ;;  %9546 = vmatprep.subr.bf16.mxu1 %v10932_v32  ;;  %v10940_v0 = vld [vmem:[%s12901_s1 + $0x18] sm:$0xff]   ;;  %v10941_v4 = vld [vmem:[%s12901_s1 + $0x20] sm:$0xff]   ;;  %v2283_v16 = vpack.c.bf16 %v341_v62, %v340_v61 }
  0x22   : > { %289 = vst [vmem:[#allocation3 + $0x1a7] sm:$0x1] %v11216_v2  ;;  %290 = vst [vmem:[#allocation3 + $0x1c7] sm:$0x1] %v11216_v2  ;;  %v10942_v5 = vld [vmem:[%s12901_s1 + $0x20] sm:$0xff]   ;;  %v10943_v8 = vld [vmem:[%s12901_s1 + $0x28] sm:$0xff]  }
  0x23   : > { %291 = vst [vmem:[#allocation3 + $0x1e7] sm:$0x1] %v11216_v2  ;;  %292 = vst [vmem:[#allocation3 + $0x207] sm:$0x1] %v11216_v2  ;;  %9259 = vmatpush3.bf16.msra.mxu0 %v10931_v25  ;;  %v10944_v9 = vld [vmem:[%s12901_s1 + $0x28] sm:$0xff]   ;;  %v10945_v12 = vld [vmem:[%s12901_s1 + $0x30] sm:$0xff]  }
  0x24   : > { %295 = vst [vmem:[#allocation3 + $0x38] sm:$0x1] %v11216_v2  ;;  %296 = vst [vmem:[#allocation3 + $0x58] sm:$0x1] %v11216_v2  ;;  %9547 = vmatpush3.bf16.msra.mxu1 %v10932_v32  ;;  %9276 = vmatprep.subr.bf16.mxu0 %v10933_v35  ;;  %v10946_v13 = vld [vmem:[%s12901_s1 + $0x30] sm:$0xff]   ;;  %v10948_v20 = vld [vmem:[%s12901_s1 + $0x38] sm:$0xff]  }
  0x25   : > { %297 = vst [vmem:[#allocation3 + $0x78] sm:$0x1] %v11216_v2  ;;  %298 = vst [vmem:[#allocation3 + $0x98] sm:$0x1] %v11216_v2  ;;  %9564 = vmatprep.subr.bf16.mxu1 %v10934_v36  ;;  %v10949_v25 = vld [vmem:[%s12901_s1 + $0x80] sm:$0xff]  }
  0x26   : > { %299 = vst [vmem:[#allocation3 + $0xb8] sm:$0x1] %v11216_v2  ;;  %300 = vst [vmem:[#allocation3 + $0xd8] sm:$0x1] %v11216_v2  ;;  %9261 = vmatmul.mubr.bf16.vlgmr.msra.gmra.mrb[0].mxu0 %v434_v39 }
  0x27   : > { %301 = vst [vmem:[#allocation3 + $0xf8] sm:$0x1] %v11216_v2  ;;  %302 = vst [vmem:[#allocation3 + $0x118] sm:$0x1] %v11216_v2  ;;  %9549 = vmatmul.mubr.bf16.vlgmr.msra.gmra.mrb[0].mxu1 %v2277_v43  ;;  %9277 = vmatpush3.bf16.msra.mxu0 %v10933_v35  ;;  %v10952_v35 = vld [vmem:[%s12901_s1 + $0x88] sm:$0xff]   ;;  %v10954_v43 = vld [vmem:[%s12901_s1 + $0x90] sm:$0xff]  }
  0x28   : > { %303 = vst [vmem:[#allocation3 + $0x138] sm:$0x1] %v11216_v2  ;;  %304 = vst [vmem:[#allocation3 + $0x158] sm:$0x1] %v11216_v2  ;;  %9565 = vmatpush3.bf16.msra.mxu1 %v10934_v36  ;;  %9278 = vmatprep.subr.bf16.mxu0 %v10935_v45 }
  0x29   : > { %305 = vst [vmem:[#allocation3 + $0x178] sm:$0x1] %v11216_v2  ;;  %306 = vst [vmem:[#allocation3 + $0x198] sm:$0x1] %v11216_v2  ;;  %9566 = vmatprep.subr.bf16.mxu1 %v10936_v48  ;;  %9264 = vmatprep.mubr.bf16.mxu0 %v435_v49 }
  0x2a   : > { %307 = vst [vmem:[#allocation3 + $0x1b8] sm:$0x1] %v11216_v2  ;;  %308 = vst [vmem:[#allocation3 + $0x1d8] sm:$0x1] %v11216_v2  ;;  %9552 = vmatprep.mubr.bf16.mxu1 %v2278_v50  ;;  %v10955_v50 = vld [vmem:[%s12901_s1 + $0x98] sm:$0xff]  }
  0x2b   : > { %309 = vst [vmem:[#allocation3 + $0x1f8] sm:$0x1] %v11216_v2  ;;  %310 = vst [vmem:[#allocation3 + $0x218] sm:$0x1] %v11216_v2  ;;  %9279 = vmatpush3.bf16.msra.mxu0 %v10935_v45 }
  0x2c   : > { %251 = vst [vmem:[#allocation2 + $0x18] sm:$0x1] %v11216_v2  ;;  %233 = vst [vmem:[#allocation2 + $0x7] sm:$0x1] %v11216_v2  ;;  %9567 = vmatpush3.bf16.msra.mxu1 %v10936_v48  ;;  %9280 = vmatprep.subr.bf16.mxu0 %v10937_v51 }
  0x2d   : > { %250 = vst [vmem:[#allocation2 + $0x227] sm:$0x1] %v11216_v2  ;;  %268 = vst [vmem:[#allocation2 + $0x238] sm:$0x1] %v11216_v2  ;;  %9568 = vmatprep.subr.bf16.mxu1 %v10938_v52 }
  0x2e   : > { %276 = vst [vmem:[#allocation3 + $0x7] sm:$0x1] %v11216_v2  ;;  %293 = vst [vmem:[#allocation3 + $0x227] sm:$0x1] %v11216_v2  ;;  %9265 = vmatmul.mubr.bf16.gmra.mrb[4].mxu0 %v436_v59  ;;  %v10958_v59 = vld [vmem:[%s12901_s1 + $0xa0] sm:$0xff]  }
  0x2f   : > { %294 = vst [vmem:[#allocation3 + $0x18] sm:$0x1] %v11216_v2  ;;  %311 = vst [vmem:[#allocation3 + $0x238] sm:$0x1] %v11216_v2  ;;  %9553 = vmatmul.mubr.bf16.gmra.mrb[4].mxu1 %v2279_v60  ;;  %9281 = vmatpush3.bf16.msra.mxu0 %v10937_v51  ;;  %v10956_v51 = vld [vmem:[%s12901_s1 + $0x98] sm:$0xff]  }
  0x30   : > { %359 = vst [vmem:[#allocation2 + $0x108] sm:$0xff] %v326_v15  ;;  %360 = vst [vmem:[#allocation2 + $0x110] sm:$0xff] %v327_v17  ;;  %9569 = vmatpush3.bf16.msra.mxu1 %v10938_v52  ;;  %9282 = vmatprep.subr.bf16.mxu0 %v10939_v63 }
  0x31   : > { %345 = vst [vmem:[#allocation2 + $0x28] sm:$0xff] %v11406_v18  ;;  %346 = vst [vmem:[#allocation2 + $0x30] sm:$0xff] %v11409_v19  ;;  %9570 = vmatprep.subr.bf16.mxu1 %v10940_v0  ;;  %9268 = vmatprep.mubr.bf16.mxu0 %v437_v1  ;;  %v10947_v19 = vld [vmem:[%s12901_s1 + $0x38] sm:$0xff]  }
  0x32   : > { %361 = vst [vmem:[#allocation2 + $0x128] sm:$0xff] %v11414_v21  ;;  %362 = vst [vmem:[#allocation2 + $0x130] sm:$0xff] %v11417_v22  ;;  %9556 = vmatprep.mubr.bf16.mxu1 %v2280_v3  ;;  %v10959_v3 = vld [vmem:[%s12901_s1 + $0xa8] sm:$0xff]  }
  0x33   : > { %347 = vst [vmem:[#allocation2 + $0x48] sm:$0xff] %v11431_v26  ;;  %348 = vst [vmem:[#allocation2 + $0x50] sm:$0xff] %v315_v27  ;;  %9283 = vmatpush3.bf16.msra.mxu0 %v10939_v63  ;;  %v377_v15 = vld [vmem:[#allocation2 + $0x7] sm:$0xff] }
  0x34   : > { %363 = vst [vmem:[#allocation2 + $0x148] sm:$0xff] %v11436_v28  ;;  %364 = vst [vmem:[#allocation2 + $0x150] sm:$0xff] %v11439_v29  ;;  %9571 = vmatpush3.bf16.msra.mxu1 %v10940_v0  ;;  %9284 = vmatprep.subr.bf16.mxu0 %v10941_v4  ;;  %v393_v21 = vpack.c.bf16 %v11216_v2, %v377_v15  ;;  %v10950_v2 = vld [vmem:[%s12901_s1 + $0x80] sm:$0xff]  }
  0x35   : > { %349 = vst [vmem:[#allocation2 + $0x68] sm:$0xff] %v11444_v30  ;;  %350 = vst [vmem:[#allocation2 + $0x70] sm:$0xff] %v11447_v31  ;;  %9572 = vmatprep.subr.bf16.mxu1 %v10942_v5 }
  0x36   : > { %365 = vst [vmem:[#allocation2 + $0x168] sm:$0xff] %v11455_v33  ;;  %366 = vst [vmem:[#allocation2 + $0x170] sm:$0xff] %v11458_v34  ;;  %9269 = vmatmul.mubr.bf16.gmra.mrb[8].mxu0 %v438_v6  ;;  %v10951_v34 = vld [vmem:[%s12901_s1 + $0x88] sm:$0xff]  }
  0x37   : > { %351 = vst [vmem:[#allocation2 + $0x88] sm:$0xff] %v11469_v37  ;;  %352 = vst [vmem:[#allocation2 + $0x90] sm:$0xff] %v11472_v38  ;;  %9557 = vmatmul.mubr.bf16.gmra.mrb[8].mxu1 %v2281_v7  ;;  %9285 = vmatpush3.bf16.msra.mxu0 %v10941_v4  ;;  %v2220_v17 = vld [vmem:[#allocation2 + $0x107] sm:$0xff]  ;;  %v2221_v18 = vld [vmem:[#allocation2 + $0x10f] sm:$0xff] }
  0x38   : > { %367 = vst [vmem:[#allocation2 + $0x188] sm:$0xff] %v11479_v40  ;;  %368 = vst [vmem:[#allocation2 + $0x190] sm:$0xff] %v11482_v41  ;;  %9573 = vmatpush3.bf16.msra.mxu1 %v10942_v5  ;;  %9286 = vmatprep.subr.bf16.mxu0 %v10943_v8  ;;  %v379_v22 = vld [vmem:[#allocation2 + $0x27] sm:$0xff]  ;;  %v11574_v23 = vpack.c.bf16 %v2221_v18, %v2220_v17  ;;  %v380_v24 = vld [vmem:[#allocation2 + $0x2f] sm:$0xff] }
  0x39   : > { %353 = vst [vmem:[#allocation2 + $0xa8] sm:$0xff] %v11485_v42  ;;  %354 = vst [vmem:[#allocation2 + $0xb0] sm:$0xff] %v11492_v44  ;;  %9574 = vmatprep.subr.bf16.mxu1 %v10944_v9  ;;  %9272 = vmatprep.mubr.bf16.mxu0 %v439_v10  ;;  %v2222_v26 = vld [vmem:[#allocation2 + $0x127] sm:$0xff]  ;;  %v2223_v27 = vld [vmem:[#allocation2 + $0x12f] sm:$0xff]  ;;  %v11583_v28 = vpack.c.bf16 %v380_v24, %v379_v22 }
  0x3a   : > { %369 = vst [vmem:[#allocation2 + $0x1a8] sm:$0xff] %v11500_v46  ;;  %370 = vst [vmem:[#allocation2 + $0x1b0] sm:$0xff] %v11503_v47  ;;  %9560 = vmatprep.mubr.bf16.mxu1 %v2282_v11  ;;  %v381_v29 = vld [vmem:[#allocation2 + $0x47] sm:$0xff]  ;;  %v382_v30 = vld [vmem:[#allocation2 + $0x4f] sm:$0xff]  ;;  %v11585_v31 = vpack.c.bf16 %v2223_v27, %v2222_v26 }
  0x3b   : > { %355 = vst [vmem:[#allocation2 + $0xc8] sm:$0xff] %v322_v53  ;;  %356 = vst [vmem:[#allocation2 + $0xd0] sm:$0xff] %v323_v54  ;;  %9287 = vmatpush3.bf16.msra.mxu0 %v10943_v8  ;;  %v2224_v32 = vld [vmem:[#allocation2 + $0x147] sm:$0xff]  ;;  %v2225_v33 = vld [vmem:[#allocation2 + $0x14f] sm:$0xff]  ;;  %v11593_v36 = vpack.c.bf16 %v382_v30, %v381_v29 }
  0x3c   : > { %371 = vst [vmem:[#allocation2 + $0x1c8] sm:$0xff] %v338_v55  ;;  %372 = vst [vmem:[#allocation2 + $0x1d0] sm:$0xff] %v339_v56  ;;  %9575 = vmatpush3.bf16.msra.mxu1 %v10944_v9  ;;  %9288 = vmatprep.subr.bf16.mxu0 %v10945_v12  ;;  %v383_v37 = vld [vmem:[#allocation2 + $0x67] sm:$0xff]  ;;  %v384_v38 = vld [vmem:[#allocation2 + $0x6f] sm:$0xff]  ;;  %v11596_v39 = vpack.c.bf16 %v2225_v33, %v2224_v32 }
  0x3d   : > { %357 = vst [vmem:[#allocation2 + $0xe8] sm:$0xff] %v11524_v57  ;;  %358 = vst [vmem:[#allocation2 + $0xf0] sm:$0xff] %v325_v58  ;;  %9576 = vmatprep.subr.bf16.mxu1 %v10946_v13  ;;  %v10953_v40 = vld [vmem:[%s12901_s1 + $0x90] sm:$0xff]   ;;  %v2226_v41 = vld [vmem:[#allocation2 + $0x167] sm:$0xff]  ;;  %v11607_v44 = vpack.c.bf16 %v384_v38, %v383_v37 }
  0x3e   : > { %373 = vst [vmem:[#allocation2 + $0x1e8] sm:$0xff] %v340_v61  ;;  %374 = vst [vmem:[#allocation2 + $0x1f0] sm:$0xff] %v341_v62  ;;  %9273 = vmatmul.mubr.bf16.gmra.mrb[12].mxu0 %v440_v14  ;;  %v2227_v42 = vld [vmem:[#allocation2 + $0x16f] sm:$0xff]  ;;  %v385_v45 = vld [vmem:[#allocation2 + $0x87] sm:$0xff] }
  0x3f   : > { %9561 = vmatmul.mubr.bf16.gmra.mrb[12].mxu1 %v2283_v16  ;;  %9289 = vmatpush3.bf16.msra.mxu0 %v10945_v12  ;;  %v386_v46 = vld [vmem:[#allocation2 + $0x8f] sm:$0xff]  ;;  %v2228_v47 = vld [vmem:[#allocation2 + $0x187] sm:$0xff]  ;;  %v11609_v48 = vpack.c.bf16 %v2227_v42, %v2226_v41 }
  0x40   : > { %9577 = vmatpush3.bf16.msra.mxu1 %v10946_v13  ;;  %9290 = vmatprep.subr.bf16.mxu0 %v10947_v19  ;;  %v2229_v49 = vld [vmem:[#allocation2 + $0x18f] sm:$0xff]  ;;  %v11617_v52 = vpack.c.bf16 %v386_v46, %v385_v45  ;;  %v387_v54 = vld [vmem:[#allocation2 + $0xa7] sm:$0xff] }
  0x41   : > { %9578 = vmatprep.subr.bf16.mxu1 %v10948_v20  ;;  %9292 = vmatprep.mubr.bf16.mxu0 %v393_v21  ;;  %v11620_v53 = vpack.c.bf16 %v2229_v49, %v2228_v47  ;;  %v388_v55 = vld [vmem:[#allocation2 + $0xaf] sm:$0xff]  ;;  %v10957_v56 = vld [vmem:[%s12901_s1 + $0xa0] sm:$0xff]  }
  0x42   : > { %9580 = vmatprep.mubr.bf16.mxu1 %v11574_v23  ;;  %v2230_v57 = vld [vmem:[#allocation2 + $0x1a7] sm:$0xff]  ;;  %v2231_v58 = vld [vmem:[#allocation2 + $0x1af] sm:$0xff]  ;;  %v11631_v61 = vpack.c.bf16 %v388_v55, %v387_v54 }
  0x43   : > { %9291 = vmatpush3.bf16.msra.mxu0 %v10947_v19  ;;  %v389_v60 = vld [vmem:[#allocation2 + $0xc7] sm:$0xff]  ;;  %v390_v62 = vld [vmem:[#allocation2 + $0xcf] sm:$0xff]  ;;  %v11633_v0 = vpack.c.bf16 %v2231_v58, %v2230_v57  ;;  %v10963_v19 = vld [vmem:[%s12901_s1 + $0xb8] sm:$0xff]  }
  0x44   : > { %9579 = vmatpush3.bf16.msra.mxu1 %v10948_v20  ;;  %9308 = vmatprep.subr.bf16.mxu0 %v10949_v25  ;;  %v2232_v63 = vld [vmem:[#allocation2 + $0x1c7] sm:$0xff]  ;;  %v2233_v1 = vld [vmem:[#allocation2 + $0x1cf] sm:$0xff]  ;;  %v11641_v5 = vpack.c.bf16 %v390_v62, %v389_v60  ;;  %v10964_v20 = vld [vmem:[%s12901_s1 + $0xb8] sm:$0xff]  }
  0x45   : > { %9596 = vmatprep.subr.bf16.mxu1 %v10950_v2  ;;  %v10960_v4 = vld [vmem:[%s12901_s1 + $0xa8] sm:$0xff]   ;;  %v11644_v6 = vpack.c.bf16 %v2233_v1, %v2232_v63  ;;  %v10961_v9 = vld [vmem:[%s12901_s1 + $0xb0] sm:$0xff]   ;;  %v10965_v26 = vld [vmem:[%s12901_s1 + $0xc0] sm:$0xff]  }
  0x46   : > { %9293 = vmatmul.mubr.bf16.vlgmr.msra.gmra.mrb[0].mxu0 %v11583_v28  ;;  %v391_v7 = vld [vmem:[#allocation2 + $0xe7] sm:$0xff]  ;;  %v392_v8 = vld [vmem:[#allocation2 + $0xef] sm:$0xff]  ;;  %v10972_v60 = vld [vmem:[%s12901_s1 + $0xd8] sm:$0xff]  }
  0x47   : > { %9581 = vmatmul.mubr.bf16.vlgmr.msra.gmra.mrb[0].mxu1 %v11585_v31  ;;  %9309 = vmatpush3.bf16.msra.mxu0 %v10949_v25  ;;  %v2234_v10 = vld [vmem:[#allocation2 + $0x1e7] sm:$0xff]  ;;  %v2235_v11 = vld [vmem:[#allocation2 + $0x1ef] sm:$0xff]  ;;  %v11655_v15 = vpack.c.bf16 %v392_v8, %v391_v7 }
  0x48   : > { %9597 = vmatpush3.bf16.msra.mxu1 %v10950_v2  ;;  %9310 = vmatprep.subr.bf16.mxu0 %v10951_v34  ;;  %v10962_v12 = vld [vmem:[%s12901_s1 + $0xb0] sm:$0xff]   ;;  %v11657_v17 = vpack.c.bf16 %v2235_v11, %v2234_v10  ;;  %v10966_v29 = vld [vmem:[%s12901_s1 + $0xc0] sm:$0xff]  }
  0x49   : > { %9598 = vmatprep.subr.bf16.mxu1 %v10952_v35  ;;  %9296 = vmatprep.mubr.bf16.mxu0 %v11593_v36  ;;  %v748_v13 = vld [vmem:[#allocation2 + $0x9] sm:$0xff]  ;;  %v749_v14 = vld [vmem:[#allocation2 + $0x11] sm:$0xff] }
  0x4a   : > { %9584 = vmatprep.mubr.bf16.mxu1 %v11596_v39  ;;  %v2590_v16 = vld [vmem:[#allocation2 + $0x109] sm:$0xff]  ;;  %v2591_v18 = vld [vmem:[#allocation2 + $0x111] sm:$0xff]  ;;  %v764_v21 = vpack.c.bf16 %v749_v14, %v748_v13 }
  0x4b   : > { %9311 = vmatpush3.bf16.msra.mxu0 %v10951_v34  ;;  %v750_v22 = vld [vmem:[#allocation2 + $0x29] sm:$0xff]  ;;  %v2606_v24 = vpack.c.bf16 %v2591_v18, %v2590_v16  ;;  %v751_v25 = vld [vmem:[#allocation2 + $0x31] sm:$0xff] }
  0x4c   : > { %9599 = vmatpush3.bf16.msra.mxu1 %v10952_v35  ;;  %9312 = vmatprep.subr.bf16.mxu0 %v10953_v40  ;;  %v2592_v27 = vld [vmem:[#allocation2 + $0x129] sm:$0xff]  ;;  %v2593_v2 = vld [vmem:[#allocation2 + $0x131] sm:$0xff]  ;;  %v11673_v33 = vpack.c.bf16 %v751_v25, %v750_v22 }
  0x4d   : > { %9600 = vmatprep.subr.bf16.mxu1 %v10954_v43  ;;  %v752_v30 = vld [vmem:[#allocation2 + $0x49] sm:$0xff]  ;;  %v753_v32 = vld [vmem:[#allocation2 + $0x51] sm:$0xff]  ;;  %v11678_v37 = vpack.c.bf16 %v2593_v2, %v2592_v27 }
  0x4e   : > { %9297 = vmatmul.mubr.bf16.gmra.mrb[4].mxu0 %v11607_v44  ;;  %v10967_v34 = vld [vmem:[%s12901_s1 + $0xc8] sm:$0xff]   ;;  %v2595_v38 = vld [vmem:[#allocation2 + $0x151] sm:$0xff]  ;;  %v11683_v41 = vpack.c.bf16 %v753_v32, %v752_v30 }
  0x4f   : > { %9585 = vmatmul.mubr.bf16.gmra.mrb[4].mxu1 %v11609_v48  ;;  %9313 = vmatpush3.bf16.msra.mxu0 %v10953_v40  ;;  %v2594_v35 = vld [vmem:[#allocation2 + $0x149] sm:$0xff]  ;;  %v2597_v49 = vld [vmem:[#allocation2 + $0x171] sm:$0xff] }
  0x50   : > { %9601 = vmatpush3.bf16.msra.mxu1 %v10954_v43  ;;  %9314 = vmatprep.subr.bf16.mxu0 %v10955_v50  ;;  %v10968_v40 = vld [vmem:[%s12901_s1 + $0xc8] sm:$0xff]   ;;  %v755_v43 = vld [vmem:[#allocation2 + $0x71] sm:$0xff]  ;;  %v11686_v45 = vpack.c.bf16 %v2595_v38, %v2594_v35 }
  0x51   : > { %9602 = vmatprep.subr.bf16.mxu1 %v10956_v51  ;;  %9300 = vmatprep.mubr.bf16.mxu0 %v11617_v52  ;;  %v754_v42 = vld [vmem:[#allocation2 + $0x69] sm:$0xff]  ;;  %v757_v54 = vld [vmem:[#allocation2 + $0x91] sm:$0xff] }
  0x52   : > { %9588 = vmatprep.mubr.bf16.mxu1 %v11620_v53  ;;  %v10969_v46 = vld [vmem:[%s12901_s1 + $0xd0] sm:$0xff]   ;;  %v11697_v55 = vpack.c.bf16 %v755_v43, %v754_v42  ;;  %v11724_v13 = vld [vmem:[%s11395_s21 + $0xf8] sm:$0xff]  ;;  %v10976_v22 = vld [vmem:[%s12901_s1 + $0xe8] sm:$0xff]  }
  0x53   : > { %9315 = vmatpush3.bf16.msra.mxu0 %v10955_v50  ;;  %v2596_v47 = vld [vmem:[#allocation2 + $0x169] sm:$0xff]  ;;  %v759_v1 = vld [vmem:[#allocation2 + $0xb1] sm:$0xff]  ;;  %376 = vst [vmem:[#allocation2 + $0x210] sm:$0xff] %v11724_v13  ;;  %v10981_v42 = vld [vmem:[%s12901_s1 + $0x100] sm:$0xff]  }
  0x54   : > { %9603 = vmatpush3.bf16.msra.mxu1 %v10956_v51  ;;  %9316 = vmatprep.subr.bf16.mxu0 %v10957_v56  ;;  %v10970_v50 = vld [vmem:[%s12901_s1 + $0xd0] sm:$0xff]   ;;  %v11702_v58 = vpack.c.bf16 %v2597_v49, %v2596_v47  ;;  %v10979_v38 = vld [vmem:[%s12901_s1 + $0xf8] sm:$0xff]   ;;  %v10982_v43 = vld [vmem:[%s12901_s1 + $0x100] sm:$0xff]  }
  0x55   : > { %9604 = vmatprep.subr.bf16.mxu1 %v10958_v59  ;;  %v756_v51 = vld [vmem:[#allocation2 + $0x89] sm:$0xff]  ;;  %v2601_v8 = vld [vmem:[#allocation2 + $0x1b1] sm:$0xff] }
  0x56   : > { %9301 = vmatmul.mubr.bf16.gmra.mrb[8].mxu0 %v11631_v61  ;;  %v2598_v57 = vld [vmem:[#allocation2 + $0x189] sm:$0xff]  ;;  %v11707_v62 = vpack.c.bf16 %v757_v54, %v756_v51  ;;  %v761_v11 = vld [vmem:[#allocation2 + $0xd1] sm:$0xff] }
  0x57   : > { %9589 = vmatmul.mubr.bf16.gmra.mrb[8].mxu1 %v11633_v0  ;;  %9317 = vmatpush3.bf16.msra.mxu0 %v10957_v56  ;;  %v10971_v56 = vld [vmem:[%s12901_s1 + $0xd8] sm:$0xff]   ;;  %v758_v63 = vld [vmem:[#allocation2 + $0xa9] sm:$0xff] }
  0x58   : > { %9605 = vmatpush3.bf16.msra.mxu1 %v10958_v59  ;;  %9318 = vmatprep.subr.bf16.mxu0 %v10959_v3  ;;  %v2599_v59 = vld [vmem:[#allocation2 + $0x191] sm:$0xff]  ;;  %v2600_v7 = vld [vmem:[#allocation2 + $0x1a9] sm:$0xff]  ;;  %v11728_v14 = vpack.c.bf16 %v759_v1, %v758_v63  ;;  %v10997_v1 = vld [vmem:[%s12901_s1 + $0x140] sm:$0xff]  }
  0x59   : > { %9606 = vmatprep.subr.bf16.mxu1 %v10960_v4  ;;  %9304 = vmatprep.mubr.bf16.mxu0 %v11641_v5  ;;  %v760_v10 = vld [vmem:[#allocation2 + $0xc9] sm:$0xff]  ;;  %v763_v27 = vld [vmem:[#allocation2 + $0xf1] sm:$0xff] }
  0x5a   : > { %9592 = vmatprep.mubr.bf16.mxu1 %v11644_v6  ;;  %v2602_v16 = vld [vmem:[#allocation2 + $0x1c9] sm:$0xff]  ;;  %v2605_v30 = vld [vmem:[#allocation2 + $0x1f1] sm:$0xff] }
  0x5b   : > { %9319 = vmatpush3.bf16.msra.mxu0 %v10959_v3  ;;  %v11710_v3 = vpack.c.bf16 %v2599_v59, %v2598_v57  ;;  %v10977_v2 = vld [vmem:[%s12901_s1 + $0xf0] sm:$0xff]   ;;  %v10984_v47 = vld [vmem:[%s12901_s1 + $0x108] sm:$0xff]   ;;  %v10995_v57 = vld [vmem:[%s12901_s1 + $0x138] sm:$0xff]  }
  0x5c   : > { %9607 = vmatpush3.bf16.msra.mxu1 %v10960_v4  ;;  %9320 = vmatprep.subr.bf16.mxu0 %v10961_v9  ;;  %v10973_v4 = vld [vmem:[%s12901_s1 + $0xe0] sm:$0xff]   ;;  %v10978_v32 = vld [vmem:[%s12901_s1 + $0xf0] sm:$0xff]   ;;  %v1152_v51 = vld [vmem:[#allocation2 + $0x28] sm:$0xff] }
  0x5d   : > { %9608 = vmatprep.subr.bf16.mxu1 %v10962_v12  ;;  %v10994_v49 = vld [vmem:[%s12901_s1 + $0x130] sm:$0xff]  }
  0x5e   : > { %9305 = vmatmul.mubr.bf16.gmra.mrb[12].mxu0 %v11655_v15  ;;  %v1155_v63 = vld [vmem:[#allocation2 + $0x50] sm:$0xff] }
  0x5f   : > { %9593 = vmatmul.mubr.bf16.gmra.mrb[12].mxu1 %v11657_v17  ;;  %9321 = vmatpush3.bf16.msra.mxu0 %v10961_v9  ;;  %v10974_v9 = vld [vmem:[%s12901_s1 + $0xe0] sm:$0xff]  }
  0x60   : > { %9609 = vmatpush3.bf16.msra.mxu1 %v10962_v12  ;;  %9322 = vmatprep.subr.bf16.mxu0 %v10963_v19  ;;  %v11720_v12 = vld [vmem:[%s11395_s21 + $0xf0] sm:$0xff] }
  0x61   : > { %9610 = vmatprep.subr.bf16.mxu1 %v10964_v20  ;;  %9324 = vmatprep.mubr.bf16.mxu0 %v764_v21  ;;  %375 = vst [vmem:[#allocation2 + $0x208] sm:$0xff] %v11720_v12  ;;  %v3016_v18 = vpack.c.bf16 %v11724_v13, %v11720_v12  ;;  %v10975_v21 = vld [vmem:[%s12901_s1 + $0xe8] sm:$0xff]  }
  0x62   : > { %9612 = vmatprep.mubr.bf16.mxu1 %v2606_v24  ;;  %v11741_v24 = vpack.c.bf16 %v761_v11, %v760_v10  ;;  %v1157_v10 = vld [vmem:[#allocation2 + $0x70] sm:$0xff]  ;;  %v11015_v12 = vld [vmem:[%s12901_s1 + $0x188] sm:$0xff]  }
  0x63   : > { %9323 = vmatpush3.bf16.msra.mxu0 %v10963_v19  ;;  %v11733_v19 = vpack.c.bf16 %v2601_v8, %v2600_v7  ;;  %v2996_v7 = vld [vmem:[#allocation2 + $0x150] sm:$0xff]  ;;  %v1156_v8 = vld [vmem:[#allocation2 + $0x68] sm:$0xff] }
  0x64   : > { %9611 = vmatpush3.bf16.msra.mxu1 %v10964_v20  ;;  %9340 = vmatprep.subr.bf16.mxu0 %v10965_v26  ;;  %v2603_v20 = vld [vmem:[#allocation2 + $0x1d1] sm:$0xff]  ;;  %v11016_v13 = vld [vmem:[%s12901_s1 + $0x188] sm:$0xff]  }
  0x65   : > { %9628 = vmatprep.subr.bf16.mxu1 %v10966_v29  ;;  %v11744_v25 = vpack.c.bf16 %v2603_v20, %v2602_v16  ;;  %v2997_v16 = vld [vmem:[#allocation2 + $0x168] sm:$0xff]  ;;  %v2998_v20 = vld [vmem:[#allocation2 + $0x170] sm:$0xff] }
  0x66   : > { %9325 = vmatmul.mubr.bf16.vlgmr.msra.gmra.mrb[0].mxu0 %v11673_v33 }
  0x67   : > { %9613 = vmatmul.mubr.bf16.vlgmr.msra.gmra.mrb[0].mxu1 %v11678_v37  ;;  %9341 = vmatpush3.bf16.msra.mxu0 %v10965_v26  ;;  %v762_v26 = vld [vmem:[#allocation2 + $0xe9] sm:$0xff] }
  0x68   : > { %9629 = vmatpush3.bf16.msra.mxu1 %v10966_v29  ;;  %9342 = vmatprep.subr.bf16.mxu0 %v10967_v34  ;;  %v2604_v29 = vld [vmem:[#allocation2 + $0x1e9] sm:$0xff] }
  0x69   : > { %9630 = vmatprep.subr.bf16.mxu1 %v10968_v40  ;;  %9328 = vmatprep.mubr.bf16.mxu0 %v11683_v41  ;;  %v11757_v35 = vpack.c.bf16 %v2605_v30, %v2604_v29  ;;  %v1159_v29 = vld [vmem:[#allocation2 + $0x90] sm:$0xff] }
  0x6a   : > { %9616 = vmatprep.mubr.bf16.mxu1 %v11686_v45  ;;  %v11001_v30 = vld [vmem:[%s12901_s1 + $0x150] sm:$0xff]  }
  0x6b   : > { %9343 = vmatpush3.bf16.msra.mxu0 %v10967_v34  ;;  %v11755_v34 = vpack.c.bf16 %v763_v27, %v762_v26  ;;  %v11849_v26 = vpack.c.bf16 %v1157_v10, %v1156_v8  ;;  %v11852_v27 = vpack.c.bf16 %v2998_v20, %v2997_v16  ;;  %v11011_v10 = vld [vmem:[%s12901_s1 + $0x178] sm:$0xff]   ;;  %v11013_v20 = vld [vmem:[%s12901_s1 + $0x180] sm:$0xff]  }
  0x6c   : > { %9631 = vmatpush3.bf16.msra.mxu1 %v10968_v40  ;;  %9344 = vmatprep.subr.bf16.mxu0 %v10969_v46  ;;  %v10980_v40 = vld [vmem:[%s12901_s1 + $0xf8] sm:$0xff]  }
  0x6d   : > { %9632 = vmatprep.subr.bf16.mxu1 %v10970_v50  ;;  %v11012_v16 = vld [vmem:[%s12901_s1 + $0x178] sm:$0xff]  }
  0x6e   : > { %9329 = vmatmul.mubr.bf16.gmra.mrb[4].mxu0 %v11697_v55 }
  0x6f   : > { %9617 = vmatmul.mubr.bf16.gmra.mrb[4].mxu1 %v11702_v58  ;;  %9345 = vmatpush3.bf16.msra.mxu0 %v10969_v46  ;;  %v10983_v46 = vld [vmem:[%s12901_s1 + $0x108] sm:$0xff]  }
  0x70   : > { %9633 = vmatpush3.bf16.msra.mxu1 %v10970_v50  ;;  %9346 = vmatprep.subr.bf16.mxu0 %v10971_v56  ;;  %v2807_v50 = vld [vmem:[#allocation2 + $0x20f] sm:$0xff] }
  0x71   : > { %9634 = vmatprep.subr.bf16.mxu1 %v10972_v60  ;;  %9332 = vmatprep.mubr.bf16.mxu0 %v11707_v62 }
  0x72   : > { %9620 = vmatprep.mubr.bf16.mxu1 %v11710_v3 }
  0x73   : > { %9347 = vmatpush3.bf16.msra.mxu0 %v10971_v56  ;;  %v2994_v56 = vld [vmem:[#allocation2 + $0x130] sm:$0xff] }
  0x74   : > { %9635 = vmatpush3.bf16.msra.mxu1 %v10972_v60  ;;  %9348 = vmatprep.subr.bf16.mxu0 %v10973_v4  ;;  %v1154_v60 = vld [vmem:[#allocation2 + $0x48] sm:$0xff] }
  0x75   : > { %9636 = vmatprep.subr.bf16.mxu1 %v10974_v9 }
  0x76   : > { %9333 = vmatmul.mubr.bf16.gmra.mrb[8].mxu0 %v11728_v14 }
  0x77   : > { %9621 = vmatmul.mubr.bf16.gmra.mrb[8].mxu1 %v11733_v19  ;;  %9349 = vmatpush3.bf16.msra.mxu0 %v10973_v4  ;;  %v2995_v4 = vld [vmem:[#allocation2 + $0x148] sm:$0xff] }
  0x78   : > { %9637 = vmatpush3.bf16.msra.mxu1 %v10974_v9  ;;  %9350 = vmatprep.subr.bf16.mxu0 %v10975_v21  ;;  %v11839_v9 = vpack.c.bf16 %v1155_v63, %v1154_v60  ;;  %v11841_v11 = vpack.c.bf16 %v2996_v7, %v2995_v4  ;;  %v1167_v4 = vld [vmem:[#allocation2 + $0x110] sm:$0xff] }
  0x79   : > { %9638 = vmatprep.subr.bf16.mxu1 %v10976_v22  ;;  %9336 = vmatprep.mubr.bf16.mxu0 %v11741_v24  ;;  %v11009_v7 = vld [vmem:[%s12901_s1 + $0x170] sm:$0xff]  }
  0x7a   : > { %9624 = vmatprep.mubr.bf16.mxu1 %v11744_v25 }
  0x7b   : > { %9351 = vmatpush3.bf16.msra.mxu0 %v10975_v21  ;;  %v10999_v21 = vld [vmem:[%s12901_s1 + $0x148] sm:$0xff]  }
  0x7c   : > { %9639 = vmatpush3.bf16.msra.mxu1 %v10976_v22  ;;  %9352 = vmatprep.subr.bf16.mxu0 %v10977_v2  ;;  %v11000_v22 = vld [vmem:[%s12901_s1 + $0x148] sm:$0xff]  }
  0x7d   : > { %9640 = vmatprep.subr.bf16.mxu1 %v10978_v32 }
  0x7e   : > { %9337 = vmatmul.mubr.bf16.gmra.mrb[12].mxu0 %v11755_v34 }
  0x7f   : > { %9625 = vmatmul.mubr.bf16.gmra.mrb[12].mxu1 %v11757_v35  ;;  %9353 = vmatpush3.bf16.msra.mxu0 %v10977_v2  ;;  %v1158_v2 = vld [vmem:[#allocation2 + $0x88] sm:$0xff] }
  0x80   : > { %9641 = vmatpush3.bf16.msra.mxu1 %v10978_v32  ;;  %9354 = vmatprep.subr.bf16.mxu0 %v10979_v38  ;;  %v2999_v32 = vld [vmem:[#allocation2 + $0x188] sm:$0xff] }
  0x81   : > { %9642 = vmatprep.subr.bf16.mxu1 %v10980_v40  ;;  %9356 = vmatprep.mubr.bf16.mxu0 %v11583_v28  ;;  %v10985_v28 = vld [vmem:[%s12901_s1 + $0x110] sm:$0xff]  }
  0x82   : > { %9644 = vmatprep.mubr.bf16.mxu1 %v11585_v31  ;;  %v10986_v31 = vld [vmem:[%s12901_s1 + $0x110] sm:$0xff]  }
  0x83   : > { %9355 = vmatpush3.bf16.msra.mxu0 %v10979_v38  ;;  %v3000_v38 = vld [vmem:[#allocation2 + $0x190] sm:$0xff] }
  0x84   : > { %9643 = vmatpush3.bf16.msra.mxu1 %v10980_v40  ;;  %9372 = vmatprep.subr.bf16.mxu0 %v10981_v42  ;;  %v11002_v40 = vld [vmem:[%s12901_s1 + $0x150] sm:$0xff]  }
  0x85   : > { %9660 = vmatprep.subr.bf16.mxu1 %v10982_v43 }
  0x86   : > { %9357 = vmatmul.mubr.bf16.vlgmr.msra.gmra.mrb[0].mxu0 %v11593_v36  ;;  %v10987_v36 = vld [vmem:[%s12901_s1 + $0x118] sm:$0xff]  }
  0x87   : > { %9645 = vmatmul.mubr.bf16.vlgmr.msra.gmra.mrb[0].mxu1 %v11596_v39  ;;  %9373 = vmatpush3.bf16.msra.mxu0 %v10981_v42  ;;  %v10988_v39 = vld [vmem:[%s12901_s1 + $0x118] sm:$0xff]   ;;  %v1160_v42 = vld [vmem:[#allocation2 + $0xa8] sm:$0xff] }
  0x88   : > { %9661 = vmatpush3.bf16.msra.mxu1 %v10982_v43  ;;  %9374 = vmatprep.subr.bf16.mxu0 %v10983_v46  ;;  %v11863_v43 = vpack.c.bf16 %v1159_v29, %v1158_v2  ;;  %v3209_v2 = vld [vmem:[#allocation2 + $0x211] sm:$0xff] }
  0x89   : > { %9662 = vmatprep.subr.bf16.mxu1 %v10984_v47  ;;  %9360 = vmatprep.mubr.bf16.mxu0 %v11607_v44  ;;  %v10989_v44 = vld [vmem:[%s12901_s1 + $0x120] sm:$0xff]   ;;  %v11026_v29 = vld [vmem:[%s12901_s1 + $0x1b0] sm:$0xff]  }
  0x8a   : > { %9648 = vmatprep.mubr.bf16.mxu1 %v11609_v48  ;;  %v10990_v48 = vld [vmem:[%s12901_s1 + $0x120] sm:$0xff]  }
  0x8b   : > { %9375 = vmatpush3.bf16.msra.mxu0 %v10983_v46  ;;  %v1161_v46 = vld [vmem:[#allocation2 + $0xb0] sm:$0xff] }
  0x8c   : > { %9663 = vmatpush3.bf16.msra.mxu1 %v10984_v47  ;;  %9376 = vmatprep.subr.bf16.mxu0 %v10985_v28  ;;  %v3001_v47 = vld [vmem:[#allocation2 + $0x1a8] sm:$0xff] }
  0x8d   : > { %9664 = vmatprep.subr.bf16.mxu1 %v10986_v31 }
  0x8e   : > { %9361 = vmatmul.mubr.bf16.gmra.mrb[4].mxu0 %v11617_v52  ;;  %v10991_v52 = vld [vmem:[%s12901_s1 + $0x128] sm:$0xff]  }
  0x8f   : > { %9649 = vmatmul.mubr.bf16.gmra.mrb[4].mxu1 %v11620_v53  ;;  %9377 = vmatpush3.bf16.msra.mxu0 %v10985_v28  ;;  %v10992_v53 = vld [vmem:[%s12901_s1 + $0x128] sm:$0xff]   ;;  %v11865_v28 = vpack.c.bf16 %v3000_v38, %v2999_v32 }
  0x90   : > { %9665 = vmatpush3.bf16.msra.mxu1 %v10986_v31  ;;  %9378 = vmatprep.subr.bf16.mxu0 %v10987_v36  ;;  %v3002_v31 = vld [vmem:[#allocation2 + $0x1b0] sm:$0xff] }
  0x91   : > { %9666 = vmatprep.subr.bf16.mxu1 %v10988_v39  ;;  %9364 = vmatprep.mubr.bf16.mxu0 %v11631_v61  ;;  %v10993_v61 = vld [vmem:[%s12901_s1 + $0x130] sm:$0xff]  }
  0x92   : > { %9652 = vmatprep.mubr.bf16.mxu1 %v11633_v0  ;;  %v2806_v0 = vld [vmem:[#allocation2 + $0x207] sm:$0xff]  ;;  %v1558_v32 = vld [vmem:[#allocation2 + $0x4f] sm:$0xff] }
  0x93   : > { %9379 = vmatpush3.bf16.msra.mxu0 %v10987_v36  ;;  %v11823_v54 = vpack.c.bf16 %v2807_v50, %v2806_v0  ;;  %v11003_v36 = vld [vmem:[%s12901_s1 + $0x158] sm:$0xff]   ;;  %v3003_v0 = vld [vmem:[#allocation2 + $0x1c8] sm:$0xff]  ;;  %v11006_v50 = vld [vmem:[%s12901_s1 + $0x160] sm:$0xff]  }
  0x94   : > { %9667 = vmatpush3.bf16.msra.mxu1 %v10988_v39  ;;  %9380 = vmatprep.subr.bf16.mxu0 %v10989_v44  ;;  %v11004_v39 = vld [vmem:[%s12901_s1 + $0x158] sm:$0xff]   ;;  %v3397_v38 = vld [vmem:[#allocation2 + $0x14f] sm:$0xff] }
  0x95   : > { %9668 = vmatprep.subr.bf16.mxu1 %v10990_v48 }
  0x96   : > { %9365 = vmatmul.mubr.bf16.gmra.mrb[8].mxu0 %v11641_v5  ;;  %v1153_v5 = vld [vmem:[#allocation2 + $0x30] sm:$0xff] }
  0x97   : > { %9653 = vmatmul.mubr.bf16.gmra.mrb[8].mxu1 %v11644_v6  ;;  %9381 = vmatpush3.bf16.msra.mxu0 %v10989_v44  ;;  %v2993_v6 = vld [vmem:[#allocation2 + $0x128] sm:$0xff]  ;;  %v1168_v59 = vpack.c.bf16 %v1153_v5, %v1152_v51  ;;  %v11873_v44 = vpack.c.bf16 %v1161_v46, %v1160_v42  ;;  %v1165_v5 = vld [vmem:[#allocation2 + $0xf0] sm:$0xff]  ;;  %v11028_v46 = vld [vmem:[%s12901_s1 + $0x1b8] sm:$0xff]  }
  0x98   : > { %9669 = vmatpush3.bf16.msra.mxu1 %v10990_v48  ;;  %9382 = vmatprep.subr.bf16.mxu0 %v10991_v52  ;;  %v11876_v48 = vpack.c.bf16 %v3002_v31, %v3001_v47  ;;  %v1164_v51 = vld [vmem:[#allocation2 + $0xe8] sm:$0xff] }
  0x99   : > { %9670 = vmatprep.subr.bf16.mxu1 %v10992_v53  ;;  %9368 = vmatprep.mubr.bf16.mxu0 %v11655_v15  ;;  %v10996_v15 = vld [vmem:[%s12901_s1 + $0x138] sm:$0xff]   ;;  %v11897_v60 = vpack.c.bf16 %v1165_v5, %v1164_v51  ;;  %v1559_v47 = vld [vmem:[#allocation2 + $0x67] sm:$0xff]  ;;  %v1560_v31 = vld [vmem:[#allocation2 + $0x6f] sm:$0xff] }
  0x9a   : > { %9656 = vmatprep.mubr.bf16.mxu1 %v11657_v17  ;;  %v3009_v17 = vpack.c.bf16 %v2994_v56, %v2993_v6  ;;  %v3005_v56 = vld [vmem:[#allocation2 + $0x1e8] sm:$0xff]  ;;  %v1574_v51 = vpack.c.bf16 %v1560_v31, %v1559_v47  ;;  %v11041_v47 = vld [vmem:[%s12901_s1 + $0x1f0] sm:$0xff]  }
  0x9b   : > { %9383 = vmatpush3.bf16.msra.mxu0 %v10991_v52  ;;  %v1162_v52 = vld [vmem:[#allocation2 + $0xc8] sm:$0xff] }
  0x9c   : > { %9671 = vmatpush3.bf16.msra.mxu1 %v10992_v53  ;;  %9384 = vmatprep.subr.bf16.mxu0 %v10993_v61  ;;  %v1163_v53 = vld [vmem:[#allocation2 + $0xd0] sm:$0xff]  ;;  %v11031_v5 = vld [vmem:[%s12901_s1 + $0x1c8] sm:$0xff]  }
  0x9d   : > { %9672 = vmatprep.subr.bf16.mxu1 %v10994_v49  ;;  %v11887_v6 = vpack.c.bf16 %v1163_v53, %v1162_v52  ;;  %v3399_v52 = vld [vmem:[#allocation2 + $0x16f] sm:$0xff]  ;;  %v11030_v53 = vld [vmem:[%s12901_s1 + $0x1c0] sm:$0xff]  }
  0x9e   : > { %9369 = vmatmul.mubr.bf16.gmra.mrb[12].mxu0 %v11574_v23  ;;  %v10998_v23 = vld [vmem:[%s12901_s1 + $0x140] sm:$0xff]  }
  0x9f   : > { %9657 = vmatmul.mubr.bf16.gmra.mrb[12].mxu1 %v11823_v54  ;;  %9385 = vmatpush3.bf16.msra.mxu0 %v10993_v61  ;;  %v11005_v61 = vld [vmem:[%s12901_s1 + $0x160] sm:$0xff]  }
  0xa0   : > { %9673 = vmatpush3.bf16.msra.mxu1 %v10994_v49  ;;  %9386 = vmatprep.subr.bf16.mxu0 %v10995_v57  ;;  %v3004_v49 = vld [vmem:[#allocation2 + $0x1d0] sm:$0xff]  ;;  %v3410_v31 = vld [vmem:[#allocation2 + $0x227] sm:$0xff] }
  0xa1   : > { %9674 = vmatprep.subr.bf16.mxu1 %v10996_v15  ;;  %9388 = vmatprep.mubr.bf16.mxu0 %v1168_v59  ;;  %v11007_v59 = vld [vmem:[%s12901_s1 + $0x168] sm:$0xff]  }
  0xa2   : > { %9676 = vmatprep.mubr.bf16.mxu1 %v3009_v17  ;;  %v11008_v17 = vld [vmem:[%s12901_s1 + $0x168] sm:$0xff]  }
  0xa3   : > { %9387 = vmatpush3.bf16.msra.mxu0 %v10995_v57  ;;  %v11889_v57 = vpack.c.bf16 %v3004_v49, %v3003_v0  ;;  %v1562_v0 = vld [vmem:[#allocation2 + $0x8f] sm:$0xff]  ;;  %v3400_v49 = vld [vmem:[#allocation2 + $0x187] sm:$0xff] }
  0xa4   : > { %9675 = vmatpush3.bf16.msra.mxu1 %v10996_v15  ;;  %9404 = vmatprep.subr.bf16.mxu0 %v10997_v1  ;;  %v3006_v15 = vld [vmem:[#allocation2 + $0x1f0] sm:$0xff] }
  0xa5   : > { %9692 = vmatprep.subr.bf16.mxu1 %v10998_v23  ;;  %v11900_v63 = vpack.c.bf16 %v3006_v15, %v3005_v56  ;;  %v11032_v15 = vld [vmem:[%s12901_s1 + $0x1c8] sm:$0xff]  }
  0xa6   : > { %9389 = vmatmul.mubr.bf16.vlgmr.msra.gmra.mrb[0].mxu0 %v11839_v9 }
  0xa7   : > { %9677 = vmatmul.mubr.bf16.vlgmr.msra.gmra.mrb[0].mxu1 %v11841_v11  ;;  %9405 = vmatpush3.bf16.msra.mxu0 %v10997_v1  ;;  %v1166_v1 = vld [vmem:[#allocation2 + $0x108] sm:$0xff] }
  0xa8   : > { %9693 = vmatpush3.bf16.msra.mxu1 %v10998_v23  ;;  %9406 = vmatprep.subr.bf16.mxu0 %v10999_v21  ;;  %v11010_v23 = vld [vmem:[%s12901_s1 + $0x170] sm:$0xff]   ;;  %v11911_v8 = vpack.c.bf16 %v1167_v4, %v1166_v1 }
  0xa9   : > { %9694 = vmatprep.subr.bf16.mxu1 %v11000_v22  ;;  %9392 = vmatprep.mubr.bf16.mxu0 %v11849_v26  ;;  %v1564_v1 = vld [vmem:[#allocation2 + $0xaf] sm:$0xff] }
  0xaa   : > { %9680 = vmatprep.mubr.bf16.mxu1 %v11852_v27 }
  0xab   : > { %9407 = vmatpush3.bf16.msra.mxu0 %v10999_v21  ;;  %v11014_v21 = vld [vmem:[%s12901_s1 + $0x180] sm:$0xff]  }
  0xac   : > { %9695 = vmatpush3.bf16.msra.mxu1 %v11000_v22  ;;  %9408 = vmatprep.subr.bf16.mxu0 %v11001_v30  ;;  %v3208_v22 = vld [vmem:[#allocation2 + $0x209] sm:$0xff] }
  0xad   : > { %9696 = vmatprep.subr.bf16.mxu1 %v11002_v40  ;;  %v11984_v42 = vpack.c.bf16 %v3209_v2, %v3208_v22  ;;  %v11038_v22 = vld [vmem:[%s12901_s1 + $0x1e0] sm:$0xff]  }
  0xae   : > { %9393 = vmatmul.mubr.bf16.gmra.mrb[4].mxu0 %v11863_v43  ;;  %v1569_v2 = vld [vmem:[#allocation2 + $0x107] sm:$0xff] }
  0xaf   : > { %9681 = vmatmul.mubr.bf16.gmra.mrb[4].mxu1 %v11865_v28  ;;  %9409 = vmatpush3.bf16.msra.mxu0 %v11001_v30  ;;  %v1557_v30 = vld [vmem:[#allocation2 + $0x47] sm:$0xff] }
  0xb0   : > { %9697 = vmatpush3.bf16.msra.mxu1 %v11002_v40  ;;  %9410 = vmatprep.subr.bf16.mxu0 %v11003_v36 }
  0xb1   : > { %9698 = vmatprep.subr.bf16.mxu1 %v11004_v39  ;;  %9396 = vmatprep.mubr.bf16.mxu0 %v11873_v44 }
  0xb2   : > { %9684 = vmatprep.mubr.bf16.mxu1 %v11876_v48 }
  0xb3   : > { %9411 = vmatpush3.bf16.msra.mxu0 %v11003_v36  ;;  %v11029_v36 = vld [vmem:[%s12901_s1 + $0x1c0] sm:$0xff]  }
  0xb4   : > { %9699 = vmatpush3.bf16.msra.mxu1 %v11004_v39  ;;  %9412 = vmatprep.subr.bf16.mxu0 %v11005_v61  ;;  %v3398_v39 = vld [vmem:[#allocation2 + $0x167] sm:$0xff] }
  0xb5   : > { %9700 = vmatprep.subr.bf16.mxu1 %v11006_v50  ;;  %v3413_v56 = vpack.c.bf16 %v3399_v52, %v3398_v39  ;;  %v11043_v39 = vld [vmem:[%s12901_s1 + $0x1f8] sm:$0xff]   ;;  %v11205_v52 = vld [vmem:[#allocation2 + $0xf] sm:$0xff] }
  0xb6   : > { %9397 = vmatmul.mubr.bf16.gmra.mrb[8].mxu0 %v11887_v6 }
  0xb7   : > { %9685 = vmatmul.mubr.bf16.gmra.mrb[8].mxu1 %v11889_v57  ;;  %9413 = vmatpush3.bf16.msra.mxu0 %v11005_v61  ;;  %v1561_v61 = vld [vmem:[#allocation2 + $0x87] sm:$0xff] }
  0xb8   : > { %9701 = vmatpush3.bf16.msra.mxu1 %v11006_v50  ;;  %9414 = vmatprep.subr.bf16.mxu0 %v11007_v59  ;;  %v3401_v50 = vld [vmem:[#allocation2 + $0x18f] sm:$0xff] }
  0xb9   : > { %9702 = vmatprep.subr.bf16.mxu1 %v11008_v17  ;;  %9400 = vmatprep.mubr.bf16.mxu0 %v11897_v60  ;;  %v3414_v4 = vpack.c.bf16 %v3401_v50, %v3400_v49  ;;  %v11047_v49 = vld [vmem:[%s12901_s1 + $0x208] sm:$0xff]  }
  0xba   : > { %9688 = vmatprep.mubr.bf16.mxu1 %v11900_v63  ;;  %v11048_v50 = vld [vmem:[%s12901_s1 + $0x208] sm:$0xff]  }
  0xbb   : > { %9415 = vmatpush3.bf16.msra.mxu0 %v11007_v59  ;;  %v1575_v59 = vpack.c.bf16 %v1562_v0, %v1561_v61  ;;  %v11044_v61 = vld [vmem:[%s12901_s1 + $0x1f8] sm:$0xff]   ;;  %v11046_v0 = vld [vmem:[%s12901_s1 + $0x200] sm:$0xff]  }
  0xbc   : > { %9703 = vmatpush3.bf16.msra.mxu1 %v11008_v17  ;;  %9416 = vmatprep.subr.bf16.mxu0 %v11009_v7  ;;  %v1563_v17 = vld [vmem:[#allocation2 + $0xa7] sm:$0xff] }
  0xbd   : > { %9704 = vmatprep.subr.bf16.mxu1 %v11010_v23 }
  0xbe   : > { %9401 = vmatmul.mubr.bf16.gmra.mrb[12].mxu0 %v11911_v8 }
  0xbf   : > { %9689 = vmatmul.mubr.bf16.gmra.mrb[12].mxu1 %v3016_v18  ;;  %9417 = vmatpush3.bf16.msra.mxu0 %v11009_v7  ;;  %v1368_v18 = vld [vmem:[#allocation2 + $0x109] sm:$0xff] }
  0xc0   : > { %9705 = vmatpush3.bf16.msra.mxu1 %v11010_v23  ;;  %9418 = vmatprep.subr.bf16.mxu0 %v11011_v10  ;;  %v11033_v7 = vld [vmem:[%s12901_s1 + $0x1d0] sm:$0xff]   ;;  %v3402_v23 = vld [vmem:[#allocation2 + $0x1a7] sm:$0xff] }
  0xc1   : > { %9706 = vmatprep.subr.bf16.mxu1 %v11012_v16  ;;  %9420 = vmatprep.mubr.bf16.mxu0 %v11673_v33  ;;  %v11017_v33 = vld [vmem:[%s12901_s1 + $0x190] sm:$0xff]  }
  0xc2   : > { %9708 = vmatprep.mubr.bf16.mxu1 %v11678_v37  ;;  %v11018_v37 = vld [vmem:[%s12901_s1 + $0x190] sm:$0xff]  }
  0xc3   : > { %9419 = vmatpush3.bf16.msra.mxu0 %v11011_v10  ;;  %v3403_v10 = vld [vmem:[#allocation2 + $0x1af] sm:$0xff] }
  0xc4   : > { %9707 = vmatpush3.bf16.msra.mxu1 %v11012_v16  ;;  %9436 = vmatprep.subr.bf16.mxu0 %v11013_v20  ;;  %v11034_v16 = vld [vmem:[%s12901_s1 + $0x1d0] sm:$0xff]  }
  0xc5   : > { %9724 = vmatprep.subr.bf16.mxu1 %v11014_v21 }
  0xc6   : > { %9421 = vmatmul.mubr.bf16.vlgmr.msra.gmra.mrb[0].mxu0 %v11683_v41  ;;  %v11019_v41 = vld [vmem:[%s12901_s1 + $0x198] sm:$0xff]  }
  0xc7   : > { %9709 = vmatmul.mubr.bf16.vlgmr.msra.gmra.mrb[0].mxu1 %v11686_v45  ;;  %9437 = vmatpush3.bf16.msra.mxu0 %v11013_v20  ;;  %v11020_v45 = vld [vmem:[%s12901_s1 + $0x198] sm:$0xff]   ;;  %v1565_v20 = vld [vmem:[#allocation2 + $0xc7] sm:$0xff] }
  0xc8   : > { %9725 = vmatpush3.bf16.msra.mxu1 %v11014_v21  ;;  %9438 = vmatprep.subr.bf16.mxu0 %v11015_v12  ;;  %v1566_v21 = vld [vmem:[#allocation2 + $0xcf] sm:$0xff] }
  0xc9   : > { %9726 = vmatprep.subr.bf16.mxu1 %v11016_v13  ;;  %9424 = vmatprep.mubr.bf16.mxu0 %v11697_v55  ;;  %v11021_v55 = vld [vmem:[%s12901_s1 + $0x1a0] sm:$0xff]  }
  0xca   : > { %9712 = vmatprep.mubr.bf16.mxu1 %v11702_v58  ;;  %v11022_v58 = vld [vmem:[%s12901_s1 + $0x1a0] sm:$0xff]  }
  0xcb   : > { %9439 = vmatpush3.bf16.msra.mxu0 %v11015_v12  ;;  %v3404_v12 = vld [vmem:[#allocation2 + $0x1c7] sm:$0xff] }
  0xcc   : > { %9727 = vmatpush3.bf16.msra.mxu1 %v11016_v13  ;;  %9440 = vmatprep.subr.bf16.mxu0 %v11017_v33  ;;  %v3405_v13 = vld [vmem:[#allocation2 + $0x1cf] sm:$0xff] }
  0xcd   : > { %9728 = vmatprep.subr.bf16.mxu1 %v11018_v37 }
  0xce   : > { %9425 = vmatmul.mubr.bf16.gmra.mrb[4].mxu0 %v11707_v62  ;;  %v11023_v62 = vld [vmem:[%s12901_s1 + $0x1a8] sm:$0xff]  }
  0xcf   : > { %9713 = vmatmul.mubr.bf16.gmra.mrb[4].mxu1 %v11710_v3  ;;  %9441 = vmatpush3.bf16.msra.mxu0 %v11017_v33  ;;  %v11024_v3 = vld [vmem:[%s12901_s1 + $0x1a8] sm:$0xff]   ;;  %v1576_v33 = vpack.c.bf16 %v1564_v1, %v1563_v17  ;;  %v3612_v17 = vld [vmem:[#allocation2 + $0x230] sm:$0xff] }
  0xd0   : > { %9729 = vmatpush3.bf16.msra.mxu1 %v11018_v37  ;;  %9442 = vmatprep.subr.bf16.mxu0 %v11019_v41  ;;  %v11035_v37 = vld [vmem:[%s12901_s1 + $0x1d8] sm:$0xff]   ;;  %v11058_v1 = vld [vmem:[%s12901_s1 + $0x230] sm:$0xff]  }
  0xd1   : > { %9730 = vmatprep.subr.bf16.mxu1 %v11020_v45  ;;  %9428 = vmatprep.mubr.bf16.mxu0 %v11728_v14  ;;  %v1369_v14 = vld [vmem:[#allocation2 + $0x111] sm:$0xff] }
  0xd2   : > { %9716 = vmatprep.mubr.bf16.mxu1 %v11733_v19  ;;  %v11025_v19 = vld [vmem:[%s12901_s1 + $0x1b0] sm:$0xff]   ;;  %v11979_v40 = vpack.c.bf16 %v1369_v14, %v1368_v18  ;;  %v11037_v18 = vld [vmem:[%s12901_s1 + $0x1e0] sm:$0xff]  }
  0xd3   : > { %9443 = vmatpush3.bf16.msra.mxu0 %v11019_v41  ;;  %v3415_v41 = vpack.c.bf16 %v3403_v10, %v3402_v23  ;;  %v3406_v14 = vld [vmem:[#allocation2 + $0x1e7] sm:$0xff]  ;;  %v3799_v23 = vld [vmem:[#allocation2 + $0x151] sm:$0xff] }
  0xd4   : > { %9731 = vmatpush3.bf16.msra.mxu1 %v11020_v45  ;;  %9444 = vmatprep.subr.bf16.mxu0 %v11021_v55  ;;  %v11036_v45 = vld [vmem:[%s12901_s1 + $0x1d8] sm:$0xff]  }
  0xd5   : > { %9732 = vmatprep.subr.bf16.mxu1 %v11022_v58 }
  0xd6   : > { %9429 = vmatmul.mubr.bf16.gmra.mrb[8].mxu0 %v11741_v24  ;;  %v3396_v24 = vld [vmem:[#allocation2 + $0x147] sm:$0xff] }
  0xd7   : > { %9717 = vmatmul.mubr.bf16.gmra.mrb[8].mxu1 %v11744_v25  ;;  %9445 = vmatpush3.bf16.msra.mxu0 %v11021_v55  ;;  %v11027_v25 = vld [vmem:[%s12901_s1 + $0x1b8] sm:$0xff]   ;;  %v1577_v55 = vpack.c.bf16 %v1566_v21, %v1565_v20 }
  0xd8   : > { %9733 = vmatpush3.bf16.msra.mxu1 %v11022_v58  ;;  %9446 = vmatprep.subr.bf16.mxu0 %v11023_v62  ;;  %v1567_v58 = vld [vmem:[#allocation2 + $0xe7] sm:$0xff]  ;;  %v11060_v20 = vld [vmem:[%s12901_s1 + $0x238] sm:$0xff]  }
  0xd9   : > { %9734 = vmatprep.subr.bf16.mxu1 %v11024_v3  ;;  %9432 = vmatprep.mubr.bf16.mxu0 %v11755_v34  ;;  %v1573_v34 = vpack.c.bf16 %v1558_v32, %v1557_v30  ;;  %v11039_v32 = vld [vmem:[%s12901_s1 + $0x1e8] sm:$0xff]  }
  0xda   : > { %9720 = vmatprep.mubr.bf16.mxu1 %v11757_v35  ;;  %v3412_v35 = vpack.c.bf16 %v3397_v38, %v3396_v24  ;;  %v11040_v38 = vld [vmem:[%s12901_s1 + $0x1e8] sm:$0xff]  }
  0xdb   : > { %9447 = vmatpush3.bf16.msra.mxu0 %v11023_v62  ;;  %v1568_v62 = vld [vmem:[#allocation2 + $0xef] sm:$0xff] }
  0xdc   : > { %9735 = vmatpush3.bf16.msra.mxu1 %v11024_v3  ;;  %9448 = vmatprep.subr.bf16.mxu0 %v11025_v19  ;;  %v3416_v3 = vpack.c.bf16 %v3405_v13, %v3404_v12  ;;  %v1578_v30 = vpack.c.bf16 %v1568_v62, %v1567_v58  ;;  %v1963_v12 = vld [vmem:[#allocation2 + $0x69] sm:$0xff]  ;;  %v3803_v62 = vld [vmem:[#allocation2 + $0x191] sm:$0xff] }
  0xdd   : > { %9736 = vmatprep.subr.bf16.mxu1 %v11026_v29  ;;  %v3802_v58 = vld [vmem:[#allocation2 + $0x189] sm:$0xff] }
  0xde   : > { %9433 = vmatmul.mubr.bf16.gmra.mrb[12].mxu0 %v11979_v40 }
  0xdf   : > { %9721 = vmatmul.mubr.bf16.gmra.mrb[12].mxu1 %v11984_v42  ;;  %9449 = vmatpush3.bf16.msra.mxu0 %v11025_v19  ;;  %v3407_v19 = vld [vmem:[#allocation2 + $0x1ef] sm:$0xff] }
  0xe0   : > { %9737 = vmatpush3.bf16.msra.mxu1 %v11026_v29  ;;  %9450 = vmatprep.subr.bf16.mxu0 %v11027_v25  ;;  %v1570_v29 = vld [vmem:[#allocation2 + $0x10f] sm:$0xff]  ;;  %v3417_v24 = vpack.c.bf16 %v3407_v19, %v3406_v14 }
  0xe1   : > { %9738 = vmatprep.subr.bf16.mxu1 %v11028_v46  ;;  %9452 = vmatprep.mubr.bf16.mxu0 %v1573_v34  ;;  %v1572_v34 = vld [vmem:[#allocation2 + $0x12f] sm:$0xff] }
  0xe2   : > { %9740 = vmatprep.mubr.bf16.mxu1 %v3412_v35  ;;  %v11042_v35 = vld [vmem:[%s12901_s1 + $0x1f0] sm:$0xff]   ;;  %v11062_v19 = vld [vmem:[%s12903_s3 + $0x48] sm:$0xff]  }
  0xe3   : > { %9451 = vmatpush3.bf16.msra.mxu0 %v11027_v25  ;;  %v1579_v25 = vpack.c.bf16 %v1570_v29, %v1569_v2  ;;  %v1967_v2 = vld [vmem:[#allocation2 + $0xa9] sm:$0xff]  ;;  %v1968_v29 = vld [vmem:[#allocation2 + $0xb1] sm:$0xff] }
  0xe4   : > { %9739 = vmatpush3.bf16.msra.mxu1 %v11028_v46  ;;  %9468 = vmatprep.subr.bf16.mxu0 %v11029_v36  ;;  %v1571_v46 = vld [vmem:[#allocation2 + $0x127] sm:$0xff] }
  0xe5   : > { %9756 = vmatprep.subr.bf16.mxu1 %v11030_v53 }
  0xe6   : > { %9453 = vmatmul.mubr.bf16.vlgmr.msra.gmra.mrb[0].mxu0 %v1574_v51  ;;  %v3609_v51 = vld [vmem:[#allocation2 + $0x208] sm:$0xff] }
  0xe7   : > { %9741 = vmatmul.mubr.bf16.vlgmr.msra.gmra.mrb[0].mxu1 %v3413_v56  ;;  %9469 = vmatpush3.bf16.msra.mxu0 %v11029_v36  ;;  %v1580_v36 = vpack.c.bf16 %v1572_v34, %v1571_v46  ;;  %v1773_v56 = vld [vmem:[#allocation2 + $0x128] sm:$0xff]  ;;  %v3807_v46 = vld [vmem:[#allocation2 + $0x1d1] sm:$0xff] }
  0xe8   : > { %9757 = vmatpush3.bf16.msra.mxu1 %v11030_v53  ;;  %9470 = vmatprep.subr.bf16.mxu0 %v11031_v5  ;;  %v3419_v53 = vpack.c.bf16 %v11205_v52, %v3410_v31  ;;  %v11063_v34 = vld [vmem:[%s12903_s3 + $0x50] sm:$0xff]  }
  0xe9   : > { %9758 = vmatprep.subr.bf16.mxu1 %v11032_v15  ;;  %9456 = vmatprep.mubr.bf16.mxu0 %v1575_v59  ;;  %v3611_v59 = vld [vmem:[#allocation2 + $0x228] sm:$0xff] }
  0xea   : > { %9744 = vmatprep.mubr.bf16.mxu1 %v3414_v4  ;;  %v1961_v4 = vld [vmem:[#allocation2 + $0x49] sm:$0xff] }
  0xeb   : > { %9471 = vmatpush3.bf16.msra.mxu0 %v11031_v5  ;;  %v3610_v5 = vld [vmem:[#allocation2 + $0x210] sm:$0xff] }
  0xec   : > { %9759 = vmatpush3.bf16.msra.mxu1 %v11032_v15  ;;  %9472 = vmatprep.subr.bf16.mxu0 %v11033_v7  ;;  %v1774_v15 = vld [vmem:[#allocation2 + $0x130] sm:$0xff] }
  0xed   : > { %9760 = vmatprep.subr.bf16.mxu1 %v11034_v16  ;;  %v1782_v10 = vpack.c.bf16 %v1774_v15, %v1773_v56  ;;  %v1971_v52 = vld [vmem:[#allocation2 + $0xe9] sm:$0xff] }
  0xee   : > { %9457 = vmatmul.mubr.bf16.gmra.mrb[4].mxu0 %v1576_v33  ;;  %v3800_v33 = vld [vmem:[#allocation2 + $0x169] sm:$0xff] }
  0xef   : > { %9745 = vmatmul.mubr.bf16.gmra.mrb[4].mxu1 %v3415_v41  ;;  %9473 = vmatpush3.bf16.msra.mxu0 %v11033_v7  ;;  %v1962_v7 = vld [vmem:[#allocation2 + $0x51] sm:$0xff]  ;;  %v1965_v41 = vld [vmem:[#allocation2 + $0x89] sm:$0xff] }
  0xf0   : > { %9761 = vmatpush3.bf16.msra.mxu1 %v11034_v16  ;;  %9474 = vmatprep.subr.bf16.mxu0 %v11035_v37  ;;  %v3620_v16 = vpack.c.bf16 %v3612_v17, %v3611_v59  ;;  %v1977_v21 = vpack.c.bf16 %v1962_v7, %v1961_v4  ;;  %v4096_v56 = vld [vmem:[#allocation3 + $0x10] sm:$0xff]  ;;  %v11074_v59 = vld [vmem:[%s12903_s3 + $0x58] sm:$0xff]   ;;  %v11076_v17 = vld [vmem:[%s12903_s3 + $0x60] sm:$0xff]  }
  0xf1   : > { %9762 = vmatprep.subr.bf16.mxu1 %v11036_v45  ;;  %9460 = vmatprep.mubr.bf16.mxu0 %v1577_v55  ;;  %v11061_v55 = vld [vmem:[%s12903_s3 + $0x40] sm:$0xff]   ;;  %v11080_v4 = vld [vmem:[%s12903_s3 + $0x70] sm:$0xff]   ;;  %v11082_v7 = vld [vmem:[%s12903_s3 + $0x78] sm:$0xff]  }
  0xf2   : > { %9748 = vmatprep.mubr.bf16.mxu1 %v3416_v3 }
  0xf3   : > { %9475 = vmatpush3.bf16.msra.mxu0 %v11035_v37  ;;  %v3801_v37 = vld [vmem:[#allocation2 + $0x171] sm:$0xff] }
  0xf4   : > { %9763 = vmatpush3.bf16.msra.mxu1 %v11036_v45  ;;  %9476 = vmatprep.subr.bf16.mxu0 %v11037_v18  ;;  %v1966_v45 = vld [vmem:[#allocation2 + $0x91] sm:$0xff] }
  0xf5   : > { %9764 = vmatprep.subr.bf16.mxu1 %v11038_v22  ;;  %v1979_v14 = vpack.c.bf16 %v1966_v45, %v1965_v41 }
  0xf6   : > { %9461 = vmatmul.mubr.bf16.gmra.mrb[8].mxu0 %v1578_v30  ;;  %v3804_v30 = vld [vmem:[#allocation2 + $0x1a9] sm:$0xff] }
  0xf7   : > { %9749 = vmatmul.mubr.bf16.gmra.mrb[8].mxu1 %v3417_v24  ;;  %9477 = vmatpush3.bf16.msra.mxu0 %v11037_v18  ;;  %v3815_v18 = vpack.c.bf16 %v3801_v37, %v3800_v33  ;;  %v1969_v24 = vld [vmem:[#allocation2 + $0xc9] sm:$0xff] }
  0xf8   : > { %9765 = vmatpush3.bf16.msra.mxu1 %v11038_v22  ;;  %9478 = vmatprep.subr.bf16.mxu0 %v11039_v32  ;;  %v3816_v22 = vpack.c.bf16 %v3803_v62, %v3802_v58 }
  0xf9   : > { %9766 = vmatprep.subr.bf16.mxu1 %v11040_v38  ;;  %9464 = vmatprep.mubr.bf16.mxu0 %v1579_v25  ;;  %v3806_v25 = vld [vmem:[#allocation2 + $0x1c9] sm:$0xff] }
  0xfa   : > { %9752 = vmatprep.mubr.bf16.mxu1 %v11823_v54  ;;  %v11045_v54 = vld [vmem:[%s12901_s1 + $0x200] sm:$0xff]  }
  0xfb   : > { %9479 = vmatpush3.bf16.msra.mxu0 %v11039_v32  ;;  %v3805_v32 = vld [vmem:[#allocation2 + $0x1b1] sm:$0xff] }
  0xfc   : > { %9767 = vmatpush3.bf16.msra.mxu1 %v11040_v38  ;;  %9480 = vmatprep.subr.bf16.mxu0 %v11041_v47  ;;  %v1970_v38 = vld [vmem:[#allocation2 + $0xd1] sm:$0xff]  ;;  %v3817_v31 = vpack.c.bf16 %v3805_v32, %v3804_v30 }
  0xfd   : > { %9768 = vmatprep.subr.bf16.mxu1 %v11042_v35 }
  0xfe   : > { %9465 = vmatmul.mubr.bf16.gmra.mrb[12].mxu0 %v1580_v36  ;;  %v11064_v36 = vld [vmem:[%s12903_s3 + $0x58] sm:$0xff]  }
  0xff   : > { %9753 = vmatmul.mubr.bf16.gmra.mrb[12].mxu1 %v3419_v53  ;;  %9481 = vmatpush3.bf16.msra.mxu0 %v11041_v47  ;;  %v1980_v47 = vpack.c.bf16 %v1968_v29, %v1967_v2  ;;  %v1972_v53 = vld [vmem:[#allocation2 + $0xf1] sm:$0xff] }
 0x100   : > { %9769 = vmatpush3.bf16.msra.mxu1 %v11042_v35  ;;  %9482 = vmatprep.subr.bf16.mxu0 %v11043_v39  ;;  %v1981_v35 = vpack.c.bf16 %v1970_v38, %v1969_v24 }
 0x101   : > { %9770 = vmatprep.subr.bf16.mxu1 %v11044_v61  ;;  %9484 = vmatprep.mubr.bf16.mxu0 %v11839_v9  ;;  %v11049_v9 = vld [vmem:[%s12901_s1 + $0x210] sm:$0xff]  }
 0x102   : > { %9772 = vmatprep.mubr.bf16.mxu1 %v11841_v11  ;;  %v11050_v11 = vld [vmem:[%s12901_s1 + $0x210] sm:$0xff]  }
 0x103   : > { %9483 = vmatpush3.bf16.msra.mxu0 %v11043_v39  ;;  %v3818_v39 = vpack.c.bf16 %v3807_v46, %v3806_v25  ;;  %v11073_v46 = vld [vmem:[%s12903_s3 + $0x8] sm:$0xff]  }
 0x104   : > { %9771 = vmatpush3.bf16.msra.mxu1 %v11044_v61  ;;  %9500 = vmatprep.subr.bf16.mxu0 %v11045_v54  ;;  %v3808_v61 = vld [vmem:[#allocation2 + $0x1e9] sm:$0xff] }
 0x105   : > { %9788 = vmatprep.subr.bf16.mxu1 %v11046_v0 }
 0x106   : > { %9485 = vmatmul.mubr.bf16.vlgmr.msra.gmra.mrb[0].mxu0 %v11849_v26  ;;  %v11051_v26 = vld [vmem:[%s12901_s1 + $0x218] sm:$0xff]  }
 0x107   : > { %9773 = vmatmul.mubr.bf16.vlgmr.msra.gmra.mrb[0].mxu1 %v11852_v27  ;;  %9501 = vmatpush3.bf16.msra.mxu0 %v11045_v54  ;;  %v11052_v27 = vld [vmem:[%s12901_s1 + $0x218] sm:$0xff]  }
 0x108   : > { %9789 = vmatpush3.bf16.msra.mxu1 %v11046_v0  ;;  %9502 = vmatprep.subr.bf16.mxu0 %v11047_v49  ;;  %v3809_v54 = vld [vmem:[#allocation2 + $0x1f1] sm:$0xff]  ;;  %v1982_v0 = vpack.c.bf16 %v1972_v53, %v1971_v52 }
 0x109   : > { %9790 = vmatprep.subr.bf16.mxu1 %v11048_v50  ;;  %9488 = vmatprep.mubr.bf16.mxu0 %v11863_v43  ;;  %v11053_v43 = vld [vmem:[%s12901_s1 + $0x220] sm:$0xff]  }
 0x10a   : > { %9776 = vmatprep.mubr.bf16.mxu1 %v11865_v28  ;;  %v11054_v28 = vld [vmem:[%s12901_s1 + $0x220] sm:$0xff]  }
 0x10b   : > { %9503 = vmatpush3.bf16.msra.mxu0 %v11047_v49  ;;  %v3819_v49 = vpack.c.bf16 %v3809_v54, %v3808_v61 }
 0x10c   : > { %9791 = vmatpush3.bf16.msra.mxu1 %v11048_v50  ;;  %9504 = vmatprep.subr.bf16.mxu0 %v11049_v9  ;;  %v1975_v50 = vld [vmem:[#allocation2 + $0x129] sm:$0xff] }
 0x10d   : > { %9792 = vmatprep.subr.bf16.mxu1 %v11050_v11 }
 0x10e   : > { %9489 = vmatmul.mubr.bf16.gmra.mrb[4].mxu0 %v11873_v44  ;;  %v11055_v44 = vld [vmem:[%s12901_s1 + $0x228] sm:$0xff]  }
 0x10f   : > { %9777 = vmatmul.mubr.bf16.gmra.mrb[4].mxu1 %v11876_v48  ;;  %9505 = vmatpush3.bf16.msra.mxu0 %v11049_v9  ;;  %v11056_v48 = vld [vmem:[%s12901_s1 + $0x228] sm:$0xff]   ;;  %v1976_v9 = vld [vmem:[#allocation2 + $0x131] sm:$0xff] }
 0x110   : > { %9793 = vmatpush3.bf16.msra.mxu1 %v11050_v11  ;;  %9506 = vmatprep.subr.bf16.mxu0 %v11051_v26  ;;  %v3812_v11 = vld [vmem:[#allocation2 + $0x229] sm:$0xff] }
 0x111   : > { %9794 = vmatprep.subr.bf16.mxu1 %v11052_v27  ;;  %9492 = vmatprep.mubr.bf16.mxu0 %v11887_v6  ;;  %v3619_v6 = vpack.c.bf16 %v3610_v5, %v3609_v51  ;;  %v11068_v51 = vld [vmem:[%s12903_s3 + $0x40] sm:$0xff]   ;;  %v11069_v5 = vld [vmem:[%s12903_s3 + $0x78] sm:$0xff]  }
 0x112   : > { %9780 = vmatprep.mubr.bf16.mxu1 %v11889_v57  ;;  %v11057_v57 = vld [vmem:[%s12901_s1 + $0x230] sm:$0xff]  }
 0x113   : > { %9507 = vmatpush3.bf16.msra.mxu0 %v11051_v26  ;;  %v3813_v26 = vld [vmem:[#allocation2 + $0x231] sm:$0xff] }
 0x114   : > { %9795 = vmatpush3.bf16.msra.mxu1 %v11052_v27  ;;  %9508 = vmatprep.subr.bf16.mxu0 %v11053_v43  ;;  %v1984_v27 = vpack.c.bf16 %v1976_v9, %v1975_v50 }
 0x115   : > { %9796 = vmatprep.subr.bf16.mxu1 %v11054_v28 }
 0x116   : > { %9493 = vmatmul.mubr.bf16.gmra.mrb[8].mxu0 %v11897_v60  ;;  %v3798_v60 = vld [vmem:[#allocation2 + $0x149] sm:$0xff] }
 0x117   : > { %9781 = vmatmul.mubr.bf16.gmra.mrb[8].mxu1 %v11900_v63  ;;  %9509 = vmatpush3.bf16.msra.mxu0 %v11053_v43  ;;  %v11059_v63 = vld [vmem:[%s12901_s1 + $0x238] sm:$0xff]   ;;  %v3814_v13 = vpack.c.bf16 %v3799_v23, %v3798_v60  ;;  %v3821_v43 = vpack.c.bf16 %v3813_v26, %v3812_v11  ;;  %v12160_v60 = vld [vmem:[%s12903_s3] sm:$0xff]  }
 0x118   : > { %9797 = vmatpush3.bf16.msra.mxu1 %v11054_v28  ;;  %9510 = vmatprep.subr.bf16.mxu0 %v11055_v44  ;;  %v11065_v28 = vld [vmem:[%s12903_s3 + $0x60] sm:$0xff]  }
 0x119   : > { %9798 = vmatprep.subr.bf16.mxu1 %v11056_v48  ;;  %9496 = vmatprep.mubr.bf16.mxu0 %v11911_v8  ;;  %v1964_v8 = vld [vmem:[#allocation2 + $0x71] sm:$0xff]  ;;  %v12166_v23 = vld [vmem:[%s12902_s2] ss:$0 sm:$0xff] }
 0x11a   : > { %9784 = vmatprep.mubr.bf16.mxu1 %v3619_v6  ;;  %v1978_v3 = vpack.c.bf16 %v1964_v8, %v1963_v12  ;;  %v12136_v6 = vld [vmem:[%s12903_s3] sm:$0xff]  }
 0x11b   : > { %9511 = vmatpush3.bf16.msra.mxu0 %v11055_v44  ;;  %v11070_v44 = vld [vmem:[%s12903_s3 + $0x48] sm:$0xff]  }
 0x11c   : > { %9799 = vmatpush3.bf16.msra.mxu1 %v11056_v48  ;;  %9512 = vmatprep.subr.bf16.mxu0 %v11057_v57  ;;  %v4095_v48 = vld [vmem:[#allocation3 + $0x8] sm:$0xff] }
 0x11d   : > { %9800 = vmatprep.subr.bf16.mxu1 %v11058_v1  ;;  %v4111_v15 = vpack.c.bf16 %v4096_v56, %v4095_v48 }
 0x11e   : > { %9497 = vmatmul.mubr.bf16.gmra.mrb[12].mxu0 %v1782_v10 }
 0x11f   : > { %9785 = vmatmul.mubr.bf16.gmra.mrb[12].mxu1 %v3620_v16  ;;  %9513 = vmatpush3.bf16.msra.mxu0 %v11057_v57  ;;  %v11072_v57 = vld [vmem:[%s12903_s3 + $0x50] sm:$0xff]  }
 0x120   : > { %9801 = vmatpush3.bf16.msra.mxu1 %v11058_v1  ;;  %9514 = vmatprep.subr.bf16.mxu0 %v11059_v63  ;;  %v11078_v1 = vld [vmem:[%s12903_s3 + $0x68] sm:$0xff]  }
 0x121   : > { %9802 = vmatprep.subr.bf16.mxu1 %v11060_v20  ;;  %9516 = vmatprep.mubr.bf16.mxu0 %v1977_v21 }
 0x122   : > { %9804 = vmatprep.mubr.bf16.mxu1 %v3814_v13 }
 0x123   : > { %9515 = vmatpush3.bf16.msra.mxu0 %v11059_v63 }
 0x124   : > { %9803 = vmatpush3.bf16.msra.mxu1 %v11060_v20  ;;  %9820 = vmatprep.subr.bf16.mxu0 %v11061_v55 }
 0x125   : > { %10108 = vmatprep.subr.bf16.mxu1 %v11068_v51 }
 0x126   : > { %9517 = vmatmul.mubr.bf16.vlgmr.msra.gmra.mrb[0].mxu0 %v1978_v3 }
 0x127   : > { %9805 = vmatmul.mubr.bf16.vlgmr.msra.gmra.mrb[0].mxu1 %v3815_v18  ;;  %9520 = vmatprep.mubr.bf16.mxu0 %v1979_v14 }
 0x128   : > { %9808 = vmatprep.mubr.bf16.mxu1 %v3816_v22  ;;  %9821 = vmatpush3.bf16.msra.mxu0 %v11061_v55 }
 0x129   : > { %9822 = vmatprep.subr.bf16.mxu0 %v11062_v19  ;;  %10109 = vmatpush3.bf16.msra.mxu1 %v11068_v51 }
 0x12a   : > { %10110 = vmatprep.subr.bf16.mxu1 %v11070_v44 }
 0x12c   : > { %9823 = vmatpush3.bf16.msra.mxu0 %v11062_v19 }
 0x12d   : > { %9824 = vmatprep.subr.bf16.mxu0 %v11063_v34  ;;  %10111 = vmatpush3.bf16.msra.mxu1 %v11070_v44 }
 0x12e   : > { %9521 = vmatmul.mubr.bf16.gmra.mrb[4].mxu0 %v1980_v47  ;;  %10112 = vmatprep.subr.bf16.mxu1 %v11072_v57 }
 0x12f   : > { %9809 = vmatmul.mubr.bf16.gmra.mrb[4].mxu1 %v3817_v31  ;;  %9524 = vmatprep.mubr.bf16.mxu0 %v1981_v35 }
 0x130   : > { %9812 = vmatprep.mubr.bf16.mxu1 %v3818_v39  ;;  %9825 = vmatpush3.bf16.msra.mxu0 %v11063_v34 }
 0x131   : > { %9826 = vmatprep.subr.bf16.mxu0 %v11064_v36  ;;  %10113 = vmatpush3.bf16.msra.mxu1 %v11072_v57 }
 0x132   : > { %10114 = vmatprep.subr.bf16.mxu1 %v11074_v59 }
 0x134   : > { %9827 = vmatpush3.bf16.msra.mxu0 %v11064_v36 }
 0x135   : > { %9828 = vmatprep.subr.bf16.mxu0 %v11065_v28  ;;  %10115 = vmatpush3.bf16.msra.mxu1 %v11074_v59  ;;  %v11077_v59 = vld [vmem:[%s12903_s3 + $0x18] sm:$0xff]  }
 0x136   : > { %9525 = vmatmul.mubr.bf16.gmra.mrb[8].mxu0 %v1982_v0  ;;  %10116 = vmatprep.subr.bf16.mxu1 %v11076_v17 }
 0x137   : > { %9813 = vmatmul.mubr.bf16.gmra.mrb[8].mxu1 %v3819_v49  ;;  %9528 = vmatprep.mubr.bf16.mxu0 %v11979_v40  ;;  %v11066_v40 = vld [vmem:[%s12903_s3 + $0x68] sm:$0xff]  }
 0x138   : > { %9816 = vmatprep.mubr.bf16.mxu1 %v11984_v42  ;;  %9829 = vmatpush3.bf16.msra.mxu0 %v11065_v28  ;;  %v11067_v42 = vld [vmem:[%s12903_s3 + $0x70] sm:$0xff]  }
 0x139   : > { %9830 = vmatprep.subr.bf16.mxu0 %v11066_v40  ;;  %10117 = vmatpush3.bf16.msra.mxu1 %v11076_v17 }
 0x13a   : > { %10118 = vmatprep.subr.bf16.mxu1 %v11078_v1 }
 0x13c   : > { %9831 = vmatpush3.bf16.msra.mxu0 %v11066_v40  ;;  %v11075_v40 = vld [vmem:[%s12903_s3 + $0x10] sm:$0xff]  }
 0x13d   : > { %9832 = vmatprep.subr.bf16.mxu0 %v11067_v42  ;;  %10119 = vmatpush3.bf16.msra.mxu1 %v11078_v1 }
 0x13e   : > { %9529 = vmatmul.mubr.bf16.gmra.mrb[12].mxu0 %v1984_v27  ;;  %10120 = vmatprep.subr.bf16.mxu1 %v11080_v4 }
 0x13f   : > { %9817 = vmatmul.mubr.bf16.gmra.mrb[12].mxu1 %v3821_v43  ;;  %9836 = vmatprep.mubr.bf16.mxu0 %v4111_v15 }
 0x140   : > { %9833 = vmatpush3.bf16.msra.mxu0 %v11067_v42 }
 0x141   : > { %9834 = vmatprep.subr.bf16.mxu0 %v11069_v5  ;;  %10121 = vmatpush3.bf16.msra.mxu1 %v11080_v4 }
 0x142   : > { %10122 = vmatprep.subr.bf16.mxu1 %v11082_v7 }
 0x144   : > { %9835 = vmatpush3.bf16.msra.mxu0 %v11069_v5 }
 0x145   : > { %9852 = vmatprep.subr.bf16.mxu0 %v12136_v6  ;;  %10123 = vmatpush3.bf16.msra.mxu1 %v11082_v7 }
 0x146   : > { %10140 = vmatprep.subr.bf16.mxu1 %v12160_v60 }
 0x1f9   : > { %v9518_v10 = vpop.f32.mrb[0].mxu0 }
 0x1fa   : > { %v2172_v63 = vadd.f32 %v9518_v10, %v12166_v23  ;;  %v9806_v16 = vpop.f32.mrb[0].mxu1  ;;  %v2084_v20 = vpop.f32.mrb[1].mxu0 }
 0x1fb   : > { %v4008_v21 = vadd.f32 %v9806_v16, %v12166_v23  ;;  %v2170_v12 = vadd.f32 %v12166_v23, %v2084_v20  ;;  %v3920_v8 = vpop.f32.mrb[1].mxu1  ;;  %v9519_v13 = vpop.f32.mrb[2].mxu0 }
 0x1fc   : > { %v2188_v33 = vmax.f32 %v2172_v63, 0.0  ;;  %v4006_v37 = vadd.f32 %v12166_v23, %v3920_v8  ;;  %v2173_v41 = vadd.f32 %v9519_v13, %v12166_v23  ;;  %v9807_v45 = vpop.f32.mrb[2].mxu1  ;;  %v2087_v55 = vpop.f32.mrb[3].mxu0 }
 0x1fd   : > { %v4024_v58 = vmax.f32 %v4008_v21, 0.0  ;;  %v2186_v62 = vmax.f32 %v2170_v12, 0.0  ;;  %v4009_v3 = vadd.f32 %v9807_v45, %v12166_v23  ;;  %v2171_v18 = vadd.f32 %v12166_v23, %v2087_v55  ;;  %v3923_v14 = vpop.f32.mrb[3].mxu1 }
 0x1fe   : > { %2205 = vst [vmem:[#allocation3 + $0x48] sm:$0xff] %v2188_v33  ;;  %v4022_v19 = vmax.f32 %v4006_v37, 0.0  ;;  %v2189_v22 = vmax.f32 %v2173_v41, 0.0  ;;  %v4007_v2 = vadd.f32 %v12166_v23, %v3923_v14 }
 0x1ff   : > { %4041 = vst [vmem:[#allocation3 + $0x148] sm:$0xff] %v4024_v58  ;;  %2203 = vst [vmem:[#allocation3 + $0x28] sm:$0xff] %v2186_v62  ;;  %v4025_v29 = vmax.f32 %v4009_v3, 0.0  ;;  %v2187_v30 = vmax.f32 %v2171_v18, 0.0  ;;  %v11079_v3 = vld [vmem:[%s12903_s3 + $0x20] sm:$0xff]  }
 0x200   : > { %4039 = vst [vmem:[#allocation3 + $0x128] sm:$0xff] %v4022_v19  ;;  %2206 = vst [vmem:[#allocation3 + $0x50] sm:$0xff] %v2189_v22  ;;  %v4023_v32 = vmax.f32 %v4007_v2, 0.0  ;;  %v4113_v24 = vpack.c.bf16 %v2189_v22, %v2188_v33 }
 0x201   : > { %4042 = vst [vmem:[#allocation3 + $0x150] sm:$0xff] %v4025_v29  ;;  %2204 = vst [vmem:[#allocation3 + $0x30] sm:$0xff] %v2187_v30  ;;  %v9522_v38 = vpop.f32.mrb[4].mxu0  ;;  %v4112_v25 = vpack.c.bf16 %v2187_v30, %v2186_v62  ;;  %v12179_v34 = vpack.c.bf16 %v4025_v29, %v4024_v58 }
 0x202   : > { %4040 = vst [vmem:[#allocation3 + $0x130] sm:$0xff] %v4023_v32  ;;  %v2176_v47 = vadd.f32 %v9522_v38, %v12166_v23  ;;  %v9810_v31 = vpop.f32.mrb[4].mxu1  ;;  %v2100_v35 = vpop.f32.mrb[5].mxu0  ;;  %v12182_v36 = vpack.c.bf16 %v4023_v32, %v4022_v19  ;;  %v11081_v38 = vld [vmem:[%s12903_s3 + $0x28] sm:$0xff]  }
 0x203   : > { %v4012_v39 = vadd.f32 %v9810_v31, %v12166_v23  ;;  %v2174_v52 = vadd.f32 %v12166_v23, %v2100_v35  ;;  %v3936_v53 = vpop.f32.mrb[5].mxu1  ;;  %v9523_v61 = vpop.f32.mrb[6].mxu0  ;;  %9837 = vmatmul.mubr.bf16.vlgmr.msra.gmra.mrb[16].mxu0 %v4112_v25 }
 0x204   : > { %v2192_v54 = vmax.f32 %v2176_v47, 0.0  ;;  %v4010_v0 = vadd.f32 %v12166_v23, %v3936_v53  ;;  %v2177_v49 = vadd.f32 %v9523_v61, %v12166_v23  ;;  %v9811_v50 = vpop.f32.mrb[6].mxu1  ;;  %v2103_v9 = vpop.f32.mrb[7].mxu0  ;;  %9840 = vmatprep.mubr.bf16.mxu0 %v4113_v24  ;;  %9853 = vmatpush3.bf16.msra.mxu0 %v12136_v6 }
 0x205   : > { %v4028_v11 = vmax.f32 %v4012_v39, 0.0  ;;  %v2190_v26 = vmax.f32 %v2174_v52, 0.0  ;;  %v4013_v27 = vadd.f32 %v9811_v50, %v12166_v23  ;;  %v2175_v43 = vadd.f32 %v12166_v23, %v2103_v9  ;;  %v3939_v28 = vpop.f32.mrb[7].mxu1  ;;  %9854 = vmatprep.subr.bf16.mxu0 %v11073_v46 }
 0x206   : > { %2209 = vst [vmem:[#allocation3 + $0x88] sm:$0xff] %v2192_v54  ;;  %v4026_v42 = vmax.f32 %v4010_v0, 0.0  ;;  %v2193_v51 = vmax.f32 %v2177_v49, 0.0  ;;  %v4011_v5 = vadd.f32 %v12166_v23, %v3939_v28 }
 0x207   : > { %4045 = vst [vmem:[#allocation3 + $0x188] sm:$0xff] %v4028_v11  ;;  %2207 = vst [vmem:[#allocation3 + $0x68] sm:$0xff] %v2190_v26  ;;  %v4029_v44 = vmax.f32 %v4013_v27, 0.0  ;;  %v2191_v48 = vmax.f32 %v2175_v43, 0.0 }
 0x208   : > { %4043 = vst [vmem:[#allocation3 + $0x168] sm:$0xff] %v4026_v42  ;;  %2210 = vst [vmem:[#allocation3 + $0x90] sm:$0xff] %v2193_v51  ;;  %v4027_v56 = vmax.f32 %v4011_v5, 0.0  ;;  %9855 = vmatpush3.bf16.msra.mxu0 %v11073_v46  ;;  %v4115_v15 = vpack.c.bf16 %v2193_v51, %v2192_v54 }
 0x209   : > { %4046 = vst [vmem:[#allocation3 + $0x190] sm:$0xff] %v4029_v44  ;;  %2208 = vst [vmem:[#allocation3 + $0x70] sm:$0xff] %v2191_v48  ;;  %v9526_v6 = vpop.f32.mrb[8].mxu0  ;;  %v4114_v57 = vpack.c.bf16 %v2191_v48, %v2190_v26  ;;  %9856 = vmatprep.subr.bf16.mxu0 %v11075_v40  ;;  %v12198_v17 = vpack.c.bf16 %v4029_v44, %v4028_v11 }
 0x20a   : > { %4044 = vst [vmem:[#allocation3 + $0x170] sm:$0xff] %v4027_v56  ;;  %v2180_v1 = vadd.f32 %v9526_v6, %v12166_v23  ;;  %v9814_v4 = vpop.f32.mrb[8].mxu1  ;;  %v2116_v7 = vpop.f32.mrb[9].mxu0  ;;  %v12201_v10 = vpack.c.bf16 %v4027_v56, %v4026_v42  ;;  %v4055_v56 = vld [vmem:[#allocation3 + $0x7] sm:$0xff] }
 0x20b   : > { %v4016_v63 = vadd.f32 %v9814_v4, %v12166_v23  ;;  %v2178_v16 = vadd.f32 %v12166_v23, %v2116_v7  ;;  %v3952_v20 = vpop.f32.mrb[9].mxu1  ;;  %v9527_v21 = vpop.f32.mrb[10].mxu0  ;;  %9841 = vmatmul.mubr.bf16.gmra.mrb[20].mxu0 %v4114_v57 }
 0x20c   : > { %v2196_v12 = vmax.f32 %v2180_v1, 0.0  ;;  %v4014_v8 = vadd.f32 %v12166_v23, %v3952_v20  ;;  %v2181_v13 = vadd.f32 %v9527_v21, %v12166_v23  ;;  %v9815_v33 = vpop.f32.mrb[10].mxu1  ;;  %v2119_v37 = vpop.f32.mrb[11].mxu0  ;;  %9844 = vmatprep.mubr.bf16.mxu0 %v4115_v15  ;;  %9857 = vmatpush3.bf16.msra.mxu0 %v11075_v40  ;;  %v11083_v40 = vld [vmem:[%s12903_s3 + $0x30] sm:$0xff]  }
 0x20d   : > { %v4032_v41 = vmax.f32 %v4016_v63, 0.0  ;;  %v2194_v45 = vmax.f32 %v2178_v16, 0.0  ;;  %v4017_v55 = vadd.f32 %v9815_v33, %v12166_v23  ;;  %v2179_v58 = vadd.f32 %v12166_v23, %v2119_v37  ;;  %v3955_v62 = vpop.f32.mrb[11].mxu1  ;;  %9858 = vmatprep.subr.bf16.mxu0 %v11077_v59  ;;  %v11206_v1 = vld [vmem:[#allocation2 + $0xf] sm:$0xff]  ;;  %v11087_v63 = vld [vmem:[%s12903_s3 + $0x80] sm:$0xff]  }
 0x20e   : > { %2213 = vst [vmem:[#allocation3 + $0xc8] sm:$0xff] %v2196_v12  ;;  %v4030_v18 = vmax.f32 %v4014_v8, 0.0  ;;  %v2197_v14 = vmax.f32 %v2181_v13, 0.0  ;;  %v4015_v19 = vadd.f32 %v12166_v23, %v3955_v62  ;;  %v4071_v4 = vpack.c.bf16 %v11206_v1, %v4055_v56  ;;  %v4058_v16 = vld [vmem:[#allocation3 + $0x2f] sm:$0xff]  ;;  %v11090_v13 = vld [vmem:[%s12903_s3 + $0x18] sm:$0xff]   ;;  %v5921_v1 = vld [vmem:[#allocation3 + $0x187] sm:$0xff] }
 0x20f   : > { %4049 = vst [vmem:[#allocation3 + $0x1c8] sm:$0xff] %v4032_v41  ;;  %2211 = vst [vmem:[#allocation3 + $0xa8] sm:$0xff] %v2194_v45  ;;  %v4033_v22 = vmax.f32 %v4017_v55, 0.0  ;;  %v2195_v2 = vmax.f32 %v2179_v58, 0.0  ;;  %v11088_v20 = vld [vmem:[%s12903_s3 + $0x10] sm:$0xff]   ;;  %v11089_v8 = vld [vmem:[%s12903_s3 + $0x88] sm:$0xff]  }
 0x210   : > { %4047 = vst [vmem:[#allocation3 + $0x1a8] sm:$0xff] %v4030_v18  ;;  %2214 = vst [vmem:[#allocation3 + $0xd0] sm:$0xff] %v2197_v14  ;;  %v4031_v29 = vmax.f32 %v4015_v19, 0.0  ;;  %9859 = vmatpush3.bf16.msra.mxu0 %v11077_v59  ;;  %v4117_v30 = vpack.c.bf16 %v2197_v14, %v2196_v12  ;;  %v11085_v59 = vld [vmem:[%s12903_s3 + $0x38] sm:$0xff]   ;;  %v4060_v21 = vld [vmem:[#allocation3 + $0x4f] sm:$0xff] }
 0x211   : > { %4050 = vst [vmem:[#allocation3 + $0x1d0] sm:$0xff] %v4033_v22  ;;  %2212 = vst [vmem:[#allocation3 + $0xb0] sm:$0xff] %v2195_v2  ;;  %v9530_v32 = vpop.f32.mrb[12].mxu0  ;;  %v4116_v24 = vpack.c.bf16 %v2195_v2, %v2194_v45  ;;  %9860 = vmatprep.subr.bf16.mxu0 %v11079_v3  ;;  %v12216_v25 = vpack.c.bf16 %v4033_v22, %v4032_v41  ;;  %v11091_v33 = vld [vmem:[%s12903_s3 + $0x90] sm:$0xff]   ;;  %v11092_v41 = vld [vmem:[%s12903_s3 + $0x20] sm:$0xff]  }
 0x212   : > { %4048 = vst [vmem:[#allocation3 + $0x1b0] sm:$0xff] %v4031_v29  ;;  %v2184_v46 = vadd.f32 %v9530_v32, %v12166_v23  ;;  %v9818_v47 = vpop.f32.mrb[12].mxu1  ;;  %v2132_v31 = vpop.f32.mrb[13].mxu0  ;;  %v12219_v35 = vpack.c.bf16 %v4031_v29, %v4030_v18  ;;  %v4062_v37 = vld [vmem:[#allocation3 + $0x6f] sm:$0xff]  ;;  %v11093_v62 = vld [vmem:[%s12903_s3 + $0x98] sm:$0xff]   ;;  %v11095_v18 = vld [vmem:[%s12903_s3 + $0xa0] sm:$0xff]  }
 0x213   : > { %v4020_v39 = vadd.f32 %v9818_v47, %v12166_v23  ;;  %v2182_v52 = vadd.f32 %v12166_v23, %v2132_v31  ;;  %v3968_v53 = vpop.f32.mrb[13].mxu1  ;;  %v9531_v61 = vpop.f32.mrb[14].mxu0  ;;  %9845 = vmatmul.mubr.bf16.gmra.mrb[24].mxu0 %v4116_v24  ;;  %v4064_v45 = vld [vmem:[#allocation3 + $0x8f] sm:$0xff] }
 0x214   : > { %v2200_v54 = vmax.f32 %v2184_v46, 0.0  ;;  %v4018_v0 = vadd.f32 %v12166_v23, %v3968_v53  ;;  %v2185_v49 = vadd.f32 %v9531_v61, %v12166_v23  ;;  %v9819_v50 = vpop.f32.mrb[14].mxu1  ;;  %v2135_v9 = vpop.f32.mrb[15].mxu0  ;;  %9848 = vmatprep.mubr.bf16.mxu0 %v4117_v30  ;;  %9861 = vmatpush3.bf16.msra.mxu0 %v11079_v3  ;;  %v11094_v3 = vld [vmem:[%s12903_s3 + $0x28] sm:$0xff]   ;;  %v11096_v19 = vld [vmem:[%s12903_s3 + $0x30] sm:$0xff]   ;;  %v11098_v46 = vld [vmem:[%s12903_s3 + $0x38] sm:$0xff]  }
 0x215   : > { %v4036_v11 = vmax.f32 %v4020_v39, 0.0  ;;  %v2198_v26 = vmax.f32 %v2182_v52, 0.0  ;;  %v4021_v27 = vadd.f32 %v9819_v50, %v12166_v23  ;;  %v2183_v43 = vadd.f32 %v12166_v23, %v2135_v9  ;;  %v3971_v28 = vpop.f32.mrb[15].mxu1  ;;  %9862 = vmatprep.subr.bf16.mxu0 %v11081_v38  ;;  %v4067_v32 = vld [vmem:[#allocation3 + $0xc7] sm:$0xff]  ;;  %v11099_v31 = vld [vmem:[%s12903_s3 + $0xb0] sm:$0xff]  }
 0x216   : > { %2217 = vst [vmem:[#allocation3 + $0x108] sm:$0xff] %v2200_v54  ;;  %v4034_v42 = vmax.f32 %v4018_v0, 0.0  ;;  %v2201_v51 = vmax.f32 %v2185_v49, 0.0  ;;  %v4019_v5 = vadd.f32 %v12166_v23, %v3971_v28  ;;  %v11086_v23 = vld [vmem:[%s12903_s3 + $0x8] sm:$0xff]   ;;  %v11100_v39 = vld [vmem:[%s12903_s3 + $0x80] sm:$0xff]   ;;  %v4427_v0 = vld [vmem:[#allocation3 + $0x11] sm:$0xff] }
 0x217   : > { %4053 = vst [vmem:[#allocation3 + $0x208] sm:$0xff] %v4036_v11  ;;  %2215 = vst [vmem:[#allocation3 + $0xe8] sm:$0xff] %v2198_v26  ;;  %v4037_v44 = vmax.f32 %v4021_v27, 0.0  ;;  %v2199_v48 = vmax.f32 %v2183_v43, 0.0  ;;  %v4068_v22 = vld [vmem:[#allocation3 + $0xcf] sm:$0xff]  ;;  %v4065_v2 = vld [vmem:[#allocation3 + $0xa7] sm:$0xff] }
 0x218   : > { %4051 = vst [vmem:[#allocation3 + $0x1e8] sm:$0xff] %v4034_v42  ;;  %2218 = vst [vmem:[#allocation3 + $0x110] sm:$0xff] %v2201_v51  ;;  %v4035_v15 = vmax.f32 %v4019_v5, 0.0  ;;  %9863 = vmatpush3.bf16.msra.mxu0 %v11081_v38  ;;  %v5969_v6 = vpack.c.bf16 %v2201_v51, %v2200_v54  ;;  %v4066_v14 = vld [vmem:[#allocation3 + $0xaf] sm:$0xff]  ;;  %v12290_v24 = vpack.c.bf16 %v4068_v22, %v4067_v32  ;;  %v5915_v50 = vld [vmem:[#allocation3 + $0x127] sm:$0xff] }
 0x219   : > { %4054 = vst [vmem:[#allocation3 + $0x210] sm:$0xff] %v4037_v44  ;;  %2216 = vst [vmem:[#allocation3 + $0xf0] sm:$0xff] %v2199_v48  ;;  %v4118_v57 = vpack.c.bf16 %v2199_v48, %v2198_v26  ;;  %9864 = vmatprep.subr.bf16.mxu0 %v11083_v40  ;;  %v12288_v30 = vpack.c.bf16 %v4066_v14, %v4065_v2  ;;  %v5916_v52 = vld [vmem:[#allocation3 + $0x12f] sm:$0xff]  ;;  %v5917_v11 = vld [vmem:[#allocation3 + $0x147] sm:$0xff] }
 0x21a   : > { %4052 = vst [vmem:[#allocation3 + $0x1f0] sm:$0xff] %v4035_v15  ;;  %10124 = vmatprep.mubr.bf16.mxu1 %v5969_v6  ;;  %v12237_v7 = vpack.c.bf16 %v4035_v15, %v4034_v42  ;;  %v4426_v53 = vld [vmem:[#allocation3 + $0x9] sm:$0xff]  ;;  %v12312_v9 = vpack.c.bf16 %v5916_v52, %v5915_v50  ;;  %v11101_v26 = vld [vmem:[%s12903_s3 + $0xb8] sm:$0xff]   ;;  %v11111_v14 = vld [vmem:[%s12903_s3 + $0xe0] sm:$0xff]  }
 0x21b   : > { %9849 = vmatmul.mubr.bf16.gmra.mrb[28].mxu0 %v4118_v57  ;;  %10125 = vmatmul.mubr.bf16.vlgmr.msra.gmra.mrb[16].mxu1 %v12182_v36  ;;  %v4057_v36 = vld [vmem:[#allocation3 + $0x27] sm:$0xff]  ;;  %v5918_v54 = vld [vmem:[#allocation3 + $0x14f] sm:$0xff]  ;;  %v4442_v28 = vpack.c.bf16 %v4427_v0, %v4426_v53 }
 0x21c   : > { %9865 = vmatpush3.bf16.msra.mxu0 %v11083_v40  ;;  %10128 = vmatprep.mubr.bf16.mxu1 %v12179_v34  ;;  %v12248_v12 = vpack.c.bf16 %v4058_v16, %v4057_v36  ;;  %v11102_v27 = vld [vmem:[%s12903_s3 + $0x88] sm:$0xff]   ;;  %v12321_v43 = vpack.c.bf16 %v5918_v54, %v5917_v11  ;;  %v11103_v40 = vld [vmem:[%s12903_s3 + $0xc0] sm:$0xff]   ;;  %v4429_v51 = vld [vmem:[#allocation3 + $0x31] sm:$0xff] }
 0x21d   : > { %10141 = vmatpush3.bf16.msra.mxu1 %v12160_v60  ;;  %9866 = vmatprep.subr.bf16.mxu0 %v11085_v59  ;;  %v4059_v60 = vld [vmem:[#allocation3 + $0x47] sm:$0xff]  ;;  %v11104_v5 = vld [vmem:[%s12903_s3 + $0x90] sm:$0xff]   ;;  %v11114_v54 = vld [vmem:[%s12903_s3 + $0xb8] sm:$0xff]  }
 0x21e   : > { %10142 = vmatprep.subr.bf16.mxu1 %v11086_v23  ;;  %9868 = vmatprep.mubr.bf16.mxu0 %v4071_v4  ;;  %v12250_v34 = vpack.c.bf16 %v4060_v21, %v4059_v60  ;;  %v5913_v38 = vld [vmem:[#allocation3 + $0x107] sm:$0xff]  ;;  %v5920_v44 = vld [vmem:[#allocation3 + $0x16f] sm:$0xff] }
 0x21f   : > { %v5914_v29 = vld [vmem:[#allocation3 + $0x10f] sm:$0xff]  ;;  %v4069_v61 = vld [vmem:[#allocation3 + $0xe7] sm:$0xff] }
 0x220   : > { %9867 = vmatpush3.bf16.msra.mxu0 %v11085_v59  ;;  %v12300_v47 = vpack.c.bf16 %v5914_v29, %v5913_v38  ;;  %v4428_v42 = vld [vmem:[#allocation3 + $0x29] sm:$0xff]  ;;  %v4431_v56 = vld [vmem:[#allocation3 + $0x51] sm:$0xff]  ;;  %v11108_v36 = vld [vmem:[%s12903_s3 + $0xa0] sm:$0xff]  }
 0x221   : > { %10143 = vmatpush3.bf16.msra.mxu1 %v11086_v23  ;;  %9884 = vmatprep.subr.bf16.mxu0 %v11087_v63  ;;  %v4430_v48 = vld [vmem:[#allocation3 + $0x49] sm:$0xff]  ;;  %v12331_v6 = vpack.c.bf16 %v4429_v51, %v4428_v42  ;;  %v4433_v21 = vld [vmem:[#allocation3 + $0x71] sm:$0xff] }
 0x222   : > { %10144 = vmatprep.subr.bf16.mxu1 %v11088_v20  ;;  %v5922_v15 = vld [vmem:[#allocation3 + $0x18f] sm:$0xff]  ;;  %v5919_v57 = vld [vmem:[#allocation3 + $0x167] sm:$0xff]  ;;  %v12335_v23 = vpack.c.bf16 %v4431_v56, %v4430_v48 }
 0x223   : > { %9869 = vmatmul.mubr.bf16.vlgmr.msra.gmra.mrb[16].mxu0 %v12248_v12  ;;  %10129 = vmatmul.mubr.bf16.gmra.mrb[20].mxu1 %v12201_v10  ;;  %v4061_v10 = vld [vmem:[#allocation3 + $0x67] sm:$0xff]  ;;  %v12333_v59 = vpack.c.bf16 %v5920_v44, %v5919_v57  ;;  %v11107_v16 = vld [vmem:[%s12903_s3 + $0xd0] sm:$0xff]   ;;  %v11117_v44 = vld [vmem:[%s12903_s3 + $0xf8] sm:$0xff]  }
 0x224   : > { %9872 = vmatprep.mubr.bf16.mxu0 %v12250_v34  ;;  %9885 = vmatpush3.bf16.msra.mxu0 %v11087_v63  ;;  %v12268_v55 = vpack.c.bf16 %v4062_v37, %v4061_v10  ;;  %v11105_v4 = vld [vmem:[%s12903_s3 + $0xc8] sm:$0xff]   ;;  %v11106_v63 = vld [vmem:[%s12903_s3 + $0x98] sm:$0xff]   ;;  %v11112_v2 = vld [vmem:[%s12903_s3 + $0xb0] sm:$0xff]  }
 0x225   : > { %10132 = vmatprep.mubr.bf16.mxu1 %v12198_v17  ;;  %10145 = vmatpush3.bf16.msra.mxu1 %v11088_v20  ;;  %v4063_v17 = vld [vmem:[#allocation3 + $0x87] sm:$0xff]  ;;  %v5924_v60 = vld [vmem:[#allocation3 + $0x1af] sm:$0xff] }
 0x226   : > { %9886 = vmatprep.subr.bf16.mxu0 %v11089_v8  ;;  %10146 = vmatprep.subr.bf16.mxu1 %v11090_v13  ;;  %v12270_v58 = vpack.c.bf16 %v4064_v45, %v4063_v17  ;;  %v4432_v20 = vld [vmem:[#allocation3 + $0x69] sm:$0xff]  ;;  %v4437_v22 = vld [vmem:[#allocation3 + $0xb1] sm:$0xff] }
 0x227   : > { %v12355_v37 = vpack.c.bf16 %v4433_v21, %v4432_v20  ;;  %v5925_v17 = vld [vmem:[#allocation3 + $0x1c7] sm:$0xff]  ;;  %v5928_v29 = vld [vmem:[#allocation3 + $0x1ef] sm:$0xff] }
 0x228   : > { %9887 = vmatpush3.bf16.msra.mxu0 %v11089_v8  ;;  %v4434_v8 = vld [vmem:[#allocation3 + $0x89] sm:$0xff]  ;;  %v4439_v38 = vld [vmem:[#allocation3 + $0xd1] sm:$0xff] }
 0x229   : > { %10147 = vmatpush3.bf16.msra.mxu1 %v11090_v13  ;;  %9888 = vmatprep.subr.bf16.mxu0 %v11091_v33  ;;  %v4435_v13 = vld [vmem:[#allocation3 + $0x91] sm:$0xff]  ;;  %v4438_v32 = vld [vmem:[#allocation3 + $0xc9] sm:$0xff] }
 0x22a   : > { %10148 = vmatprep.subr.bf16.mxu1 %v11092_v41  ;;  %v12359_v10 = vpack.c.bf16 %v4435_v13, %v4434_v8  ;;  %v12383_v52 = vpack.c.bf16 %v4439_v38, %v4438_v32  ;;  %v11113_v53 = vld [vmem:[%s12903_s3 + $0xe8] sm:$0xff]   ;;  %v4441_v50 = vld [vmem:[#allocation3 + $0xf1] sm:$0xff]  ;;  %v11124_v13 = vld [vmem:[%s12903_s3 + $0xe0] sm:$0xff]  }
 0x22b   : > { %9873 = vmatmul.mubr.bf16.gmra.mrb[20].mxu0 %v12268_v55  ;;  %10133 = vmatmul.mubr.bf16.gmra.mrb[24].mxu1 %v12219_v35  ;;  %v4070_v35 = vld [vmem:[#allocation3 + $0xef] sm:$0xff] }
 0x22c   : > { %9876 = vmatprep.mubr.bf16.mxu0 %v12270_v58  ;;  %9889 = vmatpush3.bf16.msra.mxu0 %v11091_v33  ;;  %v12310_v49 = vpack.c.bf16 %v4070_v35, %v4069_v61  ;;  %v5926_v33 = vld [vmem:[#allocation3 + $0x1cf] sm:$0xff]  ;;  %v5927_v35 = vld [vmem:[#allocation3 + $0x1e7] sm:$0xff] }
 0x22d   : > { %10136 = vmatprep.mubr.bf16.mxu1 %v12216_v25  ;;  %10149 = vmatpush3.bf16.msra.mxu1 %v11092_v41  ;;  %v11097_v25 = vld [vmem:[%s12903_s3 + $0xa8] sm:$0xff]   ;;  %v11115_v11 = vld [vmem:[%s12903_s3 + $0xf0] sm:$0xff]  }
 0x22e   : > { %9890 = vmatprep.subr.bf16.mxu0 %v11093_v62  ;;  %10150 = vmatprep.subr.bf16.mxu1 %v11094_v3  ;;  %v5923_v41 = vld [vmem:[#allocation3 + $0x1a7] sm:$0xff]  ;;  %v6288_v51 = vld [vmem:[#allocation3 + $0x151] sm:$0xff] }
 0x22f   : > { %v12357_v45 = vpack.c.bf16 %v5924_v60, %v5923_v41  ;;  %v4440_v0 = vld [vmem:[#allocation3 + $0xe9] sm:$0xff]  ;;  %v6294_v8 = vld [vmem:[#allocation3 + $0x1b1] sm:$0xff] }
 0x230   : > { %9891 = vmatpush3.bf16.msra.mxu0 %v11093_v62  ;;  %v11109_v62 = vld [vmem:[%s12903_s3 + $0xd8] sm:$0xff]   ;;  %v6287_v42 = vld [vmem:[#allocation3 + $0x149] sm:$0xff] }
 0x231   : > { %10151 = vmatpush3.bf16.msra.mxu1 %v11094_v3  ;;  %9892 = vmatprep.subr.bf16.mxu0 %v11095_v18  ;;  %v12365_v3 = vpack.c.bf16 %v5926_v33, %v5925_v17  ;;  %v11118_v48 = vld [vmem:[%s12903_s3 + $0xc8] sm:$0xff]   ;;  %v12415_v56 = vpack.c.bf16 %v6288_v51, %v6287_v42  ;;  %v11120_v57 = vld [vmem:[%s12903_s3 + $0xd0] sm:$0xff]   ;;  %v11125_v17 = vld [vmem:[%s12903_s3 + $0x118] sm:$0xff]  }
 0x232   : > { %10152 = vmatprep.subr.bf16.mxu1 %v11096_v19  ;;  %v11121_v20 = vld [vmem:[%s12903_s3 + $0x108] sm:$0xff]   ;;  %v11123_v60 = vld [vmem:[%s12903_s3 + $0x110] sm:$0xff]   ;;  %v11140_v42 = vld [vmem:[%s12903_s3 + $0x120] sm:$0xff]  }
 0x233   : > { %9877 = vmatmul.mubr.bf16.gmra.mrb[24].mxu0 %v12288_v30  ;;  %10137 = vmatmul.mubr.bf16.gmra.mrb[28].mxu1 %v12237_v7  ;;  %v12341_v7 = vpack.c.bf16 %v5922_v15, %v5921_v1  ;;  %v11119_v15 = vld [vmem:[%s12903_s3 + $0x100] sm:$0xff]   ;;  %v6289_v1 = vld [vmem:[#allocation3 + $0x169] sm:$0xff]  ;;  %v6296_v41 = vld [vmem:[#allocation3 + $0x1d1] sm:$0xff] }
 0x234   : > { %9880 = vmatprep.mubr.bf16.mxu0 %v12290_v24  ;;  %9893 = vmatpush3.bf16.msra.mxu0 %v11095_v18  ;;  %v11110_v18 = vld [vmem:[%s12903_s3 + $0xa8] sm:$0xff]   ;;  %v11131_v32 = vld [vmem:[%s12903_s3 + $0x130] sm:$0xff]  }
 0x235   : > { %10153 = vmatpush3.bf16.msra.mxu1 %v11096_v19  ;;  %10156 = vmatprep.mubr.bf16.mxu1 %v12300_v47  ;;  %v4436_v19 = vld [vmem:[#allocation3 + $0xa9] sm:$0xff] }
 0x236   : > { %9894 = vmatprep.subr.bf16.mxu0 %v11097_v25  ;;  %10154 = vmatprep.subr.bf16.mxu1 %v11098_v46  ;;  %v6295_v33 = vld [vmem:[#allocation3 + $0x1c9] sm:$0xff] }
 0x237   : > { %v4831_v38 = vld [vmem:[#allocation3 + $0x30] sm:$0xff] }
 0x238   : > { %9895 = vmatpush3.bf16.msra.mxu0 %v11097_v25  ;;  %v6283_v25 = vld [vmem:[#allocation3 + $0x109] sm:$0xff] }
 0x239   : > { %10155 = vmatpush3.bf16.msra.mxu1 %v11098_v46  ;;  %9896 = vmatprep.subr.bf16.mxu0 %v11099_v31  ;;  %v6284_v46 = vld [vmem:[#allocation3 + $0x111] sm:$0xff] }
 0x23a   : > { %10172 = vmatprep.subr.bf16.mxu1 %v11100_v39  ;;  %v12389_v61 = vpack.c.bf16 %v6284_v46, %v6283_v25  ;;  %v4830_v25 = vld [vmem:[#allocation3 + $0x28] sm:$0xff]  ;;  %v4839_v51 = vld [vmem:[#allocation3 + $0xb0] sm:$0xff] }
 0x23b   : > { %9881 = vmatmul.mubr.bf16.gmra.mrb[28].mxu0 %v12310_v49  ;;  %v11134_v46 = vld [vmem:[%s12903_s3 + $0x108] sm:$0xff]  }
 0x23c   : > { %10157 = vmatmul.mubr.bf16.vlgmr.msra.gmra.mrb[16].mxu1 %v12312_v9  ;;  %9897 = vmatpush3.bf16.msra.mxu0 %v11099_v31  ;;  %v12379_v31 = vpack.c.bf16 %v4437_v22, %v4436_v19  ;;  %v6298_v19 = vld [vmem:[#allocation3 + $0x1f1] sm:$0xff] }
 0x23d   : > { %10160 = vmatprep.mubr.bf16.mxu1 %v12321_v43  ;;  %10173 = vmatpush3.bf16.msra.mxu1 %v11100_v39  ;;  %v12381_v39 = vpack.c.bf16 %v5928_v29, %v5927_v35  ;;  %v11128_v22 = vld [vmem:[%s12903_s3 + $0xf0] sm:$0xff]   ;;  %v11130_v29 = vld [vmem:[%s12903_s3 + $0xf8] sm:$0xff]  }
 0x23e   : > { %9898 = vmatprep.subr.bf16.mxu0 %v11101_v26  ;;  %10174 = vmatprep.subr.bf16.mxu1 %v11102_v27  ;;  %v4833_v35 = vld [vmem:[#allocation3 + $0x50] sm:$0xff] }
 0x23f   : > { %9900 = vmatprep.mubr.bf16.mxu0 %v4442_v28  ;;  %v6286_v28 = vld [vmem:[#allocation3 + $0x131] sm:$0xff] }
 0x240   : > { %9899 = vmatpush3.bf16.msra.mxu0 %v11101_v26  ;;  %v11116_v26 = vld [vmem:[%s12903_s3 + $0xc0] sm:$0xff]  }
 0x241   : > { %10175 = vmatpush3.bf16.msra.mxu1 %v11102_v27  ;;  %9916 = vmatprep.subr.bf16.mxu0 %v11103_v40  ;;  %v6285_v27 = vld [vmem:[#allocation3 + $0x129] sm:$0xff] }
 0x242   : > { %10176 = vmatprep.subr.bf16.mxu1 %v11104_v5 }
 0x243   : > { %9901 = vmatmul.mubr.bf16.vlgmr.msra.gmra.mrb[16].mxu0 %v12331_v6 }
 0x244   : > { %10161 = vmatmul.mubr.bf16.gmra.mrb[20].mxu1 %v12333_v59  ;;  %9904 = vmatprep.mubr.bf16.mxu0 %v12335_v23 }
 0x245   : > { %9917 = vmatpush3.bf16.msra.mxu0 %v11103_v40  ;;  %10164 = vmatprep.mubr.bf16.mxu1 %v12341_v7  ;;  %v12403_v40 = vpack.c.bf16 %v4441_v50, %v4440_v0  ;;  %v4832_v0 = vld [vmem:[#allocation3 + $0x48] sm:$0xff] }
 0x246   : > { %10177 = vmatpush3.bf16.msra.mxu1 %v11104_v5  ;;  %9918 = vmatprep.subr.bf16.mxu0 %v11105_v4  ;;  %v12406_v5 = vpack.c.bf16 %v6286_v28, %v6285_v27  ;;  %v4837_v27 = vld [vmem:[#allocation3 + $0x90] sm:$0xff] }
 0x247   : > { %10178 = vmatprep.subr.bf16.mxu1 %v11106_v63  ;;  %v11139_v28 = vld [vmem:[%s12903_s3 + $0x150] sm:$0xff]  }
 0x249   : > { %9919 = vmatpush3.bf16.msra.mxu0 %v11105_v4  ;;  %v6291_v4 = vld [vmem:[#allocation3 + $0x189] sm:$0xff] }
 0x24a   : > { %10179 = vmatpush3.bf16.msra.mxu1 %v11106_v63  ;;  %9920 = vmatprep.subr.bf16.mxu0 %v11107_v16  ;;  %v6292_v63 = vld [vmem:[#allocation3 + $0x191] sm:$0xff] }
 0x24b   : > { %9905 = vmatmul.mubr.bf16.gmra.mrb[20].mxu0 %v12355_v37  ;;  %10180 = vmatprep.subr.bf16.mxu1 %v11108_v36  ;;  %v12431_v21 = vpack.c.bf16 %v6292_v63, %v6291_v4  ;;  %v6499_v4 = vld [vmem:[#allocation3 + $0x20f] sm:$0xff] }
 0x24c   : > { %10165 = vmatmul.mubr.bf16.gmra.mrb[24].mxu1 %v12357_v45  ;;  %9908 = vmatprep.mubr.bf16.mxu0 %v12359_v10  ;;  %v11144_v63 = vld [vmem:[%s12903_s3 + $0x130] sm:$0xff]  }
 0x24d   : > { %9921 = vmatpush3.bf16.msra.mxu0 %v11107_v16  ;;  %10168 = vmatprep.mubr.bf16.mxu1 %v12365_v3 }
 0x24e   : > { %10181 = vmatpush3.bf16.msra.mxu1 %v11108_v36  ;;  %9922 = vmatprep.subr.bf16.mxu0 %v11109_v62  ;;  %v11122_v36 = vld [vmem:[%s12903_s3 + $0xd8] sm:$0xff]  }
 0x24f   : > { %10182 = vmatprep.subr.bf16.mxu1 %v11110_v18 }
 0x251   : > { %9923 = vmatpush3.bf16.msra.mxu0 %v11109_v62  ;;  %v12451_v62 = vpack.c.bf16 %v6296_v41, %v6295_v33  ;;  %v6685_v33 = vld [vmem:[#allocation3 + $0x128] sm:$0xff] }
 0x252   : > { %10183 = vmatpush3.bf16.msra.mxu1 %v11110_v18  ;;  %9924 = vmatprep.subr.bf16.mxu0 %v11111_v14  ;;  %v11126_v18 = vld [vmem:[%s12903_s3 + $0xe8] sm:$0xff]  }
 0x253   : > { %9909 = vmatmul.mubr.bf16.gmra.mrb[24].mxu0 %v12379_v31  ;;  %10184 = vmatprep.subr.bf16.mxu1 %v11112_v2  ;;  %v11145_v41 = vld [vmem:[%s12903_s3 + $0x168] sm:$0xff]  }
 0x254   : > { %10169 = vmatmul.mubr.bf16.gmra.mrb[28].mxu1 %v12381_v39  ;;  %9912 = vmatprep.mubr.bf16.mxu0 %v12383_v52 }
 0x255   : > { %9925 = vmatpush3.bf16.msra.mxu0 %v11111_v14  ;;  %10188 = vmatprep.mubr.bf16.mxu1 %v12389_v61  ;;  %v6297_v14 = vld [vmem:[#allocation3 + $0x1e9] sm:$0xff] }
 0x256   : > { %10185 = vmatpush3.bf16.msra.mxu1 %v11112_v2  ;;  %9926 = vmatprep.subr.bf16.mxu0 %v11113_v53  ;;  %v11129_v2 = vld [vmem:[%s12903_s3 + $0x128] sm:$0xff]  }
 0x257   : > { %10186 = vmatprep.subr.bf16.mxu1 %v11114_v54 }
 0x259   : > { %9927 = vmatpush3.bf16.msra.mxu0 %v11113_v53  ;;  %v11136_v53 = vld [vmem:[%s12903_s3 + $0x110] sm:$0xff]  }
 0x25a   : > { %10187 = vmatpush3.bf16.msra.mxu1 %v11114_v54  ;;  %9928 = vmatprep.subr.bf16.mxu0 %v11115_v11  ;;  %v4835_v54 = vld [vmem:[#allocation3 + $0x70] sm:$0xff] }
 0x25b   : > { %9913 = vmatmul.mubr.bf16.gmra.mrb[28].mxu0 %v12403_v40  ;;  %10204 = vmatprep.subr.bf16.mxu1 %v11116_v26 }
 0x25c   : > { %9932 = vmatprep.mubr.bf16.mxu0 %v12248_v12  ;;  %v6290_v12 = vld [vmem:[#allocation3 + $0x171] sm:$0xff] }
 0x25d   : > { %10189 = vmatmul.mubr.bf16.vlgmr.msra.gmra.mrb[16].mxu1 %v12406_v5  ;;  %9929 = vmatpush3.bf16.msra.mxu0 %v11115_v11  ;;  %v12425_v16 = vpack.c.bf16 %v6290_v12, %v6289_v1  ;;  %v11137_v11 = vld [vmem:[%s12903_s3 + $0x148] sm:$0xff]   ;;  %v4841_v1 = vld [vmem:[#allocation3 + $0xd0] sm:$0xff]  ;;  %v11143_v12 = vld [vmem:[%s12903_s3 + $0x160] sm:$0xff]  }
 0x25e   : > { %10192 = vmatprep.mubr.bf16.mxu1 %v12415_v56  ;;  %10205 = vmatpush3.bf16.msra.mxu1 %v11116_v26  ;;  %v11138_v26 = vld [vmem:[%s12903_s3 + $0x118] sm:$0xff]  }
 0x25f   : > { %9930 = vmatprep.subr.bf16.mxu0 %v11117_v44  ;;  %10206 = vmatprep.subr.bf16.mxu1 %v11118_v48 }
 0x261   : > { %9931 = vmatpush3.bf16.msra.mxu0 %v11117_v44  ;;  %v4836_v44 = vld [vmem:[#allocation3 + $0x88] sm:$0xff] }
 0x262   : > { %10207 = vmatpush3.bf16.msra.mxu1 %v11118_v48  ;;  %9948 = vmatprep.subr.bf16.mxu0 %v11119_v15  ;;  %v4838_v48 = vld [vmem:[#allocation3 + $0xa8] sm:$0xff] }
 0x263   : > { %10208 = vmatprep.subr.bf16.mxu1 %v11120_v57 }
 0x264   : > { %9933 = vmatmul.mubr.bf16.vlgmr.msra.gmra.mrb[16].mxu0 %v12250_v34  ;;  %v6293_v34 = vld [vmem:[#allocation3 + $0x1a9] sm:$0xff] }
 0x265   : > { %10193 = vmatmul.mubr.bf16.gmra.mrb[20].mxu1 %v12425_v16  ;;  %9936 = vmatprep.mubr.bf16.mxu0 %v12268_v55  ;;  %v12445_v55 = vpack.c.bf16 %v6294_v8, %v6293_v34  ;;  %v4842_v34 = vld [vmem:[#allocation3 + $0xe8] sm:$0xff] }
 0x266   : > { %9949 = vmatpush3.bf16.msra.mxu0 %v11119_v15  ;;  %10196 = vmatprep.mubr.bf16.mxu1 %v12431_v21  ;;  %v11141_v15 = vld [vmem:[%s12903_s3 + $0x158] sm:$0xff]  }
 0x267   : > { %10209 = vmatpush3.bf16.msra.mxu1 %v11120_v57  ;;  %9950 = vmatprep.subr.bf16.mxu0 %v11121_v20  ;;  %v11142_v57 = vld [vmem:[%s12903_s3 + $0x128] sm:$0xff]  }
 0x268   : > { %10210 = vmatprep.subr.bf16.mxu1 %v11122_v36 }
 0x26a   : > { %9951 = vmatpush3.bf16.msra.mxu0 %v11121_v20  ;;  %v4843_v20 = vld [vmem:[#allocation3 + $0xf0] sm:$0xff] }
 0x26b   : > { %10211 = vmatpush3.bf16.msra.mxu1 %v11122_v36  ;;  %9952 = vmatprep.subr.bf16.mxu0 %v11123_v60  ;;  %v6686_v36 = vld [vmem:[#allocation3 + $0x130] sm:$0xff] }
 0x26c   : > { %9937 = vmatmul.mubr.bf16.gmra.mrb[20].mxu0 %v12270_v58  ;;  %10212 = vmatprep.subr.bf16.mxu1 %v11124_v13  ;;  %v11127_v58 = vld [vmem:[%s12903_s3 + $0x120] sm:$0xff]  }
 0x26d   : > { %10197 = vmatmul.mubr.bf16.gmra.mrb[24].mxu1 %v12445_v55  ;;  %9940 = vmatprep.mubr.bf16.mxu0 %v12288_v30  ;;  %v12465_v30 = vpack.c.bf16 %v6298_v19, %v6297_v14  ;;  %v11147_v14 = vld [vmem:[%s12903_s3 + $0x170] sm:$0xff]   ;;  %v11148_v19 = vld [vmem:[%s12903_s3 + $0x140] sm:$0xff]  }
 0x26e   : > { %9953 = vmatpush3.bf16.msra.mxu0 %v11123_v60  ;;  %10200 = vmatprep.mubr.bf16.mxu1 %v12451_v62 }
 0x26f   : > { %10213 = vmatpush3.bf16.msra.mxu1 %v11124_v13  ;;  %9954 = vmatprep.subr.bf16.mxu0 %v11125_v17  ;;  %v12542_v13 = vpack.c.bf16 %v4843_v20, %v4842_v34  ;;  %v11161_v20 = vld [vmem:[%s12903_s3 + $0x1a8] sm:$0xff]  }
 0x270   : > { %10214 = vmatprep.subr.bf16.mxu1 %v11126_v18  ;;  %v5235_v34 = vld [vmem:[#allocation3 + $0x47] sm:$0xff] }
 0x272   : > { %9955 = vmatpush3.bf16.msra.mxu0 %v11125_v17  ;;  %v12548_v17 = vpack.c.bf16 %v6686_v36, %v6685_v33  ;;  %v11163_v36 = vld [vmem:[%s12903_s3 + $0x1b0] sm:$0xff]   ;;  %v11166_v33 = vld [vmem:[%s12903_s3 + $0x188] sm:$0xff]  }
 0x273   : > { %10215 = vmatpush3.bf16.msra.mxu1 %v11126_v18  ;;  %9956 = vmatprep.subr.bf16.mxu0 %v11127_v58  ;;  %v11146_v18 = vld [vmem:[%s12903_s3 + $0x138] sm:$0xff]  }
 0x274   : > { %9941 = vmatmul.mubr.bf16.gmra.mrb[24].mxu0 %v12290_v24  ;;  %10216 = vmatprep.subr.bf16.mxu1 %v11128_v22  ;;  %v11132_v24 = vld [vmem:[%s12903_s3 + $0x100] sm:$0xff]  }
 0x275   : > { %10201 = vmatmul.mubr.bf16.gmra.mrb[28].mxu1 %v12465_v30  ;;  %9944 = vmatprep.mubr.bf16.mxu0 %v12310_v49  ;;  %v4846_v49 = vpack.c.bf16 %v4831_v38, %v4830_v25  ;;  %v6689_v25 = vld [vmem:[#allocation3 + $0x168] sm:$0xff] }
 0x276   : > { %9957 = vmatpush3.bf16.msra.mxu0 %v11127_v58  ;;  %10220 = vmatprep.mubr.bf16.mxu1 %v12312_v9  ;;  %v11133_v9 = vld [vmem:[%s12903_s3 + $0x138] sm:$0xff]   ;;  %v4845_v58 = vld [vmem:[#allocation3 + $0x110] sm:$0xff] }
 0x277   : > { %10217 = vmatpush3.bf16.msra.mxu1 %v11128_v22  ;;  %9958 = vmatprep.subr.bf16.mxu0 %v11129_v2  ;;  %v4844_v22 = vld [vmem:[#allocation3 + $0x108] sm:$0xff] }
 0x278   : > { %10218 = vmatprep.subr.bf16.mxu1 %v11130_v29 }
 0x27a   : > { %9959 = vmatpush3.bf16.msra.mxu0 %v11129_v2  ;;  %v6688_v2 = vld [vmem:[#allocation3 + $0x150] sm:$0xff] }
 0x27b   : > { %10219 = vmatpush3.bf16.msra.mxu1 %v11130_v29  ;;  %9960 = vmatprep.subr.bf16.mxu0 %v11131_v32  ;;  %v12562_v29 = vpack.c.bf16 %v4845_v58, %v4844_v22  ;;  %v5240_v58 = vld [vmem:[#allocation3 + $0x8f] sm:$0xff] }
 0x27c   : > { %9945 = vmatmul.mubr.bf16.gmra.mrb[28].mxu0 %v12300_v47  ;;  %10236 = vmatprep.subr.bf16.mxu1 %v11132_v24  ;;  %v11135_v47 = vld [vmem:[%s12903_s3 + $0x140] sm:$0xff]   ;;  %v11169_v22 = vld [vmem:[%s12903_s3 + $0x1c8] sm:$0xff]  }
 0x27d   : > { %9964 = vmatprep.mubr.bf16.mxu0 %v4846_v49  ;;  %v11149_v49 = vld [vmem:[%s12903_s3 + $0x178] sm:$0xff]  }
 0x27e   : > { %10221 = vmatmul.mubr.bf16.vlgmr.msra.gmra.mrb[16].mxu1 %v12321_v43  ;;  %9961 = vmatpush3.bf16.msra.mxu0 %v11131_v32  ;;  %v12498_v43 = vpack.c.bf16 %v4833_v35, %v4832_v0  ;;  %v6690_v32 = vld [vmem:[#allocation3 + $0x170] sm:$0xff] }
 0x27f   : > { %10224 = vmatprep.mubr.bf16.mxu1 %v12333_v59  ;;  %10237 = vmatpush3.bf16.msra.mxu1 %v11132_v24  ;;  %v4834_v59 = vld [vmem:[#allocation3 + $0x68] sm:$0xff]  ;;  %v11152_v35 = vld [vmem:[%s12903_s3 + $0x150] sm:$0xff]  }
 0x280   : > { %9962 = vmatprep.subr.bf16.mxu0 %v11133_v9  ;;  %10238 = vmatprep.subr.bf16.mxu1 %v11134_v46  ;;  %v12500_v50 = vpack.c.bf16 %v4835_v54, %v4834_v59  ;;  %v6687_v24 = vld [vmem:[#allocation3 + $0x148] sm:$0xff] }
 0x281   : > { %v12565_v38 = vpack.c.bf16 %v6688_v2, %v6687_v24  ;;  %v6691_v54 = vld [vmem:[#allocation3 + $0x188] sm:$0xff]  ;;  %v11170_v2 = vld [vmem:[%s12903_s3 + $0x198] sm:$0xff]   ;;  %v11171_v24 = vld [vmem:[%s12903_s3 + $0x1d0] sm:$0xff]  }
 0x282   : > { %9963 = vmatpush3.bf16.msra.mxu0 %v11133_v9  ;;  %v11150_v9 = vld [vmem:[%s12903_s3 + $0x148] sm:$0xff]  }
 0x283   : > { %10239 = vmatpush3.bf16.msra.mxu1 %v11134_v46  ;;  %9980 = vmatprep.subr.bf16.mxu0 %v11135_v47  ;;  %v12574_v46 = vpack.c.bf16 %v6690_v32, %v6689_v25  ;;  %v6693_v59 = vld [vmem:[#allocation3 + $0x1a8] sm:$0xff]  ;;  %v11172_v25 = vld [vmem:[%s12903_s3 + $0x1a0] sm:$0xff]  }
 0x284   : > { %10240 = vmatprep.subr.bf16.mxu1 %v11136_v53  ;;  %v5242_v32 = vld [vmem:[#allocation3 + $0xaf] sm:$0xff] }
 0x285   : > { %9965 = vmatmul.mubr.bf16.vlgmr.msra.gmra.mrb[16].mxu0 %v12498_v43 }
 0x286   : > { %10225 = vmatmul.mubr.bf16.gmra.mrb[20].mxu1 %v12341_v7  ;;  %9968 = vmatprep.mubr.bf16.mxu0 %v12500_v50  ;;  %v12518_v7 = vpack.c.bf16 %v4837_v27, %v4836_v44  ;;  %v11154_v27 = vld [vmem:[%s12903_s3 + $0x158] sm:$0xff]   ;;  %v6695_v44 = vld [vmem:[#allocation3 + $0x1c8] sm:$0xff] }
 0x287   : > { %9981 = vmatpush3.bf16.msra.mxu0 %v11135_v47  ;;  %10228 = vmatprep.mubr.bf16.mxu1 %v12357_v45  ;;  %v12520_v45 = vpack.c.bf16 %v4839_v51, %v4838_v48  ;;  %v11151_v47 = vld [vmem:[%s12903_s3 + $0x180] sm:$0xff]   ;;  %v6698_v51 = vld [vmem:[#allocation3 + $0x1f0] sm:$0xff]  ;;  %v6697_v48 = vld [vmem:[#allocation3 + $0x1e8] sm:$0xff] }
 0x288   : > { %10241 = vmatpush3.bf16.msra.mxu1 %v11136_v53  ;;  %9982 = vmatprep.subr.bf16.mxu0 %v11137_v11  ;;  %v6692_v53 = vld [vmem:[#allocation3 + $0x190] sm:$0xff] }
 0x289   : > { %10242 = vmatprep.subr.bf16.mxu1 %v11138_v26  ;;  %v12584_v0 = vpack.c.bf16 %v6692_v53, %v6691_v54  ;;  %v11174_v53 = vld [vmem:[%s12903_s3 + $0x1a8] sm:$0xff]   ;;  %v11175_v54 = vld [vmem:[%s12903_s3 + $0x1e0] sm:$0xff]  }
 0x28b   : > { %9983 = vmatpush3.bf16.msra.mxu0 %v11137_v11  ;;  %v11153_v11 = vld [vmem:[%s12903_s3 + $0x188] sm:$0xff]  }
 0x28c   : > { %10243 = vmatpush3.bf16.msra.mxu1 %v11138_v26  ;;  %9984 = vmatprep.subr.bf16.mxu0 %v11139_v28 }
 0x28d   : > { %9969 = vmatmul.mubr.bf16.gmra.mrb[20].mxu0 %v12518_v7  ;;  %10244 = vmatprep.subr.bf16.mxu1 %v11140_v42 }
 0x28e   : > { %10229 = vmatmul.mubr.bf16.gmra.mrb[24].mxu1 %v12365_v3  ;;  %9972 = vmatprep.mubr.bf16.mxu0 %v12520_v45  ;;  %v4840_v3 = vld [vmem:[#allocation3 + $0xc8] sm:$0xff] }
 0x28f   : > { %9985 = vmatpush3.bf16.msra.mxu0 %v11139_v28  ;;  %10232 = vmatprep.mubr.bf16.mxu1 %v12381_v39  ;;  %v12538_v60 = vpack.c.bf16 %v4841_v1, %v4840_v3  ;;  %v6498_v39 = vld [vmem:[#allocation3 + $0x207] sm:$0xff]  ;;  %v11155_v28 = vld [vmem:[%s12903_s3 + $0x190] sm:$0xff]   ;;  %v11162_v3 = vld [vmem:[%s12903_s3 + $0x178] sm:$0xff]  }
 0x290   : > { %10245 = vmatpush3.bf16.msra.mxu1 %v11140_v42  ;;  %9986 = vmatprep.subr.bf16.mxu0 %v11141_v15  ;;  %v12540_v8 = vpack.c.bf16 %v6499_v4, %v6498_v39  ;;  %v11156_v42 = vld [vmem:[%s12903_s3 + $0x160] sm:$0xff]   ;;  %v11158_v1 = vld [vmem:[%s12903_s3 + $0x168] sm:$0xff]   ;;  %v11160_v4 = vld [vmem:[%s12903_s3 + $0x170] sm:$0xff]  }
 0x291   : > { %10246 = vmatprep.subr.bf16.mxu1 %v11142_v57  ;;  %v5236_v39 = vld [vmem:[#allocation3 + $0x4f] sm:$0xff] }
 0x293   : > { %9987 = vmatpush3.bf16.msra.mxu0 %v11141_v15  ;;  %v11157_v15 = vld [vmem:[%s12903_s3 + $0x198] sm:$0xff]  }
 0x294   : > { %10247 = vmatpush3.bf16.msra.mxu1 %v11142_v57  ;;  %9988 = vmatprep.subr.bf16.mxu0 %v11143_v12  ;;  %v12610_v57 = vpack.c.bf16 %v6698_v51, %v6697_v48  ;;  %v7088_v48 = vld [vmem:[#allocation3 + $0x147] sm:$0xff] }
 0x295   : > { %9973 = vmatmul.mubr.bf16.gmra.mrb[24].mxu0 %v12538_v60  ;;  %10248 = vmatprep.subr.bf16.mxu1 %v11144_v63 }
 0x296   : > { %10233 = vmatmul.mubr.bf16.gmra.mrb[28].mxu1 %v12540_v8  ;;  %9976 = vmatprep.mubr.bf16.mxu0 %v12542_v13 }
 0x297   : > { %9989 = vmatpush3.bf16.msra.mxu0 %v11143_v12  ;;  %10252 = vmatprep.mubr.bf16.mxu1 %v12548_v17  ;;  %v6700_v12 = vld [vmem:[#allocation3 + $0x210] sm:$0xff] }
 0x298   : > { %10249 = vmatpush3.bf16.msra.mxu1 %v11144_v63  ;;  %9990 = vmatprep.subr.bf16.mxu0 %v11145_v41  ;;  %v6699_v63 = vld [vmem:[#allocation3 + $0x208] sm:$0xff] }
 0x299   : > { %10250 = vmatprep.subr.bf16.mxu1 %v11146_v18 }
 0x29b   : > { %9991 = vmatpush3.bf16.msra.mxu0 %v11145_v41  ;;  %v5238_v41 = vld [vmem:[#allocation3 + $0x6f] sm:$0xff] }
 0x29c   : > { %10251 = vmatpush3.bf16.msra.mxu1 %v11146_v18  ;;  %9992 = vmatprep.subr.bf16.mxu0 %v11147_v14  ;;  %v11168_v18 = vld [vmem:[%s12903_s3 + $0x190] sm:$0xff]  }
 0x29d   : > { %9977 = vmatmul.mubr.bf16.gmra.mrb[28].mxu0 %v12562_v29  ;;  %10268 = vmatprep.subr.bf16.mxu1 %v11148_v19 }
 0x29e   : > { %9996 = vmatprep.mubr.bf16.mxu0 %v12331_v6  ;;  %v6694_v6 = vld [vmem:[#allocation3 + $0x1b0] sm:$0xff] }
 0x29f   : > { %10253 = vmatmul.mubr.bf16.vlgmr.msra.gmra.mrb[16].mxu1 %v12565_v38  ;;  %9993 = vmatpush3.bf16.msra.mxu0 %v11147_v14  ;;  %v12590_v26 = vpack.c.bf16 %v6694_v6, %v6693_v59  ;;  %v5237_v14 = vld [vmem:[#allocation3 + $0x67] sm:$0xff]  ;;  %v5246_v6 = vld [vmem:[#allocation3 + $0xef] sm:$0xff] }
 0x2a0   : > { %10256 = vmatprep.mubr.bf16.mxu1 %v12574_v46  ;;  %10269 = vmatpush3.bf16.msra.mxu1 %v11148_v19  ;;  %v5239_v19 = vld [vmem:[#allocation3 + $0x87] sm:$0xff] }
 0x2a1   : > { %9994 = vmatprep.subr.bf16.mxu0 %v11149_v49  ;;  %10270 = vmatprep.subr.bf16.mxu1 %v11150_v9  ;;  %v6900_v59 = vld [vmem:[#allocation3 + $0x209] sm:$0xff] }
 0x2a3   : > { %9995 = vmatpush3.bf16.msra.mxu0 %v11149_v49  ;;  %v5244_v49 = vld [vmem:[#allocation3 + $0xcf] sm:$0xff] }
 0x2a4   : > { %10271 = vmatpush3.bf16.msra.mxu1 %v11150_v9  ;;  %10012 = vmatprep.subr.bf16.mxu0 %v11151_v47  ;;  %v5241_v9 = vld [vmem:[#allocation3 + $0xa7] sm:$0xff] }
 0x2a5   : > { %10272 = vmatprep.subr.bf16.mxu1 %v11152_v35 }
 0x2a6   : > { %9997 = vmatmul.mubr.bf16.vlgmr.msra.gmra.mrb[16].mxu0 %v12335_v23  ;;  %v6696_v23 = vld [vmem:[#allocation3 + $0x1d0] sm:$0xff] }
 0x2a7   : > { %10257 = vmatmul.mubr.bf16.gmra.mrb[20].mxu1 %v12584_v0  ;;  %10000 = vmatprep.mubr.bf16.mxu0 %v12355_v37  ;;  %v12604_v37 = vpack.c.bf16 %v6696_v23, %v6695_v44  ;;  %v7089_v23 = vld [vmem:[#allocation3 + $0x14f] sm:$0xff] }
 0x2a8   : > { %10013 = vmatpush3.bf16.msra.mxu0 %v11151_v47  ;;  %10260 = vmatprep.mubr.bf16.mxu1 %v12590_v26  ;;  %v5243_v47 = vld [vmem:[#allocation3 + $0xc7] sm:$0xff] }
 0x2a9   : > { %10273 = vmatpush3.bf16.msra.mxu1 %v11152_v35  ;;  %10014 = vmatprep.subr.bf16.mxu0 %v11153_v11  ;;  %v11173_v35 = vld [vmem:[%s12903_s3 + $0x1d8] sm:$0xff]  }
 0x2aa   : > { %10274 = vmatprep.subr.bf16.mxu1 %v11154_v27 }
 0x2ac   : > { %10015 = vmatpush3.bf16.msra.mxu0 %v11153_v11  ;;  %v6901_v11 = vld [vmem:[#allocation3 + $0x211] sm:$0xff] }
 0x2ad   : > { %10275 = vmatpush3.bf16.msra.mxu1 %v11154_v27  ;;  %10016 = vmatprep.subr.bf16.mxu0 %v11155_v28  ;;  %v11176_v27 = vld [vmem:[%s12903_s3 + $0x1b0] sm:$0xff]   ;;  %v12685_v51 = vpack.c.bf16 %v6901_v11, %v6900_v59  ;;  %v11198_v59 = vld [vmem:[%s12903_s3 + $0x208] sm:$0xff]  }
 0x2ae   : > { %10001 = vmatmul.mubr.bf16.gmra.mrb[20].mxu0 %v12359_v10  ;;  %10276 = vmatprep.subr.bf16.mxu1 %v11156_v42  ;;  %v11159_v10 = vld [vmem:[%s12903_s3 + $0x1a0] sm:$0xff]   ;;  %v5641_v11 = vld [vmem:[#allocation3 + $0x69] sm:$0xff] }
 0x2af   : > { %10261 = vmatmul.mubr.bf16.gmra.mrb[24].mxu1 %v12604_v37  ;;  %10004 = vmatprep.mubr.bf16.mxu0 %v12379_v31  ;;  %v12624_v31 = vpack.c.bf16 %v6700_v12, %v6699_v63  ;;  %v5250_v12 = vld [vmem:[#allocation3 + $0x12f] sm:$0xff]  ;;  %v11180_v63 = vld [vmem:[%s12903_s3 + $0x1c0] sm:$0xff]  }
 0x2b0   : > { %10017 = vmatpush3.bf16.msra.mxu0 %v11155_v28  ;;  %10264 = vmatprep.mubr.bf16.mxu1 %v12610_v57  ;;  %v5248_v28 = vld [vmem:[#allocation3 + $0x10f] sm:$0xff] }
 0x2b1   : > { %10277 = vmatpush3.bf16.msra.mxu1 %v11156_v42  ;;  %10018 = vmatprep.subr.bf16.mxu0 %v11157_v15 }
 0x2b2   : > { %10278 = vmatprep.subr.bf16.mxu1 %v11158_v1 }
 0x2b4   : > { %10019 = vmatpush3.bf16.msra.mxu0 %v11157_v15  ;;  %v11177_v15 = vld [vmem:[%s12903_s3 + $0x1e8] sm:$0xff]  }
 0x2b5   : > { %10279 = vmatpush3.bf16.msra.mxu1 %v11158_v1  ;;  %10020 = vmatprep.subr.bf16.mxu0 %v11159_v10  ;;  %v7104_v1 = vpack.c.bf16 %v7089_v23, %v7088_v48  ;;  %v5647_v48 = vld [vmem:[#allocation3 + $0xc9] sm:$0xff] }
 0x2b6   : > { %10005 = vmatmul.mubr.bf16.gmra.mrb[24].mxu0 %v12383_v52  ;;  %10280 = vmatprep.subr.bf16.mxu1 %v11160_v4  ;;  %v11164_v52 = vld [vmem:[%s12903_s3 + $0x180] sm:$0xff]  }
 0x2b7   : > { %10265 = vmatmul.mubr.bf16.gmra.mrb[28].mxu1 %v12624_v31  ;;  %10008 = vmatprep.mubr.bf16.mxu0 %v12403_v40  ;;  %v5251_v40 = vpack.c.bf16 %v5236_v39, %v5235_v34  ;;  %v7090_v39 = vld [vmem:[#allocation3 + $0x167] sm:$0xff] }
 0x2b8   : > { %10021 = vmatpush3.bf16.msra.mxu0 %v11159_v10  ;;  %10284 = vmatprep.mubr.bf16.mxu1 %v12406_v5  ;;  %v11165_v5 = vld [vmem:[%s12903_s3 + $0x1b8] sm:$0xff]  }
 0x2b9   : > { %10281 = vmatpush3.bf16.msra.mxu1 %v11160_v4  ;;  %10022 = vmatprep.subr.bf16.mxu0 %v11161_v20  ;;  %v11178_v10 = vld [vmem:[%s12903_s3 + $0x1b8] sm:$0xff]   ;;  %v11179_v4 = vld [vmem:[%s12903_s3 + $0x1f0] sm:$0xff]  }
 0x2ba   : > { %10282 = vmatprep.subr.bf16.mxu1 %v11162_v3 }
 0x2bc   : > { %10023 = vmatpush3.bf16.msra.mxu0 %v11161_v20  ;;  %v5249_v20 = vld [vmem:[#allocation3 + $0x127] sm:$0xff] }
 0x2bd   : > { %10283 = vmatpush3.bf16.msra.mxu1 %v11162_v3  ;;  %10024 = vmatprep.subr.bf16.mxu0 %v11163_v36  ;;  %v7091_v3 = vld [vmem:[#allocation3 + $0x16f] sm:$0xff] }
 0x2be   : > { %10009 = vmatmul.mubr.bf16.gmra.mrb[28].mxu0 %v12389_v61  ;;  %10300 = vmatprep.subr.bf16.mxu1 %v11164_v52  ;;  %v11167_v61 = vld [vmem:[%s12903_s3 + $0x1c0] sm:$0xff]   ;;  %v7105_v34 = vpack.c.bf16 %v7091_v3, %v7090_v39  ;;  %v5651_v3 = vld [vmem:[#allocation3 + $0x109] sm:$0xff] }
 0x2bf   : > { %10028 = vmatprep.mubr.bf16.mxu0 %v5251_v40  ;;  %v7092_v40 = vld [vmem:[#allocation3 + $0x187] sm:$0xff] }
 0x2c0   : > { %10285 = vmatmul.mubr.bf16.vlgmr.msra.gmra.mrb[16].mxu1 %v12415_v56  ;;  %10025 = vmatpush3.bf16.msra.mxu0 %v11163_v36  ;;  %v5252_v56 = vpack.c.bf16 %v5238_v41, %v5237_v14  ;;  %v5258_v36 = vpack.c.bf16 %v5250_v12, %v5249_v20  ;;  %v11183_v41 = vld [vmem:[%s12903_s3 + $0x200] sm:$0xff]   ;;  %v7097_v14 = vld [vmem:[#allocation3 + $0x1cf] sm:$0xff] }
 0x2c1   : > { %10288 = vmatprep.mubr.bf16.mxu1 %v12425_v16  ;;  %10301 = vmatpush3.bf16.msra.mxu1 %v11164_v52  ;;  %v5253_v16 = vpack.c.bf16 %v5240_v58, %v5239_v19  ;;  %v7093_v52 = vld [vmem:[#allocation3 + $0x18f] sm:$0xff]  ;;  %v7096_v19 = vld [vmem:[#allocation3 + $0x1c7] sm:$0xff] }
 0x2c2   : > { %10026 = vmatprep.subr.bf16.mxu0 %v11165_v5  ;;  %10302 = vmatprep.subr.bf16.mxu1 %v11166_v33  ;;  %v7095_v58 = vld [vmem:[#allocation3 + $0x1af] sm:$0xff] }
 0x2c3   : > { %v7304_v12 = vld [vmem:[#allocation3 + $0x230] sm:$0xff] }
 0x2c4   : > { %10027 = vmatpush3.bf16.msra.mxu0 %v11165_v5  ;;  %v11181_v5 = vld [vmem:[%s12903_s3 + $0x1f8] sm:$0xff]   ;;  %v11203_v20 = vld [vmem:[%s12903_s3 + $0x230] sm:$0xff]  }
 0x2c5   : > { %10303 = vmatpush3.bf16.msra.mxu1 %v11166_v33  ;;  %10044 = vmatprep.subr.bf16.mxu0 %v11167_v61  ;;  %v11182_v33 = vld [vmem:[%s12903_s3 + $0x1c8] sm:$0xff]  }
 0x2c6   : > { %10304 = vmatprep.subr.bf16.mxu1 %v11168_v18  ;;  %v7490_v39 = vld [vmem:[#allocation3 + $0x149] sm:$0xff] }
 0x2c7   : > { %10029 = vmatmul.mubr.bf16.vlgmr.msra.gmra.mrb[16].mxu0 %v5252_v56 }
 0x2c8   : > { %10289 = vmatmul.mubr.bf16.gmra.mrb[20].mxu1 %v12431_v21  ;;  %10032 = vmatprep.mubr.bf16.mxu0 %v5253_v16  ;;  %v5254_v21 = vpack.c.bf16 %v5242_v32, %v5241_v9  ;;  %v11185_v16 = vld [vmem:[%s12903_s3 + $0x208] sm:$0xff]   ;;  %v11187_v32 = vld [vmem:[%s12903_s3 + $0x210] sm:$0xff]  }
 0x2c9   : > { %10045 = vmatpush3.bf16.msra.mxu0 %v11167_v61  ;;  %10292 = vmatprep.mubr.bf16.mxu1 %v12445_v55  ;;  %v5255_v55 = vpack.c.bf16 %v5244_v49, %v5243_v47  ;;  %v7106_v61 = vpack.c.bf16 %v7093_v52, %v7092_v40  ;;  %v11190_v9 = vld [vmem:[%s12903_s3 + $0x1e8] sm:$0xff]   ;;  %v11191_v47 = vld [vmem:[%s12903_s3 + $0x220] sm:$0xff]  }
 0x2ca   : > { %10305 = vmatpush3.bf16.msra.mxu1 %v11168_v18  ;;  %10046 = vmatprep.subr.bf16.mxu0 %v11169_v22  ;;  %v11184_v18 = vld [vmem:[%s12903_s3 + $0x1d0] sm:$0xff]  }
 0x2cb   : > { %10306 = vmatprep.subr.bf16.mxu1 %v11170_v2 }
 0x2cd   : > { %10047 = vmatpush3.bf16.msra.mxu0 %v11169_v22  ;;  %v7108_v22 = vpack.c.bf16 %v7097_v14, %v7096_v19  ;;  %v7495_v14 = vld [vmem:[#allocation3 + $0x191] sm:$0xff] }
 0x2ce   : > { %10307 = vmatpush3.bf16.msra.mxu1 %v11170_v2  ;;  %10048 = vmatprep.subr.bf16.mxu0 %v11171_v24  ;;  %v11186_v2 = vld [vmem:[%s12903_s3 + $0x1d8] sm:$0xff]  }
 0x2cf   : > { %10033 = vmatmul.mubr.bf16.gmra.mrb[20].mxu0 %v5254_v21  ;;  %10308 = vmatprep.subr.bf16.mxu1 %v11172_v25  ;;  %v7102_v21 = vld [vmem:[#allocation3 + $0x227] sm:$0xff] }
 0x2d0   : > { %10293 = vmatmul.mubr.bf16.gmra.mrb[24].mxu1 %v12451_v62  ;;  %10036 = vmatprep.mubr.bf16.mxu0 %v5255_v55  ;;  %v5245_v62 = vld [vmem:[#allocation3 + $0xe7] sm:$0xff]  ;;  %v11207_v55 = vld [vmem:[#allocation2 + $0xf] sm:$0xff] }
 0x2d1   : > { %10049 = vmatpush3.bf16.msra.mxu0 %v11171_v24  ;;  %10296 = vmatprep.mubr.bf16.mxu1 %v12465_v30  ;;  %v5256_v42 = vpack.c.bf16 %v5246_v6, %v5245_v62  ;;  %v5247_v30 = vld [vmem:[#allocation3 + $0x107] sm:$0xff]  ;;  %v7099_v24 = vld [vmem:[#allocation3 + $0x1ef] sm:$0xff] }
 0x2d2   : > { %10309 = vmatpush3.bf16.msra.mxu1 %v11172_v25  ;;  %10050 = vmatprep.subr.bf16.mxu0 %v11173_v35  ;;  %v5257_v44 = vpack.c.bf16 %v5248_v28, %v5247_v30  ;;  %v7098_v25 = vld [vmem:[#allocation3 + $0x1e7] sm:$0xff]  ;;  %v5644_v62 = vld [vmem:[#allocation3 + $0x91] sm:$0xff] }
 0x2d3   : > { %10310 = vmatprep.subr.bf16.mxu1 %v11174_v53  ;;  %v7109_v49 = vpack.c.bf16 %v7099_v24, %v7098_v25  ;;  %v5639_v6 = vld [vmem:[#allocation3 + $0x49] sm:$0xff]  ;;  %v5646_v30 = vld [vmem:[#allocation3 + $0xb1] sm:$0xff] }
 0x2d4   : > { %v5643_v28 = vld [vmem:[#allocation3 + $0x89] sm:$0xff] }
 0x2d5   : > { %10051 = vmatpush3.bf16.msra.mxu0 %v11173_v35  ;;  %v7111_v35 = vpack.c.bf16 %v11207_v55, %v7102_v21  ;;  %v7500_v25 = vld [vmem:[#allocation3 + $0x1e9] sm:$0xff]  ;;  %v7505_v21 = vld [vmem:[#allocation3 + $0x231] sm:$0xff] }
 0x2d6   : > { %10311 = vmatpush3.bf16.msra.mxu1 %v11174_v53  ;;  %10052 = vmatprep.subr.bf16.mxu0 %v11175_v54  ;;  %v11195_v53 = vld [vmem:[%s12903_s3 + $0x230] sm:$0xff]  }
 0x2d7   : > { %10037 = vmatmul.mubr.bf16.gmra.mrb[24].mxu0 %v5256_v42  ;;  %10312 = vmatprep.subr.bf16.mxu1 %v11176_v27  ;;  %v5657_v42 = vpack.c.bf16 %v5644_v62, %v5643_v28 }
 0x2d8   : > { %10297 = vmatmul.mubr.bf16.gmra.mrb[28].mxu1 %v12685_v51  ;;  %10040 = vmatprep.mubr.bf16.mxu0 %v5257_v44  ;;  %v11201_v44 = vld [vmem:[%s12903_s3 + $0x220] sm:$0xff]  }
 0x2d9   : > { %10053 = vmatpush3.bf16.msra.mxu0 %v11175_v54  ;;  %10316 = vmatprep.mubr.bf16.mxu1 %v7104_v1  ;;  %v5640_v54 = vld [vmem:[#allocation3 + $0x51] sm:$0xff] }
 0x2da   : > { %10313 = vmatpush3.bf16.msra.mxu1 %v11176_v27  ;;  %10054 = vmatprep.subr.bf16.mxu0 %v11177_v15  ;;  %v11199_v27 = vld [vmem:[%s12903_s3 + $0x210] sm:$0xff]  }
 0x2db   : > { %10314 = vmatprep.subr.bf16.mxu1 %v11178_v10 }
 0x2dd   : > { %10055 = vmatpush3.bf16.msra.mxu0 %v11177_v15  ;;  %v5648_v15 = vld [vmem:[#allocation3 + $0xd1] sm:$0xff] }
 0x2de   : > { %10315 = vmatpush3.bf16.msra.mxu1 %v11178_v10  ;;  %10056 = vmatprep.subr.bf16.mxu0 %v11179_v4  ;;  %v5659_v10 = vpack.c.bf16 %v5648_v15, %v5647_v48  ;;  %v5871_v48 = vld [vmem:[%s11395_s21 + $0x38] sm:$0xff] }
 0x2df   : > { %10041 = vmatmul.mubr.bf16.gmra.mrb[28].mxu0 %v5258_v36  ;;  %10332 = vmatprep.subr.bf16.mxu1 %v11180_v63  ;;  %v5652_v36 = vld [vmem:[#allocation3 + $0x111] sm:$0xff] }
 0x2e0   : > { %10060 = vmatprep.mubr.bf16.mxu0 %v12498_v43  ;;  %v7094_v43 = vld [vmem:[#allocation3 + $0x1a7] sm:$0xff]  ;;  %v5661_v40 = vpack.c.bf16 %v5652_v36, %v5651_v3  ;;  %v5874_v3 = vld [vmem:[%s11395_s21 + $0x50] sm:$0xff] }
 0x2e1   : > { %10317 = vmatmul.mubr.bf16.vlgmr.msra.gmra.mrb[16].mxu1 %v7105_v34  ;;  %10057 = vmatpush3.bf16.msra.mxu0 %v11179_v4  ;;  %v7107_v56 = vpack.c.bf16 %v7095_v58, %v7094_v43  ;;  %v5649_v4 = vld [vmem:[#allocation3 + $0xe9] sm:$0xff]  ;;  %v7491_v34 = vld [vmem:[#allocation3 + $0x151] sm:$0xff] }
 0x2e2   : > { %10320 = vmatprep.mubr.bf16.mxu1 %v7106_v61  ;;  %10333 = vmatpush3.bf16.msra.mxu1 %v11180_v63  ;;  %v5650_v63 = vld [vmem:[#allocation3 + $0xf1] sm:$0xff]  ;;  %v7494_v58 = vld [vmem:[#allocation3 + $0x189] sm:$0xff] }
 0x2e3   : > { %10058 = vmatprep.subr.bf16.mxu0 %v11181_v5  ;;  %10334 = vmatprep.subr.bf16.mxu1 %v11182_v33  ;;  %v5654_v61 = vld [vmem:[#allocation3 + $0x131] sm:$0xff]  ;;  %v7508_v19 = vpack.c.bf16 %v7495_v14, %v7494_v58 }
 0x2e5   : > { %10059 = vmatpush3.bf16.msra.mxu0 %v11181_v5  ;;  %v7506_v5 = vpack.c.bf16 %v7491_v34, %v7490_v39  ;;  %v5872_v39 = vld [vmem:[%s11395_s21 + $0x40] sm:$0xff] }
 0x2e6   : > { %10335 = vmatpush3.bf16.msra.mxu1 %v11182_v33  ;;  %10076 = vmatprep.subr.bf16.mxu0 %v11183_v41  ;;  %v5653_v33 = vld [vmem:[#allocation3 + $0x129] sm:$0xff] }
 0x2e7   : > { %10336 = vmatprep.subr.bf16.mxu1 %v11184_v18  ;;  %v5662_v43 = vpack.c.bf16 %v5654_v61, %v5653_v33  ;;  %v5873_v61 = vld [vmem:[%s11395_s21 + $0x48] sm:$0xff] }
 0x2e8   : > { %10061 = vmatmul.mubr.bf16.vlgmr.msra.gmra.mrb[16].mxu0 %v12500_v50  ;;  %v11188_v50 = vld [vmem:[%s12903_s3 + $0x1e0] sm:$0xff]  }
 0x2e9   : > { %10321 = vmatmul.mubr.bf16.gmra.mrb[20].mxu1 %v7107_v56  ;;  %10064 = vmatprep.mubr.bf16.mxu0 %v12518_v7  ;;  %v11189_v7 = vld [vmem:[%s12903_s3 + $0x218] sm:$0xff]  }
 0x2ea   : > { %10077 = vmatpush3.bf16.msra.mxu0 %v11183_v41  ;;  %10324 = vmatprep.mubr.bf16.mxu1 %v7108_v22  ;;  %v7492_v41 = vld [vmem:[#allocation3 + $0x169] sm:$0xff]  ;;  %v7497_v22 = vld [vmem:[#allocation3 + $0x1b1] sm:$0xff] }
 0x2eb   : > { %10337 = vmatpush3.bf16.msra.mxu1 %v11184_v18  ;;  %10078 = vmatprep.subr.bf16.mxu0 %v11185_v16  ;;  %v7493_v18 = vld [vmem:[#allocation3 + $0x171] sm:$0xff] }
 0x2ec   : > { %10338 = vmatprep.subr.bf16.mxu1 %v11186_v2  ;;  %v7507_v56 = vpack.c.bf16 %v7493_v18, %v7492_v41 }
 0x2ee   : > { %10079 = vmatpush3.bf16.msra.mxu0 %v11185_v16  ;;  %v7496_v16 = vld [vmem:[#allocation3 + $0x1a9] sm:$0xff] }
 0x2ef   : > { %10339 = vmatpush3.bf16.msra.mxu1 %v11186_v2  ;;  %10080 = vmatprep.subr.bf16.mxu0 %v11187_v32  ;;  %v7498_v2 = vld [vmem:[#allocation3 + $0x1c9] sm:$0xff]  ;;  %v7509_v24 = vpack.c.bf16 %v7497_v22, %v7496_v16 }
 0x2f0   : > { %10065 = vmatmul.mubr.bf16.gmra.mrb[20].mxu0 %v12520_v45  ;;  %10340 = vmatprep.subr.bf16.mxu1 %v11188_v50  ;;  %v11192_v45 = vld [vmem:[%s12903_s3 + $0x1f0] sm:$0xff]  }
 0x2f1   : > { %10325 = vmatmul.mubr.bf16.gmra.mrb[24].mxu1 %v7109_v49  ;;  %10068 = vmatprep.mubr.bf16.mxu0 %v12538_v60  ;;  %v11193_v60 = vld [vmem:[%s12903_s3 + $0x228] sm:$0xff]   ;;  %v7501_v49 = vld [vmem:[#allocation3 + $0x1f1] sm:$0xff] }
 0x2f2   : > { %10081 = vmatpush3.bf16.msra.mxu0 %v11187_v32  ;;  %10328 = vmatprep.mubr.bf16.mxu1 %v12540_v8  ;;  %v11194_v8 = vld [vmem:[%s12903_s3 + $0x1f8] sm:$0xff]   ;;  %v8634_v22 = vld [vmem:[%s11395_s21 + $0x90] sm:$0xff] }
 0x2f3   : > { %10341 = vmatpush3.bf16.msra.mxu1 %v11188_v50  ;;  %10082 = vmatprep.subr.bf16.mxu0 %v11189_v7  ;;  %v7499_v32 = vld [vmem:[#allocation3 + $0x1d1] sm:$0xff] }
 0x2f4   : > { %10342 = vmatprep.subr.bf16.mxu1 %v11190_v9  ;;  %v7510_v50 = vpack.c.bf16 %v7499_v32, %v7498_v2  ;;  %v5876_v32 = vld [vmem:[%s11395_s21 + $0x60] sm:$0xff] }
 0x2f6   : > { %10083 = vmatpush3.bf16.msra.mxu0 %v11189_v7  ;;  %v7511_v7 = vpack.c.bf16 %v7501_v49, %v7500_v25  ;;  %v8632_v49 = vld [vmem:[%s11395_s21 + $0x80] sm:$0xff] }
 0x2f7   : > { %10343 = vmatpush3.bf16.msra.mxu1 %v11190_v9  ;;  %10084 = vmatprep.subr.bf16.mxu0 %v11191_v47  ;;  %v7504_v9 = vld [vmem:[#allocation3 + $0x229] sm:$0xff] }
 0x2f8   : > { %10069 = vmatmul.mubr.bf16.gmra.mrb[24].mxu0 %v12542_v13  ;;  %10344 = vmatprep.subr.bf16.mxu1 %v11192_v45  ;;  %v11196_v13 = vld [vmem:[%s12903_s3 + $0x200] sm:$0xff]  }
 0x2f9   : > { %10329 = vmatmul.mubr.bf16.gmra.mrb[28].mxu1 %v7111_v35  ;;  %10072 = vmatprep.mubr.bf16.mxu0 %v12562_v29  ;;  %v5655_v29 = vpack.c.bf16 %v5640_v54, %v5639_v6  ;;  %v5866_v35 = vld [vmem:[%s11395_s21 + $0x10] sm:$0xff]  ;;  %v5867_v6 = vld [vmem:[%s11395_s21 + $0x18] sm:$0xff] }
 0x2fa   : > { %10085 = vmatpush3.bf16.msra.mxu0 %v11191_v47  ;;  %10348 = vmatprep.mubr.bf16.mxu1 %v12565_v38  ;;  %v11197_v38 = vld [vmem:[%s12903_s3 + $0x238] sm:$0xff]   ;;  %v7513_v47 = vpack.c.bf16 %v7505_v21, %v7504_v9 }
 0x2fb   : > { %10345 = vmatpush3.bf16.msra.mxu1 %v11192_v45  ;;  %10086 = vmatprep.subr.bf16.mxu0 %v11193_v60  ;;  %v12792_v45 = vld [vmem:[%s12904_s4] ss:$0 sm:$0xff]  ;;  %v5879_v9 = vld [vmem:[%s11395_s21 + $0x78] sm:$0xff] }
 0x2fc   : > { %10346 = vmatprep.subr.bf16.mxu1 %v11194_v8 }
 0x2fe   : > { %10087 = vmatpush3.bf16.msra.mxu0 %v11193_v60 }
 0x2ff   : > { %10347 = vmatpush3.bf16.msra.mxu1 %v11194_v8  ;;  %10088 = vmatprep.subr.bf16.mxu0 %v11195_v53 }
 0x300   : > { %10073 = vmatmul.mubr.bf16.gmra.mrb[28].mxu0 %v12548_v17  ;;  %10364 = vmatprep.subr.bf16.mxu1 %v11196_v13  ;;  %v5642_v17 = vld [vmem:[#allocation3 + $0x71] sm:$0xff] }
 0x301   : > { %10092 = vmatprep.mubr.bf16.mxu0 %v5655_v29  ;;  %v5656_v23 = vpack.c.bf16 %v5642_v17, %v5641_v11 }
 0x302   : > { %10349 = vmatmul.mubr.bf16.vlgmr.msra.gmra.mrb[16].mxu1 %v12574_v46  ;;  %10089 = vmatpush3.bf16.msra.mxu0 %v11195_v53  ;;  %v11200_v46 = vld [vmem:[%s12903_s3 + $0x218] sm:$0xff]   ;;  %v5864_v53 = vld [vmem:[%s11395_s21] sm:$0xff] }
 0x303   : > { %10352 = vmatprep.mubr.bf16.mxu1 %v12584_v0  ;;  %10365 = vmatpush3.bf16.msra.mxu1 %v11196_v13  ;;  %v5645_v0 = vld [vmem:[#allocation3 + $0xa9] sm:$0xff] }
 0x304   : > { %10090 = vmatprep.subr.bf16.mxu0 %v11197_v38  ;;  %10366 = vmatprep.subr.bf16.mxu1 %v11198_v59  ;;  %v5658_v1 = vpack.c.bf16 %v5646_v30, %v5645_v0  ;;  %v5868_v0 = vld [vmem:[%s11395_s21 + $0x20] sm:$0xff] }
 0x306   : > { %10091 = vmatpush3.bf16.msra.mxu0 %v11197_v38 }
 0x307   : > { %10367 = vmatpush3.bf16.msra.mxu1 %v11198_v59  ;;  %v5865_v59 = vld [vmem:[%s11395_s21 + $0x8] sm:$0xff] }
 0x308   : > { %10368 = vmatprep.subr.bf16.mxu1 %v11199_v27 }
 0x309   : > { %10093 = vmatmul.mubr.bf16.vlgmr.msra.gmra.mrb[16].mxu0 %v5656_v23  ;;  %v5870_v23 = vld [vmem:[%s11395_s21 + $0x30] sm:$0xff] }
 0x30a   : > { %10353 = vmatmul.mubr.bf16.gmra.mrb[20].mxu1 %v12590_v26  ;;  %10096 = vmatprep.mubr.bf16.mxu0 %v5657_v42  ;;  %v11202_v26 = vld [vmem:[%s12903_s3 + $0x228] sm:$0xff]  }
 0x30b   : > { %10356 = vmatprep.mubr.bf16.mxu1 %v12604_v37  ;;  %10369 = vmatpush3.bf16.msra.mxu1 %v11199_v27  ;;  %v7303_v37 = vld [vmem:[#allocation3 + $0x228] sm:$0xff] }
 0x30c   : > { %10370 = vmatprep.subr.bf16.mxu1 %v11200_v46  ;;  %v7312_v52 = vpack.c.bf16 %v7304_v12, %v7303_v37 }
 0x30f   : > { %10371 = vmatpush3.bf16.msra.mxu1 %v11200_v46 }
 0x310   : > { %10372 = vmatprep.subr.bf16.mxu1 %v11201_v44 }
 0x311   : > { %10097 = vmatmul.mubr.bf16.gmra.mrb[20].mxu0 %v5658_v1 }
 0x312   : > { %10357 = vmatmul.mubr.bf16.gmra.mrb[24].mxu1 %v12610_v57  ;;  %10100 = vmatprep.mubr.bf16.mxu0 %v5659_v10  ;;  %v5660_v57 = vpack.c.bf16 %v5650_v63, %v5649_v4 }
 0x313   : > { %10360 = vmatprep.mubr.bf16.mxu1 %v12624_v31  ;;  %10373 = vmatpush3.bf16.msra.mxu1 %v11201_v44  ;;  %v11204_v31 = vld [vmem:[%s12903_s3 + $0x238] sm:$0xff]  }
 0x314   : > { %10374 = vmatprep.subr.bf16.mxu1 %v11202_v26 }
 0x317   : > { %10375 = vmatpush3.bf16.msra.mxu1 %v11202_v26  ;;  %v5869_v26 = vld [vmem:[%s11395_s21 + $0x28] sm:$0xff] }
 0x318   : > { %10376 = vmatprep.subr.bf16.mxu1 %v11203_v20 }
 0x319   : > { %10101 = vmatmul.mubr.bf16.gmra.mrb[24].mxu0 %v5660_v57 }
 0x31a   : > { %10361 = vmatmul.mubr.bf16.gmra.mrb[28].mxu1 %v7312_v52  ;;  %10104 = vmatprep.mubr.bf16.mxu0 %v5661_v40  ;;  %v5875_v40 = vld [vmem:[%s11395_s21 + $0x58] sm:$0xff] }
 0x31b   : > { %10377 = vmatpush3.bf16.msra.mxu1 %v11203_v20  ;;  %10380 = vmatprep.mubr.bf16.mxu1 %v7506_v5 }
 0x31c   : > { %10378 = vmatprep.subr.bf16.mxu1 %v11204_v31 }
 0x31f   : > { %10379 = vmatpush3.bf16.msra.mxu1 %v11204_v31 }
 0x321   : > { %10105 = vmatmul.mubr.bf16.gmra.mrb[28].mxu0 %v5662_v43 }
 0x322   : > { %10381 = vmatmul.mubr.bf16.vlgmr.msra.gmra.mrb[16].mxu1 %v7507_v56  ;;  %v5878_v56 = vld [vmem:[%s11395_s21 + $0x70] sm:$0xff] }
 0x323   : > { %10384 = vmatprep.mubr.bf16.mxu1 %v7508_v19 }
 0x32a   : > { %10385 = vmatmul.mubr.bf16.gmra.mrb[20].mxu1 %v7509_v24 }
 0x32b   : > { %10388 = vmatprep.mubr.bf16.mxu1 %v7510_v50 }
 0x332   : > { %10389 = vmatmul.mubr.bf16.gmra.mrb[24].mxu1 %v7511_v7 }
 0x333   : > { %10392 = vmatprep.mubr.bf16.mxu1 %v12685_v51 }
 0x33a   : > { %10393 = vmatmul.mubr.bf16.gmra.mrb[28].mxu1 %v7513_v47 }
 0x3dc   : > { %v10094_v55 = vpop.f32.mrb[16].mxu0 }
 0x3dd   : > { %v5850_v60 = vadd.f32 %v10094_v55, %v12792_v45  ;;  %v5762_v8 = vpop.f32.mrb[17].mxu0 }
 0x3de   : > { %v5848_v51 = vadd.f32 %v12792_v45, %v5762_v8  ;;  %v10095_v13 = vpop.f32.mrb[18].mxu0 }
 0x3df   : > { %v5882_v54 = vadd.f32 %v5866_v35, %v5850_v60  ;;  %v5851_v29 = vadd.f32 %v10095_v13, %v12792_v45  ;;  %v5765_v38 = vpop.f32.mrb[19].mxu0  ;;  %v8635_v60 = vld [vmem:[%s11395_s21 + $0x98] sm:$0xff] }
 0x3e0   : > { %v5880_v11 = vadd.f32 %v5864_v53, %v5848_v51  ;;  %v5849_v17 = vadd.f32 %v12792_v45, %v5765_v38  ;;  %v5877_v53 = vld [vmem:[%s11395_s21 + $0x68] sm:$0xff] }
 0x3e1   : > { %5898 = vst [vmem:[%s12802_s14 + $0x10] sm:$0xff] %v5882_v54  ;;  %v5883_v27 = vadd.f32 %v5867_v6, %v5851_v29  ;;  %v8633_v38 = vld [vmem:[%s11395_s21 + $0x88] sm:$0xff] }
 0x3e2   : > { %5896 = vst [vmem:[%s12802_s14] sm:$0xff] %v5880_v11  ;;  %v5881_v28 = vadd.f32 %v5865_v59, %v5849_v17 }
 0x3e3   : > { %5899 = vst [vmem:[%s12802_s14 + $0x18] sm:$0xff] %v5883_v27 }
 0x3e4   : > { %5897 = vst [vmem:[%s12802_s14 + $0x8] sm:$0xff] %v5881_v28  ;;  %v10098_v62 = vpop.f32.mrb[20].mxu0 }
 0x3e5   : > { %v5854_v42 = vadd.f32 %v10098_v62, %v12792_v45  ;;  %v5778_v46 = vpop.f32.mrb[21].mxu0 }
 0x3e6   : > { %v5852_v30 = vadd.f32 %v12792_v45, %v5778_v46  ;;  %v10099_v44 = vpop.f32.mrb[22].mxu0 }
 0x3e7   : > { %v5886_v15 = vadd.f32 %v5870_v23, %v5854_v42  ;;  %v5855_v1 = vadd.f32 %v10099_v44, %v12792_v45  ;;  %v5781_v10 = vpop.f32.mrb[23].mxu0  ;;  %v8638_v42 = vld [vmem:[%s11395_s21 + $0xb0] sm:$0xff] }
 0x3e8   : > { %v5884_v37 = vadd.f32 %v5868_v0, %v5852_v30  ;;  %v5853_v12 = vadd.f32 %v12792_v45, %v5781_v10  ;;  %v8636_v30 = vld [vmem:[%s11395_s21 + $0xa0] sm:$0xff] }
 0x3e9   : > { %5902 = vst [vmem:[%s12802_s14 + $0x30] sm:$0xff] %v5886_v15  ;;  %v5887_v4 = vadd.f32 %v5871_v48, %v5855_v1  ;;  %v8639_v15 = vld [vmem:[%s11395_s21 + $0xb8] sm:$0xff] }
 0x3ea   : > { %5900 = vst [vmem:[%s12802_s14 + $0x20] sm:$0xff] %v5884_v37  ;;  %v5885_v63 = vadd.f32 %v5869_v26, %v5853_v12  ;;  %v8637_v37 = vld [vmem:[%s11395_s21 + $0xa8] sm:$0xff] }
 0x3eb   : > { %5903 = vst [vmem:[%s12802_s14 + $0x38] sm:$0xff] %v5887_v4 }
 0x3ec   : > { %5901 = vst [vmem:[%s12802_s14 + $0x28] sm:$0xff] %v5885_v63  ;;  %v10102_v20 = vpop.f32.mrb[24].mxu0 }
 0x3ed   : > { %v5858_v36 = vadd.f32 %v10102_v20, %v12792_v45  ;;  %v5794_v52 = vpop.f32.mrb[25].mxu0 }
 0x3ee   : > { %v5856_v34 = vadd.f32 %v12792_v45, %v5794_v52  ;;  %v10103_v57 = vpop.f32.mrb[26].mxu0 }
 0x3ef   : > { %v5890_v31 = vadd.f32 %v5874_v3, %v5858_v36  ;;  %v5859_v5 = vadd.f32 %v10103_v57, %v12792_v45  ;;  %v5797_v33 = vpop.f32.mrb[27].mxu0  ;;  %v8642_v36 = vld [vmem:[%s11395_s21 + $0xd0] sm:$0xff] }
 0x3f0   : > { %v5888_v41 = vadd.f32 %v5872_v39, %v5856_v34  ;;  %v5857_v18 = vadd.f32 %v12792_v45, %v5797_v33  ;;  %v8640_v34 = vld [vmem:[%s11395_s21 + $0xc0] sm:$0xff] }
 0x3f1   : > { %5906 = vst [vmem:[%s12802_s14 + $0x50] sm:$0xff] %v5890_v31  ;;  %v5891_v58 = vadd.f32 %v5875_v40, %v5859_v5  ;;  %v8643_v31 = vld [vmem:[%s11395_s21 + $0xd8] sm:$0xff] }
 0x3f2   : > { %5904 = vst [vmem:[%s12802_s14 + $0x40] sm:$0xff] %v5888_v41  ;;  %v5889_v14 = vadd.f32 %v5873_v61, %v5857_v18  ;;  %v8641_v41 = vld [vmem:[%s11395_s21 + $0xc8] sm:$0xff] }
 0x3f3   : > { %5907 = vst [vmem:[%s12802_s14 + $0x58] sm:$0xff] %v5891_v58 }
 0x3f4   : > { %5905 = vst [vmem:[%s12802_s14 + $0x48] sm:$0xff] %v5889_v14  ;;  %v10106_v43 = vpop.f32.mrb[28].mxu0 }
 0x3f5   : > { %v5862_v19 = vadd.f32 %v10106_v43, %v12792_v45  ;;  %v10382_v16 = vpop.f32.mrb[16].mxu1  ;;  %v5810_v2 = vpop.f32.mrb[29].mxu0 }
 0x3f6   : > { %v7700_v24 = vadd.f32 %v10382_v16, %v12792_v45  ;;  %v5860_v50 = vadd.f32 %v12792_v45, %v5810_v2  ;;  %v7612_v25 = vpop.f32.mrb[17].mxu1  ;;  %v10107_v7 = vpop.f32.mrb[30].mxu0  ;;  %v8644_v2 = vld [vmem:[%s11395_s21 + $0xe0] sm:$0xff] }
 0x3f7   : > { %v5894_v21 = vadd.f32 %v5878_v56, %v5862_v19  ;;  %v7698_v47 = vadd.f32 %v12792_v45, %v7612_v25  ;;  %v5863_v55 = vadd.f32 %v10107_v7, %v12792_v45  ;;  %v10383_v35 = vpop.f32.mrb[18].mxu1  ;;  %v5813_v8 = vpop.f32.mrb[31].mxu0  ;;  %v8646_v19 = vld [vmem:[%s11395_s21 + $0xf0] sm:$0xff] }
 0x3f8   : > { %v7733_v51 = vadd.f32 %v8634_v22, %v7700_v24  ;;  %v5892_v13 = vadd.f32 %v5876_v32, %v5860_v50  ;;  %v7701_v6 = vadd.f32 %v10383_v35, %v12792_v45  ;;  %v5861_v54 = vadd.f32 %v12792_v45, %v5813_v8  ;;  %v7615_v29 = vpop.f32.mrb[19].mxu1  ;;  %v8647_v50 = vld [vmem:[%s11395_s21 + $0xf8] sm:$0xff] }
 0x3f9   : > { %5910 = vst [vmem:[%s12802_s14 + $0x70] sm:$0xff] %v5894_v21  ;;  %v7731_v59 = vadd.f32 %v8632_v49, %v7698_v47  ;;  %v5895_v11 = vadd.f32 %v5879_v9, %v5863_v55  ;;  %v7699_v17 = vadd.f32 %v12792_v45, %v7615_v29  ;;  %v8645_v9 = vld [vmem:[%s11395_s21 + $0xe8] sm:$0xff] }
 0x3fa   : > { %8650 = vst [vmem:[%s12802_s14 + $0x90] sm:$0xff] %v7733_v51  ;;  %5908 = vst [vmem:[%s12802_s14 + $0x60] sm:$0xff] %v5892_v13  ;;  %v7734_v27 = vadd.f32 %v8635_v60, %v7701_v6  ;;  %v5893_v28 = vadd.f32 %v5877_v53, %v5861_v54 }
 0x3fb   : > { %8648 = vst [vmem:[%s12802_s14 + $0x80] sm:$0xff] %v7731_v59  ;;  %5911 = vst [vmem:[%s12802_s14 + $0x78] sm:$0xff] %v5895_v11  ;;  %v7732_v62 = vadd.f32 %v8633_v38, %v7699_v17 }
 0x3fc   : > { %8651 = vst [vmem:[%s12802_s14 + $0x98] sm:$0xff] %v7734_v27  ;;  %5909 = vst [vmem:[%s12802_s14 + $0x68] sm:$0xff] %v5893_v28 }
 0x3fd   : > { %8649 = vst [vmem:[%s12802_s14 + $0x88] sm:$0xff] %v7732_v62  ;;  %v10386_v23 = vpop.f32.mrb[20].mxu1 }
 0x3fe   : > { %v7704_v46 = vadd.f32 %v10386_v23, %v12792_v45  ;;  %v7628_v0 = vpop.f32.mrb[21].mxu1 }
 0x3ff   : > { %v7702_v44 = vadd.f32 %v12792_v45, %v7628_v0  ;;  %v10387_v48 = vpop.f32.mrb[22].mxu1 }
 0x400   : > { %v7737_v1 = vadd.f32 %v8638_v42, %v7704_v46  ;;  %v7705_v10 = vadd.f32 %v10387_v48, %v12792_v45  ;;  %v7631_v26 = vpop.f32.mrb[23].mxu1 }
 0x401   : > { %v7735_v12 = vadd.f32 %v8636_v30, %v7702_v44  ;;  %v7703_v4 = vadd.f32 %v12792_v45, %v7631_v26 }
 0x402   : > { %8654 = vst [vmem:[%s12802_s14 + $0xb0] sm:$0xff] %v7737_v1  ;;  %v7738_v63 = vadd.f32 %v8639_v15, %v7705_v10 }
 0x403   : > { %8652 = vst [vmem:[%s12802_s14 + $0xa0] sm:$0xff] %v7735_v12  ;;  %v7736_v20 = vadd.f32 %v8637_v37, %v7703_v4 }
 0x404   : > { %8655 = vst [vmem:[%s12802_s14 + $0xb8] sm:$0xff] %v7738_v63 }
 0x405   : > { %8653 = vst [vmem:[%s12802_s14 + $0xa8] sm:$0xff] %v7736_v20  ;;  %v10390_v3 = vpop.f32.mrb[24].mxu1 }
 0x406   : > { %v7708_v52 = vadd.f32 %v10390_v3, %v12792_v45  ;;  %v7644_v39 = vpop.f32.mrb[25].mxu1 }
 0x407   : > { %v7706_v57 = vadd.f32 %v12792_v45, %v7644_v39  ;;  %v10391_v40 = vpop.f32.mrb[26].mxu1 }
 0x408   : > { %v7741_v5 = vadd.f32 %v8642_v36, %v7708_v52  ;;  %v7709_v33 = vadd.f32 %v10391_v40, %v12792_v45  ;;  %v7647_v61 = vpop.f32.mrb[27].mxu1 }
 0x409   : > { %v7739_v18 = vadd.f32 %v8640_v34, %v7706_v57  ;;  %v7707_v58 = vadd.f32 %v12792_v45, %v7647_v61 }
 0x40a   : > { %8658 = vst [vmem:[%s12802_s14 + $0xd0] sm:$0xff] %v7741_v5  ;;  %v7742_v14 = vadd.f32 %v8643_v31, %v7709_v33 }
 0x40b   : > { %8656 = vst [vmem:[%s12802_s14 + $0xc0] sm:$0xff] %v7739_v18  ;;  %v7740_v43 = vadd.f32 %v8641_v41, %v7707_v58 }
 0x40c   : > { %8659 = vst [vmem:[%s12802_s14 + $0xd8] sm:$0xff] %v7742_v14 }
 0x40d   : > { %8657 = vst [vmem:[%s12802_s14 + $0xc8] sm:$0xff] %v7740_v43  ;;  %v10394_v56 = vpop.f32.mrb[28].mxu1 }
 0x40e   : > { %v7712_v16 = vadd.f32 %v10394_v56, %v12792_v45  ;;  %v7660_v22 = vpop.f32.mrb[29].mxu1 }
 0x40f   : > { %v7710_v32 = vadd.f32 %v12792_v45, %v7660_v22  ;;  %v10395_v24 = vpop.f32.mrb[30].mxu1 }
 0x410   : > { %v7745_v25 = vadd.f32 %v8646_v19, %v7712_v16  ;;  %v7713_v49 = vadd.f32 %v10395_v24, %v12792_v45  ;;  %v7663_v7 = vpop.f32.mrb[31].mxu1 }
 0x411   : > { %v7743_v21 = vadd.f32 %v8644_v2, %v7710_v32  ;;  %v7711_v47 = vadd.f32 %v12792_v45, %v7663_v7 }
 0x412   : > { %8662 = vst [vmem:[%s12802_s14 + $0xf0] sm:$0xff] %v7745_v25  ;;  %v7746_v55 = vadd.f32 %v8647_v50, %v7713_v49 }
 0x413   : > { %8660 = vst [vmem:[%s12802_s14 + $0xe0] sm:$0xff] %v7743_v21  ;;  %v7744_v35 = vadd.f32 %v8645_v9, %v7711_v47 }
 0x414   : > { %8663 = vst [vmem:[%s12802_s14 + $0xf8] sm:$0xff] %v7746_v55 }
 0x415   : > { %8661 = vst [vmem:[%s12802_s14 + $0xe8] sm:$0xff] %v7744_v35 }
 0x416 PF: > { %s15_s18 = sadd.s32 1, %s11214_s18  }
 0x417   : > { %p12_p4 = scmp.ge.s32.totalorder %s15_s18, 4  }
 0x419   :  { %14 = sbr.rel (!%p12_p4) target bundleno = 1 (0x1), region = 100 }

</bundles_post_ra>
